<compile_context>
chip_gen: v7x
topology: tpu7x:2x2x1
jax: 0.10.0
libtpu: 0.0.40
codegen_flags: <defaults>
</compile_context>

<pallas_src>
import functools

import jax
import jax.numpy as jnp
import numpy as np
from jax.experimental import pallas as pl
from jax.experimental.pallas import tpu as pltpu


# ---------------------------------------------------------------------------
# Pallas kernel
# ---------------------------------------------------------------------------

def _im2col(x, ksize, out_dhw):
    """Build an im2col slab from a channels-last slab.

    x: (Din, Hp, Wp, C) array (already loaded into registers)
    returns (Do*Ho*Wo, Dk*Hk*Wk*C); column order is (kd, kh, kw, c), matching
    the weight flattening done in the wrapper.
    """
    Dk, Hk, Wk = ksize
    Do, Ho, Wo = out_dhw
    m = Do * Ho * Wo
    c = x.shape[-1]
    cols = []
    for kd in range(Dk):
        for kh in range(Hk):
            for kw in range(Wk):
                patch = x[kd:kd + Do, kh:kh + Ho, kw:kw + Wo, :]
                cols.append(patch.reshape(m, c))
    return jnp.concatenate(cols, axis=-1)


def _down_shifted_conv3d_kernel(xp2_ref, xp3_ref, w2_ref, b2_ref,
                                w31_ref, b31_ref, w32_ref, b32_ref,
                                o_ref, ym_ref, *, ksize, D, H, W):
    """Fused DownShiftedConv3d forward for one batch element.

    xp2_ref: (1, 2, H+2, W+2, Cin)            top/bottom depth slices, 3x3-padded
    xp3_ref: (1, D, H+Hk-1, W+2pw, Cin)       down-shift padded slab
    w2_ref : (Cout, 9*Cin)        b2_ref : (Cout, 1)
    w31_ref: (Dk*Hk*Wk*Cin, Cout) b31_ref: (1, Cout)
    w32_ref: (Cout, Dk*Hk*Wk*Cout) b32_ref: (Cout, 1)
    o_ref  : (1, Cout, Dout*H*W)              channels-first, lane-dense output
    ym_ref : VMEM scratch (Dm, H+Hk-1, W+2pw, Cout) for the padded intermediate
    """
    Dk, Hk, Wk = ksize
    pw = (Wk - 1) // 2
    HW = H * W
    f32 = jnp.float32
    Cout = o_ref.shape[1]

    # (Cout, K) x (M, K)^T -> (Cout, M): attention-style transposed-rhs contraction,
    # gives the lane-dense channels-first result directly (no explicit transpose).
    t_dims = (((1,), (1,)), ((), ()))

    # Hoisted weight / bias loads (each used by two branches below).
    w2, b2 = w2_ref[...], b2_ref[...]
    w31, b31 = w31_ref[...], b31_ref[...]
    w32, b32 = w32_ref[...], b32_ref[...]

    # ---- Conv2d(3x3, padding=1) on the top / bottom depth slices (shared weights)
    x2 = xp2_ref[0]                                              # (2, H+2, W+2, Cin)
    cols_t = _im2col(x2[0:1], (1, 3, 3), (1, H, W))              # (HW, 9*Cin)
    cols_b = _im2col(x2[1:2], (1, 3, 3), (1, H, W))
    yt = jax.lax.dot_general(w2, cols_t, t_dims,
                             preferred_element_type=f32) + b2    # (Cout, HW)
    yb = jax.lax.dot_general(w2, cols_b, t_dims,
                             preferred_element_type=f32) + b2

    # ---- conv3d1 on xm1 = x[:, :, :2] and xm2 = x[:, :, 1:]  (shared weights)
    x3 = xp3_ref[0]                                              # (D, H+Hk-1, W+2pw, Cin)
    Do1 = 3 - Dk          # depth-2 slice -> 2 - Dk + 1
    Do2 = D - Dk          # depth-(D-1) slice -> (D-1) - Dk + 1
    ym1 = jnp.dot(_im2col(x3[:2], ksize, (Do1, H, W)), w31,
                  preferred_element_type=f32) + b31              # (Do1*HW, Cout)
    ym2 = jnp.dot(_im2col(x3[1:], ksize, (Do2, H, W)), w31,
                  preferred_element_type=f32) + b31              # (Do2*HW, Cout)

    # ---- stage ym = cat([ym1, ym2], depth), down/right padded, in VMEM only
    Dm = Do1 + Do2
    ym_ref[...] = jnp.zeros_like(ym_ref)
    ym_ref[0:Do1, Hk - 1:Hk - 1 + H, pw:pw + W, :] = ym1.reshape(Do1, H, W, Cout)
    ym_ref[Do1:Dm, Hk - 1:Hk - 1 + H, pw:pw + W, :] = ym2.reshape(Do2, H, W, Cout)

    # ---- conv3d2 on the staged intermediate (never leaves VMEM)
    Dof = Dm - Dk + 1
    cols_m = _im2col(ym_ref[...], ksize, (Dof, H, W))            # (Dof*HW, K2)
    ym_out = jax.lax.dot_general(w32, cols_m, t_dims,
                                 preferred_element_type=f32) + b32  # (Cout, Dof*HW)

    # ---- assemble channels-first, lane-dense output: (Cout, Dout*H*W)
    out = jnp.concatenate([yt, ym_out, yb], axis=-1)
    o_ref[0] = out.astype(o_ref.dtype)


# ---------------------------------------------------------------------------
# Wrapper (padding / stacking glue + pallas_call)
# ---------------------------------------------------------------------------

def down_shifted_conv3d(x_ncdhw, params):
    """DownShiftedConv3d.forward.  x: (N, C, D, H, W) NCDHW -> (N, Cout, Dout, H, W)."""
    Dk, Hk, Wk = params["kernel_size"]
    if Wk % 2 != 1:
        raise NotImplementedError("even Wk gives mismatched widths at the final concat")
    if not 1 <= Dk <= 2:
        raise NotImplementedError("module slices x[:, :, :2]; depth kernel must be 1 or 2")
    pw = (Wk - 1) // 2
    N, Cin, D, H, W = x_ncdhw.shape
    Cout = params["b2d"].shape[0]
    Do1, Do2 = 3 - Dk, D - Dk
    Dm = Do1 + Do2
    Dof = Dm - Dk + 1
    Dout = Dof + 2
    HW = H * W

    x = jnp.transpose(x_ncdhw, (0, 2, 3, 4, 1))                     # NDHWC
    x2 = jnp.stack([x[:, 0], x[:, -1]], axis=1)                     # (N, 2, H, W, C)
    xp2 = jnp.pad(x2, ((0, 0), (0, 0), (1, 1), (1, 1), (0, 0)))
    xp3 = jnp.pad(x, ((0, 0), (0, 0), (Hk - 1, 0), (pw, pw), (0, 0)))

    kern = functools.partial(_down_shifted_conv3d_kernel,
                             ksize=(Dk, Hk, Wk), D=D, H=H, W=W)
    out = pl.pallas_call(
        kern,
        out_shape=jax.ShapeDtypeStruct((N, Cout, Dout * HW), x.dtype),
        grid=(N,),
        in_specs=[
            pl.BlockSpec((1, 2, H + 2, W + 2, Cin), lambda n: (n, 0, 0, 0, 0)),
            pl.BlockSpec((1, D, H + Hk - 1, W + 2 * pw, Cin),
                         lambda n: (n, 0, 0, 0, 0)),
            pl.BlockSpec((Cout, 9 * Cin), lambda n: (0, 0)),
            pl.BlockSpec((Cout, 1), lambda n: (0, 0)),
            pl.BlockSpec((Dk * Hk * Wk * Cin, Cout), lambda n: (0, 0)),
            pl.BlockSpec((1, Cout), lambda n: (0, 0)),
            pl.BlockSpec((Cout, Dk * Hk * Wk * Cout), lambda n: (0, 0)),
            pl.BlockSpec((Cout, 1), lambda n: (0, 0)),
        ],
        out_specs=pl.BlockSpec((1, Cout, Dout * HW), lambda n: (n, 0, 0)),
        scratch_shapes=[pltpu.VMEM((Dm, H + Hk - 1, W + 2 * pw, Cout), jnp.float32)],
        compiler_params=pltpu.CompilerParams(dimension_semantics=("parallel",)),
    )(xp2, xp3,
      params["w2d_cm"], params["b2d"].reshape(Cout, 1),
      params["w3d1_kc"], params["b3d1"].reshape(1, Cout),
      params["w3d2_cm"], params["b3d2"].reshape(Cout, 1))

    return out.reshape(N, Cout, Dout, H, W)                        # NCDHW


# ---------------------------------------------------------------------------
# Parameters (weight-norm folded in) and a pure-JAX reference
# ---------------------------------------------------------------------------

def _weight_norm(v, g):
    # nn.utils.weight_norm default: w = g * v / ||v||, norm over all dims except dim 0.
    axes = tuple(range(1, v.ndim))
    norm = jnp.sqrt(jnp.sum(v * v, axis=axes, keepdims=True))
    return g.reshape((-1,) + (1,) * (v.ndim - 1)) * v / norm


def make_params(key, n_channels, out_channels, kernel_size):
    Dk, Hk, Wk = kernel_size
    keys = jax.random.split(key, 9)

    def make_conv(kv, kg, kb, cout, cin, kshape):
        v = 0.1 * jax.random.normal(kv, (cout, cin) + kshape, jnp.float32)
        g = jax.random.uniform(kg, (cout,), jnp.float32, minval=0.5, maxval=1.5)
        b = 0.05 * jax.random.normal(kb, (cout,), jnp.float32)
        return _weight_norm(v, g), b

    w2d, b2d = make_conv(keys[0], keys[1], keys[2], out_channels, n_channels, (3, 3))
    w3d1, b3d1 = make_conv(keys[3], keys[4], keys[5], out_channels, n_channels,
                           (Dk, Hk, Wk))
    w3d2, b3d2 = make_conv(keys[6], keys[7], keys[8], out_channels, out_channels,
                           (Dk, Hk, Wk))

    return dict(
        kernel_size=kernel_size,
        # torch-layout weights (O, I, ...) -- used only by the pure-JAX reference
        w2d=w2d, b2d=b2d, w3d1=w3d1, b3d1=b3d1, w3d2=w3d2, b3d2=b3d2,
        # pre-flattened kernel operands (column/row order = (kd, kh, kw, cin)):
        w2d_cm=jnp.transpose(w2d, (0, 2, 3, 1)).reshape(out_channels, -1),
        w3d1_kc=jnp.transpose(w3d1, (2, 3, 4, 1, 0)).reshape(-1, out_channels),
        w3d2_cm=jnp.transpose(w3d2, (0, 2, 3, 4, 1)).reshape(out_channels, -1),
    )


def _conv3d_ref(x, w, b, pad_dhw):
    out = jax.lax.conv_general_dilated(
        x, w, window_strides=(1, 1, 1), padding=pad_dhw,
        dimension_numbers=("NCDHW", "OIDHW", "NCDHW"),
        precision=jax.lax.Precision.HIGHEST)
    return out + b.reshape(1, -1, 1, 1, 1)


def down_shifted_conv3d_ref(x, params):
    """Pure-JAX reference following the PyTorch module structure exactly."""
    Dk, Hk, Wk = params["kernel_size"]
    pw = (Wk - 1) // 2
    w2d, b2d = params["w2d"], params["b2d"]
    w3d1, b3d1 = params["w3d1"], params["b3d1"]
    w3d2, b3d2 = params["w3d2"], params["b3d2"]

    xt, xm1, xm2, xb = x[:, :, 0], x[:, :, :2], x[:, :, 1:], x[:, :, -1]

    def conv2d(z):                       # 3x3, padding=(1,1), as depth-1 3-D conv
        return _conv3d_ref(z[:, :, None], w2d[:, :, None], b2d,
                           [(0, 0), (1, 1), (1, 1)])[:, :, 0]

    def conv3d_ds(z, w, b):              # DownShiftedConv3dSqueeze padding
        return _conv3d_ref(z, w, b, [(0, 0), (Hk - 1, 0), (pw, pw)])

    yt = conv2d(xt)
    yb = conv2d(xb)
    ym1 = conv3d_ds(xm1, w3d1, b3d1)
    ym2 = conv3d_ds(xm2, w3d1, b3d1)
    ym = conv3d_ds(jnp.concatenate([ym1, ym2], axis=2), w3d2, b3d2)
    return jnp.concatenate([yt[:, :, None], ym, yb[:, :, None]], axis=2)


# ---------------------------------------------------------------------------
# Example / self-test
# ---------------------------------------------------------------------------

if __name__ == "__main__":
    key = jax.random.PRNGKey(0)
    k_x, k_p = jax.random.split(key)

    # small shapes consistent with the module (x is NCDHW); kernel (2,2,3) as in u_input
    N, C, D, H, W = 2, 4, 4, 8, 8
    OUT = 8
    kernel_size = (2, 2, 3)

    x = jax.random.normal(k_x, (N, C, D, H, W), jnp.float32)
    params = make_params(k_p, C, OUT, kernel_size)

    y = jax.block_until_ready(down_shifted_conv3d(x, params))
    assert y.shape == (N, OUT, D, H, W), y.shape

    y_ref = down_shifted_conv3d_ref(x, params)
    np.testing.assert_allclose(np.asarray(y), np.asarray(y_ref),
                               rtol=1e-4, atol=1e-4)
    print("KERNEL_OK")
</pallas_src>

<mosaic_0001>
module attributes {stable_mosaic.version = 11 : i64} {
  func.func @_down_shifted_conv3d_kernel(%arg0: i32, %arg1: memref<1x2x10x10x4xf32, #tpu.memory_space<vmem>>, %arg2: memref<1x4x9x10x4xf32, #tpu.memory_space<vmem>>, %arg3: memref<8x36xf32, #tpu.memory_space<vmem>>, %arg4: memref<8x1xf32, #tpu.memory_space<vmem>>, %arg5: memref<48x8xf32, #tpu.memory_space<vmem>>, %arg6: memref<1x8xf32, #tpu.memory_space<vmem>>, %arg7: memref<8x96xf32, #tpu.memory_space<vmem>>, %arg8: memref<8x1xf32, #tpu.memory_space<vmem>>, %arg9: memref<1x8x256xf32, #tpu.memory_space<vmem>>, %arg10: memref<3x9x10x8xf32, #tpu.memory_space<vmem>>) attributes {dimension_semantics = [#tpu.dimension_semantics<parallel>], iteration_bounds = array<i64: 2>, scalar_prefetch = 0 : i64, scratch_operands = 1 : i64, tpu.core_type = #tpu.core_type<tc>, window_params = [{transform_indices = @transform_0, window_bounds = array<i64: 1, 2, 10, 10, 4>}, {transform_indices = @transform_1, window_bounds = array<i64: 1, 4, 9, 10, 4>}, {pipeline_mode = #tpu.pipeline_mode<synchronous>, transform_indices = @transform_2, window_bounds = array<i64: 8, 36>}, {pipeline_mode = #tpu.pipeline_mode<synchronous>, transform_indices = @transform_3, window_bounds = array<i64: 8, 1>}, {pipeline_mode = #tpu.pipeline_mode<synchronous>, transform_indices = @transform_4, window_bounds = array<i64: 48, 8>}, {pipeline_mode = #tpu.pipeline_mode<synchronous>, transform_indices = @transform_5, window_bounds = array<i64: 1, 8>}, {pipeline_mode = #tpu.pipeline_mode<synchronous>, transform_indices = @transform_6, window_bounds = array<i64: 8, 96>}, {pipeline_mode = #tpu.pipeline_mode<synchronous>, transform_indices = @transform_7, window_bounds = array<i64: 8, 1>}, {transform_indices = @transform_8, window_bounds = array<i64: 1, 8, 256>}]} {
    %c0 = arith.constant 0 : index
    %c0_0 = arith.constant 0 : index
    %0 = vector.load %arg3[%c0, %c0_0] : memref<8x36xf32, #tpu.memory_space<vmem>>, vector<8x36xf32>
    %c0_1 = arith.constant 0 : index
    %c0_2 = arith.constant 0 : index
    %1 = vector.load %arg4[%c0_1, %c0_2] : memref<8x1xf32, #tpu.memory_space<vmem>>, vector<8x1xf32>
    %c0_3 = arith.constant 0 : index
    %c0_4 = arith.constant 0 : index
    %2 = vector.load %arg5[%c0_3, %c0_4] : memref<48x8xf32, #tpu.memory_space<vmem>>, vector<48x8xf32>
    %c0_5 = arith.constant 0 : index
    %c0_6 = arith.constant 0 : index
    %3 = vector.load %arg6[%c0_5, %c0_6] : memref<1x8xf32, #tpu.memory_space<vmem>>, vector<1x8xf32>
    %c0_7 = arith.constant 0 : index
    %c0_8 = arith.constant 0 : index
    %4 = vector.load %arg7[%c0_7, %c0_8] : memref<8x96xf32, #tpu.memory_space<vmem>>, vector<8x96xf32>
    %c0_9 = arith.constant 0 : index
    %c0_10 = arith.constant 0 : index
    %5 = vector.load %arg8[%c0_9, %c0_10] : memref<8x1xf32, #tpu.memory_space<vmem>>, vector<8x1xf32>
    %c0_11 = arith.constant 0 : index
    %c0_12 = arith.constant 0 : index
    %c0_13 = arith.constant 0 : index
    %c0_14 = arith.constant 0 : index
    %c0_15 = arith.constant 0 : index
    %6 = vector.load %arg1[%c0_11, %c0_12, %c0_13, %c0_14, %c0_15] : memref<1x2x10x10x4xf32, #tpu.memory_space<vmem>>, vector<1x2x10x10x4xf32>
    %7 = vector.shape_cast %6 : vector<1x2x10x10x4xf32> to vector<2x10x10x4xf32>
    %8 = vector.extract_strided_slice %7 {offsets = [0, 0, 0, 0], sizes = [1, 10, 10, 4], strides = [1, 1, 1, 1]} : vector<2x10x10x4xf32> to vector<1x10x10x4xf32>
    %9 = vector.extract_strided_slice %8 {offsets = [0, 0, 0, 0], sizes = [1, 8, 8, 4], strides = [1, 1, 1, 1]} : vector<1x10x10x4xf32> to vector<1x8x8x4xf32>
    %10 = vector.shape_cast %9 : vector<1x8x8x4xf32> to vector<64x4xf32>
    %11 = vector.extract_strided_slice %8 {offsets = [0, 0, 1, 0], sizes = [1, 8, 8, 4], strides = [1, 1, 1, 1]} : vector<1x10x10x4xf32> to vector<1x8x8x4xf32>
    %12 = vector.shape_cast %11 : vector<1x8x8x4xf32> to vector<64x4xf32>
    %13 = vector.extract_strided_slice %8 {offsets = [0, 0, 2, 0], sizes = [1, 8, 8, 4], strides = [1, 1, 1, 1]} : vector<1x10x10x4xf32> to vector<1x8x8x4xf32>
    %14 = vector.shape_cast %13 : vector<1x8x8x4xf32> to vector<64x4xf32>
    %15 = vector.extract_strided_slice %8 {offsets = [0, 1, 0, 0], sizes = [1, 8, 8, 4], strides = [1, 1, 1, 1]} : vector<1x10x10x4xf32> to vector<1x8x8x4xf32>
    %16 = vector.shape_cast %15 : vector<1x8x8x4xf32> to vector<64x4xf32>
    %17 = vector.extract_strided_slice %8 {offsets = [0, 1, 1, 0], sizes = [1, 8, 8, 4], strides = [1, 1, 1, 1]} : vector<1x10x10x4xf32> to vector<1x8x8x4xf32>
    %18 = vector.shape_cast %17 : vector<1x8x8x4xf32> to vector<64x4xf32>
    %19 = vector.extract_strided_slice %8 {offsets = [0, 1, 2, 0], sizes = [1, 8, 8, 4], strides = [1, 1, 1, 1]} : vector<1x10x10x4xf32> to vector<1x8x8x4xf32>
    %20 = vector.shape_cast %19 : vector<1x8x8x4xf32> to vector<64x4xf32>
    %21 = vector.extract_strided_slice %8 {offsets = [0, 2, 0, 0], sizes = [1, 8, 8, 4], strides = [1, 1, 1, 1]} : vector<1x10x10x4xf32> to vector<1x8x8x4xf32>
    %22 = vector.shape_cast %21 : vector<1x8x8x4xf32> to vector<64x4xf32>
    %23 = vector.extract_strided_slice %8 {offsets = [0, 2, 1, 0], sizes = [1, 8, 8, 4], strides = [1, 1, 1, 1]} : vector<1x10x10x4xf32> to vector<1x8x8x4xf32>
    %24 = vector.shape_cast %23 : vector<1x8x8x4xf32> to vector<64x4xf32>
    %25 = vector.extract_strided_slice %8 {offsets = [0, 2, 2, 0], sizes = [1, 8, 8, 4], strides = [1, 1, 1, 1]} : vector<1x10x10x4xf32> to vector<1x8x8x4xf32>
    %26 = vector.shape_cast %25 : vector<1x8x8x4xf32> to vector<64x4xf32>
    %27 = tpu.concatenate %10, %12, %14, %16, %18, %20, %22, %24, %26 in 1 : vector<64x4xf32>, vector<64x4xf32>, vector<64x4xf32>, vector<64x4xf32>, vector<64x4xf32>, vector<64x4xf32>, vector<64x4xf32>, vector<64x4xf32>, vector<64x4xf32> -> vector<64x36xf32>
    %28 = vector.extract_strided_slice %7 {offsets = [1, 0, 0, 0], sizes = [1, 10, 10, 4], strides = [1, 1, 1, 1]} : vector<2x10x10x4xf32> to vector<1x10x10x4xf32>
    %29 = vector.extract_strided_slice %28 {offsets = [0, 0, 0, 0], sizes = [1, 8, 8, 4], strides = [1, 1, 1, 1]} : vector<1x10x10x4xf32> to vector<1x8x8x4xf32>
    %30 = vector.shape_cast %29 : vector<1x8x8x4xf32> to vector<64x4xf32>
    %31 = vector.extract_strided_slice %28 {offsets = [0, 0, 1, 0], sizes = [1, 8, 8, 4], strides = [1, 1, 1, 1]} : vector<1x10x10x4xf32> to vector<1x8x8x4xf32>
    %32 = vector.shape_cast %31 : vector<1x8x8x4xf32> to vector<64x4xf32>
    %33 = vector.extract_strided_slice %28 {offsets = [0, 0, 2, 0], sizes = [1, 8, 8, 4], strides = [1, 1, 1, 1]} : vector<1x10x10x4xf32> to vector<1x8x8x4xf32>
    %34 = vector.shape_cast %33 : vector<1x8x8x4xf32> to vector<64x4xf32>
    %35 = vector.extract_strided_slice %28 {offsets = [0, 1, 0, 0], sizes = [1, 8, 8, 4], strides = [1, 1, 1, 1]} : vector<1x10x10x4xf32> to vector<1x8x8x4xf32>
    %36 = vector.shape_cast %35 : vector<1x8x8x4xf32> to vector<64x4xf32>
    %37 = vector.extract_strided_slice %28 {offsets = [0, 1, 1, 0], sizes = [1, 8, 8, 4], strides = [1, 1, 1, 1]} : vector<1x10x10x4xf32> to vector<1x8x8x4xf32>
    %38 = vector.shape_cast %37 : vector<1x8x8x4xf32> to vector<64x4xf32>
    %39 = vector.extract_strided_slice %28 {offsets = [0, 1, 2, 0], sizes = [1, 8, 8, 4], strides = [1, 1, 1, 1]} : vector<1x10x10x4xf32> to vector<1x8x8x4xf32>
    %40 = vector.shape_cast %39 : vector<1x8x8x4xf32> to vector<64x4xf32>
    %41 = vector.extract_strided_slice %28 {offsets = [0, 2, 0, 0], sizes = [1, 8, 8, 4], strides = [1, 1, 1, 1]} : vector<1x10x10x4xf32> to vector<1x8x8x4xf32>
    %42 = vector.shape_cast %41 : vector<1x8x8x4xf32> to vector<64x4xf32>
    %43 = vector.extract_strided_slice %28 {offsets = [0, 2, 1, 0], sizes = [1, 8, 8, 4], strides = [1, 1, 1, 1]} : vector<1x10x10x4xf32> to vector<1x8x8x4xf32>
    %44 = vector.shape_cast %43 : vector<1x8x8x4xf32> to vector<64x4xf32>
    %45 = vector.extract_strided_slice %28 {offsets = [0, 2, 2, 0], sizes = [1, 8, 8, 4], strides = [1, 1, 1, 1]} : vector<1x10x10x4xf32> to vector<1x8x8x4xf32>
    %46 = vector.shape_cast %45 : vector<1x8x8x4xf32> to vector<64x4xf32>
    %47 = tpu.concatenate %30, %32, %34, %36, %38, %40, %42, %44, %46 in 1 : vector<64x4xf32>, vector<64x4xf32>, vector<64x4xf32>, vector<64x4xf32>, vector<64x4xf32>, vector<64x4xf32>, vector<64x4xf32>, vector<64x4xf32>, vector<64x4xf32> -> vector<64x36xf32>
    %cst = arith.constant dense<0.000000e+00> : vector<8x64xf32>
    %48 = tpu.matmul %0, %27, %cst {dimension_numbers = #tpu.dot_dimension_numbers<[1], [1], [0], [0], [0, 0, 1, 0], [], []>} : vector<8x36xf32>, vector<64x36xf32>, vector<8x64xf32> -> vector<8x64xf32>
    %49 = vector.broadcast %1 : vector<8x1xf32> to vector<8x64xf32>
    %50 = arith.addf %48, %49 : vector<8x64xf32>
    %cst_16 = arith.constant dense<0.000000e+00> : vector<8x64xf32>
    %51 = tpu.matmul %0, %47, %cst_16 {dimension_numbers = #tpu.dot_dimension_numbers<[1], [1], [0], [0], [0, 0, 1, 0], [], []>} : vector<8x36xf32>, vector<64x36xf32>, vector<8x64xf32> -> vector<8x64xf32>
    %52 = vector.broadcast %1 : vector<8x1xf32> to vector<8x64xf32>
    %53 = arith.addf %51, %52 : vector<8x64xf32>
    %c0_17 = arith.constant 0 : index
    %c0_18 = arith.constant 0 : index
    %c0_19 = arith.constant 0 : index
    %c0_20 = arith.constant 0 : index
    %c0_21 = arith.constant 0 : index
    %54 = vector.load %arg2[%c0_17, %c0_18, %c0_19, %c0_20, %c0_21] : memref<1x4x9x10x4xf32, #tpu.memory_space<vmem>>, vector<1x4x9x10x4xf32>
    %55 = vector.shape_cast %54 : vector<1x4x9x10x4xf32> to vector<4x9x10x4xf32>
    %56 = vector.extract_strided_slice %55 {offsets = [0, 0, 0, 0], sizes = [2, 9, 10, 4], strides = [1, 1, 1, 1]} : vector<4x9x10x4xf32> to vector<2x9x10x4xf32>
    %57 = vector.extract_strided_slice %56 {offsets = [0, 0, 0, 0], sizes = [1, 8, 8, 4], strides = [1, 1, 1, 1]} : vector<2x9x10x4xf32> to vector<1x8x8x4xf32>
    %58 = vector.shape_cast %57 : vector<1x8x8x4xf32> to vector<64x4xf32>
    %59 = vector.extract_strided_slice %56 {offsets = [0, 0, 1, 0], sizes = [1, 8, 8, 4], strides = [1, 1, 1, 1]} : vector<2x9x10x4xf32> to vector<1x8x8x4xf32>
    %60 = vector.shape_cast %59 : vector<1x8x8x4xf32> to vector<64x4xf32>
    %61 = vector.extract_strided_slice %56 {offsets = [0, 0, 2, 0], sizes = [1, 8, 8, 4], strides = [1, 1, 1, 1]} : vector<2x9x10x4xf32> to vector<1x8x8x4xf32>
    %62 = vector.shape_cast %61 : vector<1x8x8x4xf32> to vector<64x4xf32>
    %63 = vector.extract_strided_slice %56 {offsets = [0, 1, 0, 0], sizes = [1, 8, 8, 4], strides = [1, 1, 1, 1]} : vector<2x9x10x4xf32> to vector<1x8x8x4xf32>
    %64 = vector.shape_cast %63 : vector<1x8x8x4xf32> to vector<64x4xf32>
    %65 = vector.extract_strided_slice %56 {offsets = [0, 1, 1, 0], sizes = [1, 8, 8, 4], strides = [1, 1, 1, 1]} : vector<2x9x10x4xf32> to vector<1x8x8x4xf32>
    %66 = vector.shape_cast %65 : vector<1x8x8x4xf32> to vector<64x4xf32>
    %67 = vector.extract_strided_slice %56 {offsets = [0, 1, 2, 0], sizes = [1, 8, 8, 4], strides = [1, 1, 1, 1]} : vector<2x9x10x4xf32> to vector<1x8x8x4xf32>
    %68 = vector.shape_cast %67 : vector<1x8x8x4xf32> to vector<64x4xf32>
    %69 = vector.extract_strided_slice %56 {offsets = [1, 0, 0, 0], sizes = [1, 8, 8, 4], strides = [1, 1, 1, 1]} : vector<2x9x10x4xf32> to vector<1x8x8x4xf32>
    %70 = vector.shape_cast %69 : vector<1x8x8x4xf32> to vector<64x4xf32>
    %71 = vector.extract_strided_slice %56 {offsets = [1, 0, 1, 0], sizes = [1, 8, 8, 4], strides = [1, 1, 1, 1]} : vector<2x9x10x4xf32> to vector<1x8x8x4xf32>
    %72 = vector.shape_cast %71 : vector<1x8x8x4xf32> to vector<64x4xf32>
    %73 = vector.extract_strided_slice %56 {offsets = [1, 0, 2, 0], sizes = [1, 8, 8, 4], strides = [1, 1, 1, 1]} : vector<2x9x10x4xf32> to vector<1x8x8x4xf32>
    %74 = vector.shape_cast %73 : vector<1x8x8x4xf32> to vector<64x4xf32>
    %75 = vector.extract_strided_slice %56 {offsets = [1, 1, 0, 0], sizes = [1, 8, 8, 4], strides = [1, 1, 1, 1]} : vector<2x9x10x4xf32> to vector<1x8x8x4xf32>
    %76 = vector.shape_cast %75 : vector<1x8x8x4xf32> to vector<64x4xf32>
    %77 = vector.extract_strided_slice %56 {offsets = [1, 1, 1, 0], sizes = [1, 8, 8, 4], strides = [1, 1, 1, 1]} : vector<2x9x10x4xf32> to vector<1x8x8x4xf32>
    %78 = vector.shape_cast %77 : vector<1x8x8x4xf32> to vector<64x4xf32>
    %79 = vector.extract_strided_slice %56 {offsets = [1, 1, 2, 0], sizes = [1, 8, 8, 4], strides = [1, 1, 1, 1]} : vector<2x9x10x4xf32> to vector<1x8x8x4xf32>
    %80 = vector.shape_cast %79 : vector<1x8x8x4xf32> to vector<64x4xf32>
    %81 = tpu.concatenate %58, %60, %62, %64, %66, %68, %70, %72, %74, %76, %78, %80 in 1 : vector<64x4xf32>, vector<64x4xf32>, vector<64x4xf32>, vector<64x4xf32>, vector<64x4xf32>, vector<64x4xf32>, vector<64x4xf32>, vector<64x4xf32>, vector<64x4xf32>, vector<64x4xf32>, vector<64x4xf32>, vector<64x4xf32> -> vector<64x48xf32>
    %cst_22 = arith.constant dense<0.000000e+00> : vector<64x8xf32>
    %82 = tpu.matmul %81, %2, %cst_22 {dimension_numbers = #tpu.dot_dimension_numbers<[1], [0], [0], [1], [0, 0, 1, 1], [], []>} : vector<64x48xf32>, vector<48x8xf32>, vector<64x8xf32> -> vector<64x8xf32>
    %83 = vector.broadcast %3 : vector<1x8xf32> to vector<64x8xf32>
    %84 = arith.addf %82, %83 : vector<64x8xf32>
    %85 = vector.extract_strided_slice %55 {offsets = [1, 0, 0, 0], sizes = [3, 9, 10, 4], strides = [1, 1, 1, 1]} : vector<4x9x10x4xf32> to vector<3x9x10x4xf32>
    %86 = vector.extract_strided_slice %85 {offsets = [0, 0, 0, 0], sizes = [2, 8, 8, 4], strides = [1, 1, 1, 1]} : vector<3x9x10x4xf32> to vector<2x8x8x4xf32>
    %87 = vector.shape_cast %86 : vector<2x8x8x4xf32> to vector<128x4xf32>
    %88 = vector.extract_strided_slice %85 {offsets = [0, 0, 1, 0], sizes = [2, 8, 8, 4], strides = [1, 1, 1, 1]} : vector<3x9x10x4xf32> to vector<2x8x8x4xf32>
    %89 = vector.shape_cast %88 : vector<2x8x8x4xf32> to vector<128x4xf32>
    %90 = vector.extract_strided_slice %85 {offsets = [0, 0, 2, 0], sizes = [2, 8, 8, 4], strides = [1, 1, 1, 1]} : vector<3x9x10x4xf32> to vector<2x8x8x4xf32>
    %91 = vector.shape_cast %90 : vector<2x8x8x4xf32> to vector<128x4xf32>
    %92 = vector.extract_strided_slice %85 {offsets = [0, 1, 0, 0], sizes = [2, 8, 8, 4], strides = [1, 1, 1, 1]} : vector<3x9x10x4xf32> to vector<2x8x8x4xf32>
    %93 = vector.shape_cast %92 : vector<2x8x8x4xf32> to vector<128x4xf32>
    %94 = vector.extract_strided_slice %85 {offsets = [0, 1, 1, 0], sizes = [2, 8, 8, 4], strides = [1, 1, 1, 1]} : vector<3x9x10x4xf32> to vector<2x8x8x4xf32>
    %95 = vector.shape_cast %94 : vector<2x8x8x4xf32> to vector<128x4xf32>
    %96 = vector.extract_strided_slice %85 {offsets = [0, 1, 2, 0], sizes = [2, 8, 8, 4], strides = [1, 1, 1, 1]} : vector<3x9x10x4xf32> to vector<2x8x8x4xf32>
    %97 = vector.shape_cast %96 : vector<2x8x8x4xf32> to vector<128x4xf32>
    %98 = vector.extract_strided_slice %85 {offsets = [1, 0, 0, 0], sizes = [2, 8, 8, 4], strides = [1, 1, 1, 1]} : vector<3x9x10x4xf32> to vector<2x8x8x4xf32>
    %99 = vector.shape_cast %98 : vector<2x8x8x4xf32> to vector<128x4xf32>
    %100 = vector.extract_strided_slice %85 {offsets = [1, 0, 1, 0], sizes = [2, 8, 8, 4], strides = [1, 1, 1, 1]} : vector<3x9x10x4xf32> to vector<2x8x8x4xf32>
    %101 = vector.shape_cast %100 : vector<2x8x8x4xf32> to vector<128x4xf32>
    %102 = vector.extract_strided_slice %85 {offsets = [1, 0, 2, 0], sizes = [2, 8, 8, 4], strides = [1, 1, 1, 1]} : vector<3x9x10x4xf32> to vector<2x8x8x4xf32>
    %103 = vector.shape_cast %102 : vector<2x8x8x4xf32> to vector<128x4xf32>
    %104 = vector.extract_strided_slice %85 {offsets = [1, 1, 0, 0], sizes = [2, 8, 8, 4], strides = [1, 1, 1, 1]} : vector<3x9x10x4xf32> to vector<2x8x8x4xf32>
    %105 = vector.shape_cast %104 : vector<2x8x8x4xf32> to vector<128x4xf32>
    %106 = vector.extract_strided_slice %85 {offsets = [1, 1, 1, 0], sizes = [2, 8, 8, 4], strides = [1, 1, 1, 1]} : vector<3x9x10x4xf32> to vector<2x8x8x4xf32>
    %107 = vector.shape_cast %106 : vector<2x8x8x4xf32> to vector<128x4xf32>
    %108 = vector.extract_strided_slice %85 {offsets = [1, 1, 2, 0], sizes = [2, 8, 8, 4], strides = [1, 1, 1, 1]} : vector<3x9x10x4xf32> to vector<2x8x8x4xf32>
    %109 = vector.shape_cast %108 : vector<2x8x8x4xf32> to vector<128x4xf32>
    %110 = tpu.concatenate %87, %89, %91, %93, %95, %97, %99, %101, %103, %105, %107, %109 in 1 : vector<128x4xf32>, vector<128x4xf32>, vector<128x4xf32>, vector<128x4xf32>, vector<128x4xf32>, vector<128x4xf32>, vector<128x4xf32>, vector<128x4xf32>, vector<128x4xf32>, vector<128x4xf32>, vector<128x4xf32>, vector<128x4xf32> -> vector<128x48xf32>
    %cst_23 = arith.constant dense<0.000000e+00> : vector<128x8xf32>
    %111 = tpu.matmul %110, %2, %cst_23 {dimension_numbers = #tpu.dot_dimension_numbers<[1], [0], [0], [1], [0, 0, 1, 1], [], []>} : vector<128x48xf32>, vector<48x8xf32>, vector<128x8xf32> -> vector<128x8xf32>
    %112 = vector.broadcast %3 : vector<1x8xf32> to vector<128x8xf32>
    %113 = arith.addf %111, %112 : vector<128x8xf32>
    %cst_24 = arith.constant 0.000000e+00 : f32
    %114 = vector.broadcast %cst_24 : f32 to vector<3x9x10x8xf32>
    %c0_25 = arith.constant 0 : index
    %c0_26 = arith.constant 0 : index
    %c0_27 = arith.constant 0 : index
    %c0_28 = arith.constant 0 : index
    %115 = vector.load %arg10[%c0_25, %c0_26, %c0_27, %c0_28] : memref<3x9x10x8xf32, #tpu.memory_space<vmem>>, vector<3x9x10x8xf32>
    tpu.vector_store %arg10[%c0_25, %c0_26, %c0_27, %c0_28], %114 {strides = array<i32>} : memref<3x9x10x8xf32, #tpu.memory_space<vmem>>, vector<3x9x10x8xf32>,
    %116 = vector.shape_cast %84 : vector<64x8xf32> to vector<1x8x8x8xf32>
    %c0_29 = arith.constant 0 : index
    %c1 = arith.constant 1 : index
    %c1_30 = arith.constant 1 : index
    %c0_31 = arith.constant 0 : index
    %117 = vector.load %arg10[%c0_29, %c1, %c1_30, %c0_31] : memref<3x9x10x8xf32, #tpu.memory_space<vmem>>, vector<1x8x8x8xf32>
    tpu.vector_store %arg10[%c0_29, %c1, %c1_30, %c0_31], %116 {strides = array<i32>} : memref<3x9x10x8xf32, #tpu.memory_space<vmem>>, vector<1x8x8x8xf32>,
    %118 = vector.shape_cast %113 : vector<128x8xf32> to vector<2x8x8x8xf32>
    %c1_32 = arith.constant 1 : index
    %c1_33 = arith.constant 1 : index
    %c1_34 = arith.constant 1 : index
    %c0_35 = arith.constant 0 : index
    %119 = vector.load %arg10[%c1_32, %c1_33, %c1_34, %c0_35] : memref<3x9x10x8xf32, #tpu.memory_space<vmem>>, vector<2x8x8x8xf32>
    tpu.vector_store %arg10[%c1_32, %c1_33, %c1_34, %c0_35], %118 {strides = array<i32>} : memref<3x9x10x8xf32, #tpu.memory_space<vmem>>, vector<2x8x8x8xf32>,
    %c0_36 = arith.constant 0 : index
    %c0_37 = arith.constant 0 : index
    %c0_38 = arith.constant 0 : index
    %c0_39 = arith.constant 0 : index
    %120 = vector.load %arg10[%c0_36, %c0_37, %c0_38, %c0_39] : memref<3x9x10x8xf32, #tpu.memory_space<vmem>>, vector<3x9x10x8xf32>
    %121 = vector.extract_strided_slice %120 {offsets = [0, 0, 0, 0], sizes = [2, 8, 8, 8], strides = [1, 1, 1, 1]} : vector<3x9x10x8xf32> to vector<2x8x8x8xf32>
    %122 = vector.shape_cast %121 : vector<2x8x8x8xf32> to vector<128x8xf32>
    %123 = vector.extract_strided_slice %120 {offsets = [0, 0, 1, 0], sizes = [2, 8, 8, 8], strides = [1, 1, 1, 1]} : vector<3x9x10x8xf32> to vector<2x8x8x8xf32>
    %124 = vector.shape_cast %123 : vector<2x8x8x8xf32> to vector<128x8xf32>
    %125 = vector.extract_strided_slice %120 {offsets = [0, 0, 2, 0], sizes = [2, 8, 8, 8], strides = [1, 1, 1, 1]} : vector<3x9x10x8xf32> to vector<2x8x8x8xf32>
    %126 = vector.shape_cast %125 : vector<2x8x8x8xf32> to vector<128x8xf32>
    %127 = vector.extract_strided_slice %120 {offsets = [0, 1, 0, 0], sizes = [2, 8, 8, 8], strides = [1, 1, 1, 1]} : vector<3x9x10x8xf32> to vector<2x8x8x8xf32>
    %128 = vector.shape_cast %127 : vector<2x8x8x8xf32> to vector<128x8xf32>
    %129 = vector.extract_strided_slice %120 {offsets = [0, 1, 1, 0], sizes = [2, 8, 8, 8], strides = [1, 1, 1, 1]} : vector<3x9x10x8xf32> to vector<2x8x8x8xf32>
    %130 = vector.shape_cast %129 : vector<2x8x8x8xf32> to vector<128x8xf32>
    %131 = vector.extract_strided_slice %120 {offsets = [0, 1, 2, 0], sizes = [2, 8, 8, 8], strides = [1, 1, 1, 1]} : vector<3x9x10x8xf32> to vector<2x8x8x8xf32>
    %132 = vector.shape_cast %131 : vector<2x8x8x8xf32> to vector<128x8xf32>
    %133 = vector.extract_strided_slice %120 {offsets = [1, 0, 0, 0], sizes = [2, 8, 8, 8], strides = [1, 1, 1, 1]} : vector<3x9x10x8xf32> to vector<2x8x8x8xf32>
    %134 = vector.shape_cast %133 : vector<2x8x8x8xf32> to vector<128x8xf32>
    %135 = vector.extract_strided_slice %120 {offsets = [1, 0, 1, 0], sizes = [2, 8, 8, 8], strides = [1, 1, 1, 1]} : vector<3x9x10x8xf32> to vector<2x8x8x8xf32>
    %136 = vector.shape_cast %135 : vector<2x8x8x8xf32> to vector<128x8xf32>
    %137 = vector.extract_strided_slice %120 {offsets = [1, 0, 2, 0], sizes = [2, 8, 8, 8], strides = [1, 1, 1, 1]} : vector<3x9x10x8xf32> to vector<2x8x8x8xf32>
    %138 = vector.shape_cast %137 : vector<2x8x8x8xf32> to vector<128x8xf32>
    %139 = vector.extract_strided_slice %120 {offsets = [1, 1, 0, 0], sizes = [2, 8, 8, 8], strides = [1, 1, 1, 1]} : vector<3x9x10x8xf32> to vector<2x8x8x8xf32>
    %140 = vector.shape_cast %139 : vector<2x8x8x8xf32> to vector<128x8xf32>
    %141 = vector.extract_strided_slice %120 {offsets = [1, 1, 1, 0], sizes = [2, 8, 8, 8], strides = [1, 1, 1, 1]} : vector<3x9x10x8xf32> to vector<2x8x8x8xf32>
    %142 = vector.shape_cast %141 : vector<2x8x8x8xf32> to vector<128x8xf32>
    %143 = vector.extract_strided_slice %120 {offsets = [1, 1, 2, 0], sizes = [2, 8, 8, 8], strides = [1, 1, 1, 1]} : vector<3x9x10x8xf32> to vector<2x8x8x8xf32>
    %144 = vector.shape_cast %143 : vector<2x8x8x8xf32> to vector<128x8xf32>
    %145 = tpu.concatenate %122, %124, %126, %128, %130, %132, %134, %136, %138, %140, %142, %144 in 1 : vector<128x8xf32>, vector<128x8xf32>, vector<128x8xf32>, vector<128x8xf32>, vector<128x8xf32>, vector<128x8xf32>, vector<128x8xf32>, vector<128x8xf32>, vector<128x8xf32>, vector<128x8xf32>, vector<128x8xf32>, vector<128x8xf32> -> vector<128x96xf32>
    %cst_40 = arith.constant dense<0.000000e+00> : vector<8x128xf32>
    %146 = tpu.matmul %4, %145, %cst_40 {dimension_numbers = #tpu.dot_dimension_numbers<[1], [1], [0], [0], [0, 0, 1, 0], [], []>} : vector<8x96xf32>, vector<128x96xf32>, vector<8x128xf32> -> vector<8x128xf32>
    %147 = vector.broadcast %5 : vector<8x1xf32> to vector<8x128xf32>
    %148 = arith.addf %146, %147 : vector<8x128xf32>
    %149 = tpu.concatenate %50, %148, %53 in 1 : vector<8x64xf32>, vector<8x128xf32>, vector<8x64xf32> -> vector<8x256xf32>
    %c0_41 = arith.constant 0 : index
    %c0_42 = arith.constant 0 : index
    %c0_43 = arith.constant 0 : index
    %150 = vector.load %arg9[%c0_41, %c0_42, %c0_43] : memref<1x8x256xf32, #tpu.memory_space<vmem>>, vector<1x8x256xf32>
    %151 = vector.shape_cast %150 : vector<1x8x256xf32> to vector<8x256xf32>
    %152 = vector.shape_cast %149 : vector<8x256xf32> to vector<1x8x256xf32>
    tpu.vector_store %arg9[%c0_41, %c0_42, %c0_43], %152 {strides = array<i32>} : memref<1x8x256xf32, #tpu.memory_space<vmem>>, vector<1x8x256xf32>,
    return
  }
  func.func @transform_0(%arg0: i32) -> (i32, i32, i32, i32, i32) {
    %c0_i32 = arith.constant 0 : i32
    %c0_i32_0 = arith.constant 0 : i32
    %c0_i32_1 = arith.constant 0 : i32
    %c0_i32_2 = arith.constant 0 : i32
    %c0_i32_3 = arith.constant 0 : i32
    return %arg0, %c0_i32, %c0_i32_0, %c0_i32_1, %c0_i32_2 : i32, i32, i32, i32, i32
  }
  func.func @transform_1(%arg0: i32) -> (i32, i32, i32, i32, i32) {
    %c0_i32 = arith.constant 0 : i32
    %c0_i32_0 = arith.constant 0 : i32
    %c0_i32_1 = arith.constant 0 : i32
    %c0_i32_2 = arith.constant 0 : i32
    %c0_i32_3 = arith.constant 0 : i32
    return %arg0, %c0_i32, %c0_i32_0, %c0_i32_1, %c0_i32_2 : i32, i32, i32, i32, i32
  }
  func.func @transform_2(%arg0: i32) -> (i32, i32) {
    %c0_i32 = arith.constant 0 : i32
    %c0_i32_0 = arith.constant 0 : i32
    %c0_i32_1 = arith.constant 0 : i32
    return %c0_i32, %c0_i32_0 : i32, i32
  }
  func.func @transform_3(%arg0: i32) -> (i32, i32) {
    %c0_i32 = arith.constant 0 : i32
    %c0_i32_0 = arith.constant 0 : i32
    %c0_i32_1 = arith.constant 0 : i32
    return %c0_i32, %c0_i32_0 : i32, i32
  }
  func.func @transform_4(%arg0: i32) -> (i32, i32) {
    %c0_i32 = arith.constant 0 : i32
    %c0_i32_0 = arith.constant 0 : i32
    %c0_i32_1 = arith.constant 0 : i32
    return %c0_i32, %c0_i32_0 : i32, i32
  }
  func.func @transform_5(%arg0: i32) -> (i32, i32) {
    %c0_i32 = arith.constant 0 : i32
    %c0_i32_0 = arith.constant 0 : i32
    %c0_i32_1 = arith.constant 0 : i32
    return %c0_i32, %c0_i32_0 : i32, i32
  }
  func.func @transform_6(%arg0: i32) -> (i32, i32) {
    %c0_i32 = arith.constant 0 : i32
    %c0_i32_0 = arith.constant 0 : i32
    %c0_i32_1 = arith.constant 0 : i32
    return %c0_i32, %c0_i32_0 : i32, i32
  }
  func.func @transform_7(%arg0: i32) -> (i32, i32) {
    %c0_i32 = arith.constant 0 : i32
    %c0_i32_0 = arith.constant 0 : i32
    %c0_i32_1 = arith.constant 0 : i32
    return %c0_i32, %c0_i32_0 : i32, i32
  }
  func.func @transform_8(%arg0: i32) -> (i32, i32, i32) {
    %c0_i32 = arith.constant 0 : i32
    %c0_i32_0 = arith.constant 0 : i32
    %c0_i32_1 = arith.constant 0 : i32
    return %arg0, %c0_i32, %c0_i32_0 : i32, i32, i32
  }
}

</mosaic_0001>

<bundles_post_ra>
// kernel: tpu_custom_call.1
= control target key start
LH: loop header
LB: loop body
LE: loop exit
PB: predicated region body
PF: predicated region fallthrough
CT: control target
= control target key end

     0   :  { %13 = vsyncpa [#allocation4], 0  ;;  %s9067_s0 = inlined_call_operand.vmem [shape: f32[2,2,10,10,4], index: 0, kind: input, shape index: {}]   ;;  %s9068_s1 = inlined_call_operand.vmem [shape: f32[2,4,9,10,4], index: 1, kind: input, shape index: {}]   ;;  %s9069_s2 = inlined_call_operand.vmem [shape: f32[8,36], index: 2, kind: input, shape index: {}]   ;;  %s9070_s3 = inlined_call_operand.vmem [shape: f32[8,1], index: 3, kind: input, shape index: {}]   ;;  %s9071_s4 = inlined_call_operand.vmem [shape: f32[48,8], index: 4, kind: input, shape index: {}]   ;;  %s9072_s5 = inlined_call_operand.vmem [shape: f32[1,8], index: 5, kind: input, shape index: {}]   ;;  %s9073_s6 = inlined_call_operand.vmem [shape: f32[8,96], index: 6, kind: input, shape index: {}]   ;;  %s9074_s7 = inlined_call_operand.vmem [shape: f32[8,1], index: 7, kind: input, shape index: {}]   ;;  %s9075_s8 = inlined_call_operand.hbm [shape: f32[2,8,256], index: 8, kind: output, shape index: {}]  }
   0x1   :  { %15 = vsyncpa [#allocation4 + $0x1], 0  ;;  %s5649_s27 = smov 0   ;;  %s5651_s28 = smov 0  }
   0x2   :  { %s5653_s29 = smov 0   ;;  %s5655_s30 = smov 0  }
   0x3 LB: > { %s5670_s9 = sadd.s32 4294967295, %s5580_s30   ;;  %s4286_s10 = sadd.s32 4294967294, %s5580_s30   ;;  %s5580_s30 = sphi %s5655_s30, %s9271_s30   ;;  %s5576_s29 = sphi %s5653_s29, %s9270_s29   ;;  %s5572_s28 = sphi %s5651_s28, %s9269_s28   ;;  %s5568_s27 = sphi %s5649_s27, %s9268_s27  }
   0x4   : > { %s5674_s11 = sadd.s32 1, %s5580_s30   ;;  %s206_s12 = sadd.s32 1, %s5576_s29 }
   0x5   : > { %s203_s13 = ssub.s32 %s5580_s30, %s5674_s11  ;;  %p216_p0 = scmp.ne.s32.totalorder %s5576_s29, %s5572_s28 }
   0x6   : > { %p204_p1 = scmp.eq.s32.totalorder %s203_s13, 0  ;;  %p217_p2 = scmp.eq.s32.totalorder %s5670_s9, 1 }
   0x7   : > { %p222_p3 = scmp.ne.s32.totalorder %s5572_s28, %s5568_s27  ;;  %p223_p4 = scmp.eq.s32.totalorder %s4286_s10, 1 }
   0x8   : > { %s5685_s14 = scalar_select %p204_p1, %s5576_s29, %s206_s12  }
   0x9   : > { %p5687_p5 = por %p217_p2, %p216_p0  ;;  %p5691_p6 = por %p223_p4, %p222_p3 }
   0xa   : > { %p4289_p7 = scmp.ge.s32.totalorder %s5580_s30, 1  ;;  %p275_p8 = scmp.lt.s32.totalorder %s5580_s30, 3 }
   0xc   : > { %p276_p9 = pnand %p4289_p7, %p275_p8 }
   0xe   : > { %279 = sbr.rel (%p276_p9) target bundleno = 1527 (0x5f7), region = 52 }
  0x15   : > { %p314_p10 = scmp.lt.s32.totalorder %s5670_s9, 1  ;;  %vm391_vm0 = vcmask 1046528   ;;  %vm416_vm1 = vcmask 1045504   ;;  %s5582_s22 = smov 4   ;;  %vm658_vm2 = vcmask 64512   ;;  %vm5592_vm3 = vmmov 0  }
  0x16   : > { %s5583_s23 = smov 8   ;;  %s5584_s24 = smov 12   ;;  %vm649_vm4 = vcmask 31744   ;;  %vm667_vm5 = vcmask 97280   ;;  %vm676_vm6 = vcmask 130048   ;;  %vm685_vm7 = vcmask 162816  }
  0x17   : > { %s5699_s17 = scalar_select %p314_p10, %s5670_s9, 1  ;;  %vm694_vm8 = vcmask 195584   ;;  %vm703_vm9 = vcmask 228352   ;;  %vm712_vm10 = vcmask 261120   ;;  %vm1062_vm11 = vcmask 293888  }
  0x18   : > { %s5585_s25 = smov 16   ;;  %s9076_s26 = smov 20   ;;  %vm6454_vm12 = vmpackc.low %vm1062_vm11, %vm1062_vm11  ;;  %vm1806_vm13 = vcmask 326656   ;;  %vm1815_vm14 = vcmask 359424   ;;  %vm1830_vm15 = vcmask 392192  }
  0x19   : > { %s4651_s18 = smul.u32 320, %s5699_s17  ;;  %s5588_s10 = smov 24  }
  0x1a   : > { %s5589_s12 = smov 28   ;;  %s9095_s13 = smov 32  }
  0x1b   : > { %s5705_s21 = scalar_lea.vmem %s9067_s0, %s4651_s18  ;;  %s4652_s18 = smul.u32 576, %s5699_s17 }
  0x1c   : > { %v5708_v0 = vld [vmem:[%s5705_s21 + $0x40] sm:$0xff]  ;;  %v5711_v1 = vld [vmem:[%s5705_s21 + $0x48] sm:$0x3]  ;;  %v5714_v2 = vld [vmem:[%s5705_s21 + $0x50] sm:$0xff]  ;;  %s9138_s19 = smov 20   ;;  %s9184_s20 = smov 36  }
  0x1d   : > { %v5717_v3 = vld [vmem:[%s5705_s21 + $0x58] sm:$0x3]  ;;  %v404_v4 = vrot.slane %v5708_v0, 1  ;;  %v405_v5 = vrot.slane %v5711_v1, 1  ;;  %v407_v6 = vrot.slane %v5714_v2, 1  ;;  %v430_v8 = vrot.slane %v5711_v1, 2 }
  0x1e   : > { %v408_v7 = vrot.slane %v5717_v3, 1  ;;  %v5725_v9 = vld [vmem:[%s5705_s21 + $0x10] sm:$0xff]  ;;  %v338_v10 = vld [vmem:[%s5705_s21 + $0x18] sm:$0x3]  ;;  %v5729_v11 = vld [vmem:[%s5705_s21 + $0x20] sm:$0xff]  ;;  %v433_v19 = vrot.slane %v5717_v3, 2 }
  0x1f   : > { %v5732_v12 = vsel %vm391_vm0, %v404_v4, %v405_v5  ;;  %v340_v13 = vld [vmem:[%s5705_s21 + $0x28] sm:$0x3]  ;;  %v395_v14 = vrot.slane %v5725_v9, 1  ;;  %v396_v15 = vrot.slane %v338_v10, 1  ;;  %v398_v16 = vrot.slane %v5729_v11, 1  ;;  %v5738_v17 = vld [vmem:[%s5705_s21] sm:$0xff] }
  0x20   : > { %v5741_v18 = vsel %vm391_vm0, %v407_v6, %v408_v7  ;;  %v399_v20 = vrot.slane %v340_v13, 1  ;;  %v336_v21 = vld [vmem:[%s5705_s21 + $0x8] sm:$0x3]  ;;  %v392_v22 = vrot.slane %v5738_v17, 1  ;;  %v5747_v23 = vld [vmem:[%s5705_s21 + $0x60] sm:$0xff]  ;;  %v421_v26 = vrot.slane %v338_v10, 2 }
  0x21   : > { %v5751_v24 = vpack.i.bf16 %v5741_v18, %v5732_v12  ;;  %v5754_v25 = vsel %vm391_vm0, %v395_v14, %v396_v15  ;;  %v393_v27 = vrot.slane %v336_v21, 1  ;;  %v348_v28 = vld [vmem:[%s5705_s21 + $0x68] sm:$0x3]  ;;  %v5758_v29 = vld [vmem:[%s5705_s21 + $0x70] sm:$0xff]  ;;  %v418_v31 = vrot.slane %v336_v21, 2  ;;  %v351_v15 = vld [vmem:[%s5705_s21 + $0x80] sm:$0xff] }
  0x22   : > { %v5761_v30 = vld [vmem:[%s5705_s21 + $0x30] sm:$0xff]  ;;  %v350_v32 = vld [vmem:[%s5705_s21 + $0x78] sm:$0x3]  ;;  %v410_v33 = vrot.slane %v5747_v23, 1  ;;  %v411_v34 = vrot.slane %v348_v28, 1  ;;  %v413_v35 = vrot.slane %v5758_v29, 1  ;;  %v5769_v36 = vsel %vm391_vm0, %v398_v16, %v399_v20 }
  0x23   : > { %4724 = vrot.lane.b32.xlu1 %v5751_v24, %s5582_s22  ;;  %v394_v37 = vsel %vm391_vm0, %v392_v22, %v393_v27  ;;  %v414_v38 = vrot.slane %v350_v32, 1  ;;  %v342_v39 = vld [vmem:[%s5705_s21 + $0x38] sm:$0x3]  ;;  %v401_v40 = vrot.slane %v5761_v30, 1  ;;  %v423_v44 = vrot.slane %v5729_v11, 2  ;;  %s5599_s17 = smov 64  }
  0x24   : > { %v4713_v41 = vpack.i.bf16 %v5754_v25, %v394_v37  ;;  %v5776_v42 = vsel %vm391_vm0, %v410_v33, %v411_v34  ;;  %v402_v43 = vrot.slane %v342_v39, 1  ;;  %v424_v46 = vrot.slane %v340_v13, 2  ;;  %v352_v16 = vld [vmem:[%s5705_s21 + $0x88] sm:$0x3] }
  0x25   : > { %v415_v45 = vsel %vm391_vm0, %v413_v35, %v414_v38  ;;  %v426_v47 = vrot.slane %v5761_v30, 2  ;;  %v427_v48 = vrot.slane %v342_v39, 2  ;;  %v417_v51 = vrot.slane %v5738_v17, 2  ;;  %v353_v38 = vld [vmem:[%s5705_s21 + $0x90] sm:$0xff] }
  0x26   : > { %4714 = vrot.lane.b32.xlu0 %v4713_v41, %s5582_s22  ;;  %v5783_v49 = vpack.i.bf16 %v415_v45, %v5776_v42  ;;  %v403_v50 = vsel %vm391_vm0, %v401_v40, %v402_v43  ;;  %v420_v52 = vrot.slane %v5725_v9, 2  ;;  %v425_v54 = vsel %vm416_vm1, %v423_v44, %v424_v46  ;;  %v354_v40 = vld [vmem:[%s5705_s21 + $0x98] sm:$0x3]  ;;  %v5867_v46 = vld [vmem:[%s5705_s21 + $0xc0] sm:$0xff] }
  0x27   : > { %v5789_v53 = vpack.i.bf16 %v403_v50, %v5769_v36  ;;  %v428_v55 = vsel %vm416_vm1, %v426_v47, %v427_v48  ;;  %v435_v56 = vrot.slane %v5747_v23, 2  ;;  %v419_v58 = vsel %vm416_vm1, %v417_v51, %v418_v31  ;;  %v5872_v48 = vld [vmem:[%s5705_s21 + $0xc8] sm:$0x3] }
  0x28   : > { %4729 = vrot.lane.b32.xlu1 %v5783_v49, %s5582_s22  ;;  %v5796_v57 = vpack.i.bf16 %v428_v55, %v425_v54  ;;  %v422_v59 = vsel %vm416_vm1, %v420_v52, %v421_v26  ;;  %v436_v60 = vrot.slane %v348_v28, 2  ;;  %v438_v61 = vrot.slane %v5758_v29, 2  ;;  %v5883_v52 = vld [vmem:[%s5705_s21 + $0xa0] sm:$0xff] }
  0x29   : > { %v439_v62 = vrot.slane %v350_v32, 2  ;;  %v429_v63 = vrot.slane %v5708_v0, 2  ;;  %v4733_v3 = vpack.i.bf16 %v422_v59, %v419_v58  ;;  %v432_v5 = vrot.slane %v5714_v2, 2 }
  0x2a   : > { %4719 = vrot.lane.b32.xlu0 %v5789_v53, %s5582_s22  ;;  %v437_v4 = vsel %vm416_vm1, %v435_v56, %v436_v60  ;;  %v4758_v1 = vpack.i.bf16 %v5708_v0, %v5761_v30  ;;  %v443_v20 = vrot.slane %v351_v15, 1  ;;  %v444_v21 = vrot.slane %v352_v16, 1  ;;  %v5896_v60 = vld [vmem:[%s5705_s21 + $0xb8] sm:$0x3] }
  0x2b   : > { %v440_v6 = vsel %vm416_vm1, %v438_v61, %v439_v62  ;;  %v431_v7 = vsel %vm416_vm1, %v429_v63, %v430_v8  ;;  %v434_v13 = vsel %vm416_vm1, %v432_v5, %v433_v19  ;;  %v4753_v8 = vpack.i.bf16 %v5729_v11, %v5725_v9  ;;  %v5901_v61 = vld [vmem:[%s5705_s21 + $0x100] sm:$0xff]  ;;  %v5904_v62 = vld [vmem:[%s5705_s21 + $0x108] sm:$0x3]  ;;  %v5907_v63 = vld [vmem:[%s5705_s21 + $0x110] sm:$0xff] }
  0x2c   : > { %4739 = vrot.lane.b32.xlu1 %v5796_v57, %s5583_s23  ;;  %v5812_v10 = vpack.i.bf16 %v440_v6, %v437_v4  ;;  %v5816_v14 = vpack.i.bf16 %v434_v13, %v431_v7  ;;  %v4768_v19 = vpack.i.bf16 %v351_v15, %v5758_v29  ;;  %v4763_v22 = vpack.i.bf16 %v5747_v23, %v5714_v2 }
  0x2d   : > { %v4778_v26 = vpack.i.bf16 %v5732_v12, %v403_v50  ;;  %v445_v27 = vsel %vm391_vm0, %v443_v20, %v444_v21  ;;  %v4773_v28 = vpack.i.bf16 %v5769_v36, %v5754_v25  ;;  %v446_v32 = vrot.slane %v351_v15, 2  ;;  %v5875_v50 = vld [vmem:[%s5705_s21 + $0xd0] sm:$0xff]  ;;  %v366_v20 = vld [vmem:[%s5705_s21 + $0xf8] sm:$0x3] }
  0x2e   : > { %4734 = vrot.lane.b32.xlu0 %v4733_v3, %s5583_s23  ;;  %v4788_v31 = vpack.i.bf16 %v445_v27, %v415_v45  ;;  %v447_v33 = vrot.slane %v352_v16, 2  ;;  %v4783_v34 = vpack.i.bf16 %v5776_v42, %v5741_v18  ;;  %v4798_v12 = vpack.i.bf16 %v431_v7, %v428_v55  ;;  %v364_v16 = vld [vmem:[%s5705_s21 + $0xe8] sm:$0x3] }
  0x2f   : > { %v4793_v35 = vpack.i.bf16 %v425_v54, %v422_v59  ;;  %v4803_v37 = vpack.i.bf16 %v437_v4, %v434_v13  ;;  %v4818_v18 = vpack.i.bf16 %v5714_v2, %v5708_v0  ;;  %v4813_v39 = vpack.i.bf16 %v5761_v30, %v5729_v11  ;;  %v5886_v54 = vld [vmem:[%s5705_s21 + $0xa8] sm:$0x3]  ;;  %v370_v13 = vld [vmem:[%s5705_s21 + $0x118] sm:$0x3] }
  0x30   : > { %4749 = vrot.lane.b32.xlu1 %v5812_v10, %s5583_s23  ;;  %v5845_v25 = vsel %vm416_vm1, %v446_v32, %v447_v33  ;;  %v5587_v41 = vmov 0   ;;  %v4828_v42 = vpack.i.bf16 %v353_v38, %v351_v15  ;;  %v451_v43 = vrot.slane %v353_v38, 1 }
  0x31   : > { %v4808_v36 = vpack.i.bf16 %v5845_v25, %v440_v6  ;;  %5033 = vset.pattern.permute.xlu0 %v5587_v41  ;;  %v452_v44 = vrot.slane %v354_v40, 1  ;;  %v4823_v0 = vpack.i.bf16 %v5758_v29, %v5747_v23  ;;  %v5878_v23 = vld [vmem:[%s5705_s21 + $0xd8] sm:$0x3]  ;;  %v454_v29 = vrot.slane %v353_v38, 2 }
  0x32   : > { %4744 = vrot.lane.b32.xlu0 %v5816_v14, %s5583_s23  ;;  %v455_v51 = vrot.slane %v354_v40, 2  ;;  %v743_v55 = vrot.slane %v5867_v46, 1  ;;  %v744_v56 = vrot.slane %v5872_v48, 1  ;;  %v746_v58 = vrot.slane %v5875_v50, 1 }
  0x33   : > { %v453_v45 = vsel %vm391_vm0, %v451_v43, %v452_v44  ;;  %v747_v59 = vrot.slane %v5878_v23, 1  ;;  %v9080_v3 = vmov 0.0|0.0   ;;  %v737_v4 = vrot.slane %v5883_v52, 1 }
  0x34   : > { %4759 = vrot.lane.b32.xlu1 %v4758_v1, %s5584_s24  ;;  %v4848_v47 = vpack.i.bf16 %v453_v45, %v445_v27  ;;  %4563 = vmatprep.subr.bf16.mxu0 %v9080_v3  ;;  %v738_v5 = vrot.slane %v5886_v54, 1  ;;  %v741_v7 = vrot.slane %v5896_v60, 1  ;;  %v5919_v1 = vsel %vm391_vm0, %v743_v55, %v744_v56 }
  0x35   : > { %4579 = vmatprep.subr.bf16.mxu1 %v9080_v3  ;;  %v5922_v15 = vsel %vm391_vm0, %v746_v58, %v747_v59  ;;  %v755_v21 = vrot.slane %v5901_v61, 1  ;;  %v759_v27 = vrot.slane %v370_v13, 1  ;;  %v750_v33 = vrot.slane %v364_v16, 1 }
  0x36   : > { %4754 = vrot.lane.b32.xlu0 %v4753_v8, %s5584_s24  ;;  %v5925_v8 = vld [vmem:[%s5705_s21 + $0xe0] sm:$0xff]  ;;  %v762_v40 = vrot.slane %v5886_v54, 2  ;;  %v774_v56 = vrot.slane %v364_v16, 2  ;;  %v777_v59 = vrot.slane %v366_v20, 2 }
  0x37   : > { %v749_v32 = vrot.slane %v5925_v8, 1  ;;  %v773_v55 = vrot.slane %v5925_v8, 2  ;;  %v6037_v16 = vld [vmem:[%s5705_s21 + $0x120] sm:$0xff] }
  0x38   : > { %4769 = vrot.lane.b32.xlu1 %v4768_v19, %s5584_s24  ;;  %v5932_v19 = vld [vmem:[%s5705_s21 + $0xf0] sm:$0xff] }
  0x39   : > { %v5969_v43 = vsel %vm391_vm0, %v749_v32, %v750_v33  ;;  %v776_v58 = vrot.slane %v5932_v19, 2 }
  0x3a   : > { %4764 = vrot.lane.b32.xlu0 %v4763_v22, %s5584_s24  ;;  %v756_v22 = vrot.slane %v5904_v62, 1  ;;  %v4938_v32 = vpack.i.bf16 %v5969_v43, %v5922_v15 }
  0x3c   : > { %4779 = vrot.lane.b32.xlu1 %v4778_v26, %s5585_s25  ;;  %v758_v26 = vrot.slane %v5907_v63, 1 }
  0x3e   : > { %4774 = vrot.lane.b32.xlu0 %v4773_v28, %s5585_s25  ;;  %v5942_v28 = vpack.i.bf16 %v5922_v15, %v5919_v1  ;;  %v5960_v38 = vsel %vm391_vm0, %v758_v26, %v759_v27  ;;  %v9078_v26 = vmov 0.0  }
  0x3f   : > { %4446 = vmatprep.mubr.msk.f32.mxu0 %vm5592_vm3, %v9078_v26  ;;  %3001 = vst.msk [vmem:[#allocation2] sm:$0xff] %vm658_vm2, %v9078_v26  ;;  %3004 = vst.msk [vmem:[#allocation2 + $0x10] sm:$0xff] %vm658_vm2, %v9078_v26  ;;  %4465 = vmatprep.mubr.msk.f32.mxu1 %vm5592_vm3, %v9078_v26 }
  0x40   : > { %4789 = vrot.lane.b32.xlu1 %v4788_v31, %s5585_s25  ;;  %3006 = vst.msk [vmem:[#allocation2 + $0x20] sm:$0xff] %vm658_vm2, %v9078_v26  ;;  %3008 = vst.msk [vmem:[#allocation2 + $0x30] sm:$0xff] %vm658_vm2, %v9078_v26 }
  0x41   : > { %3010 = vst.msk [vmem:[#allocation2 + $0x40] sm:$0xff] %vm658_vm2, %v9078_v26  ;;  %3012 = vst.msk [vmem:[#allocation2 + $0x50] sm:$0xff] %vm658_vm2, %v9078_v26 }
  0x42   : > { %4784 = vrot.lane.b32.xlu0 %v4783_v34, %s5585_s25  ;;  %v752_v34 = vrot.slane %v5932_v19, 1  ;;  %3014 = vst.msk [vmem:[#allocation2 + $0x60] sm:$0xff] %vm658_vm2, %v9078_v26  ;;  %3016 = vst.msk [vmem:[#allocation2 + $0x70] sm:$0xff] %vm658_vm2, %v9078_v26 }
  0x43   : > { %3018 = vst.msk [vmem:[#allocation2 + $0x80] sm:$0xff] %vm658_vm2, %v9078_v26  ;;  %3020 = vst.msk [vmem:[#allocation2 + $0x90] sm:$0xff] %vm658_vm2, %v9078_v26 }
  0x44   : > { %4799 = vrot.lane.b32.xlu1 %v4798_v12, %s9076_s26  ;;  %v753_v12 = vrot.slane %v366_v20, 1  ;;  %3022 = vst.msk [vmem:[#allocation2 + $0xa0] sm:$0xff] %vm658_vm2, %v9078_v26  ;;  %3024 = vst.msk [vmem:[#allocation2 + $0xb0] sm:$0xff] %vm658_vm2, %v9078_v26 }
  0x45   : > { %3026 = vst.msk [vmem:[#allocation2 + $0xc0] sm:$0xff] %vm658_vm2, %v9078_v26  ;;  %3028 = vst.msk [vmem:[#allocation2 + $0xd0] sm:$0xff] %vm658_vm2, %v9078_v26 }
  0x46   : > { %4794 = vrot.lane.b32.xlu0 %v4793_v35, %s9076_s26  ;;  %v770_v35 = vrot.slane %v5875_v50, 2  ;;  %v5972_v44 = vsel %vm391_vm0, %v752_v34, %v753_v12  ;;  %3030 = vst.msk [vmem:[#allocation2 + $0xe0] sm:$0xff] %vm658_vm2, %v9078_v26  ;;  %3032 = vst.msk [vmem:[#allocation2 + $0xf0] sm:$0xff] %vm658_vm2, %v9078_v26 }
  0x47   : > { %3034 = vst.msk [vmem:[#allocation2 + $0x100] sm:$0xff] %vm658_vm2, %v9078_v26  ;;  %3036 = vst.msk [vmem:[#allocation2 + $0x110] sm:$0xff] %vm658_vm2, %v9078_v26 }
  0x48   : > { %4809 = vrot.lane.b32.xlu1 %v4808_v36, %s9076_s26  ;;  %v771_v36 = vrot.slane %v5878_v23, 2  ;;  %v782_v23 = vrot.slane %v5907_v63, 2  ;;  %3038 = vst.msk [vmem:[#allocation2 + $0x120] sm:$0xff] %vm658_vm2, %v9078_v26  ;;  %3040 = vst.msk [vmem:[#allocation2 + $0x130] sm:$0xff] %vm658_vm2, %v9078_v26 }
  0x49   : > { %3042 = vst.msk [vmem:[#allocation2 + $0x140] sm:$0xff] %vm658_vm2, %v9078_v26  ;;  %3044 = vst.msk [vmem:[#allocation2 + $0x150] sm:$0xff] %vm658_vm2, %v9078_v26 }
  0x4a   : > { %4804 = vrot.lane.b32.xlu0 %v4803_v37, %s9076_s26  ;;  %v5984_v45 = vsel %vm416_vm1, %v770_v35, %v771_v36  ;;  %3046 = vst.msk [vmem:[#allocation2 + $0x160] sm:$0xff] %vm658_vm2, %v9078_v26  ;;  %3048 = vst.msk [vmem:[#allocation2 + $0x170] sm:$0xff] %vm658_vm2, %v9078_v26 }
  0x4b   : > { %3050 = vst.msk [vmem:[#allocation2 + $0x180] sm:$0xff] %vm658_vm2, %v9078_v26  ;;  %3052 = vst.msk [vmem:[#allocation2 + $0x190] sm:$0xff] %vm658_vm2, %v9078_v26 }
  0x4c   : > { %4819 = vrot.lane.b32.xlu1 %v4818_v18, %s5588_s10  ;;  %v5957_v18 = vsel %vm391_vm0, %v755_v21, %v756_v22  ;;  %v372_v21 = vld [vmem:[%s5705_s21 + $0x128] sm:$0x3]  ;;  %v4928_v22 = vpack.i.bf16 %v6037_v16, %v5907_v63  ;;  %3054 = vst.msk [vmem:[#allocation2 + $0x1a0] sm:$0xff] %vm658_vm2, %v9078_v26 }
  0x4d   : > { %v788_v27 = vrot.slane %v372_v21, 1  ;;  %v4943_v15 = vpack.i.bf16 %v5957_v18, %v5972_v44 }
  0x4e   : > { %4814 = vrot.lane.b32.xlu0 %v4813_v39, %s5588_s10  ;;  %v761_v39 = vrot.slane %v5883_v52, 2 }
  0x50   : > { %4829 = vrot.lane.b32.xlu1 %v4828_v42, %s5588_s10  ;;  %v765_v42 = vrot.slane %v5896_v60, 2  ;;  %v763_v52 = vsel %vm416_vm1, %v761_v39, %v762_v40  ;;  %v4973_v39 = vpack.i.bf16 %v5875_v50, %v5867_v46  ;;  %v374_v40 = vld [vmem:[%s5705_s21 + $0x138] sm:$0x3] }
  0x52   : > { %4824 = vrot.lane.b32.xlu0 %v4823_v0, %s5588_s10 }
  0x54   : > { %4839 = vrot.lane.b32.xlu1 %v5751_v24, %s5589_s12  ;;  %v5889_v24 = vld [vmem:[%s5705_s21 + $0xb0] sm:$0xff] }
  0x55   : > { %v740_v6 = vrot.slane %v5889_v24, 1  ;;  %v764_v41 = vrot.slane %v5889_v24, 2  ;;  %v4913_v20 = vpack.i.bf16 %v5867_v46, %v5889_v24  ;;  %v787_v24 = vrot.slane %v6037_v16, 1 }
  0x56   : > { %4834 = vrot.lane.b32.xlu0 %v5789_v53, %s5589_s12  ;;  %v456_v53 = vsel %vm416_vm1, %v454_v29, %v455_v51  ;;  %v783_v29 = vrot.slane %v370_v13, 2  ;;  %v5992_v51 = vpack.i.bf16 %v5972_v44, %v5969_v43  ;;  %v796_v43 = vrot.slane %v374_v40, 1 }
  0x57   : > { %v5946_v31 = vsel %vm391_vm0, %v740_v6, %v741_v7  ;;  %v5996_v54 = vsel %vm416_vm1, %v764_v41, %v765_v42  ;;  %v6019_v6 = vsel %vm416_vm1, %v776_v58, %v777_v59  ;;  %v789_v33 = vsel %vm391_vm0, %v787_v24, %v788_v27 }
  0x58   : > { %4849 = vrot.lane.b32.xlu1 %v4848_v47, %s5589_s12  ;;  %v779_v47 = vrot.slane %v5901_v61, 2  ;;  %v4933_v34 = vpack.i.bf16 %v5919_v1, %v5946_v31  ;;  %v4948_v12 = vpack.i.bf16 %v789_v33, %v5960_v38  ;;  %v4983_v44 = vpack.i.bf16 %v5907_v63, %v5901_v61 }
  0x5a   : > { %4844 = vrot.lane.b32.xlu0 %v5783_v49, %s5589_s12  ;;  %v4868_v49 = vpack.i.bf16 %v456_v53, %v5845_v25  ;;  %v767_v25 = vrot.slane %v5867_v46, 2 }
  0x5c   : > { %4859 = vrot.lane.b32.xlu1 %v5816_v14, %s9095_s13  ;;  %v739_v14 = vsel %vm391_vm0, %v737_v4, %v738_v5  ;;  %v4893_v4 = vpack.i.bf16 %v5996_v54, %v763_v52  ;;  %v6016_v5 = vsel %vm416_vm1, %v773_v55, %v774_v56 }
  0x5d   : > { %v4873_v37 = vpack.i.bf16 %v5946_v31, %v739_v14  ;;  %v6030_v13 = vpack.i.bf16 %v6019_v6, %v6016_v5  ;;  %v4923_v14 = vpack.i.bf16 %v5901_v61, %v5932_v19  ;;  %v4958_v35 = vpack.i.bf16 %v6016_v5, %v5984_v45 }
  0x5e   : > { %4854 = vrot.lane.b32.xlu0 %v5796_v57, %s9095_s13  ;;  %v768_v57 = vrot.slane %v5872_v48, 2  ;;  %v780_v48 = vrot.slane %v5904_v62, 2  ;;  %v6010_v62 = vsel %vm416_vm1, %v782_v23, %v783_v29 }
  0x60   : > { %4869 = vrot.lane.b32.xlu1 %v4868_v49, %s9095_s13  ;;  %v5981_v0 = vsel %vm416_vm1, %v767_v25, %v768_v57  ;;  %v6007_v53 = vsel %vm416_vm1, %v779_v47, %v780_v48  ;;  %v4918_v49 = vpack.i.bf16 %v5925_v8, %v5875_v50  ;;  %v790_v25 = vrot.slane %v6037_v16, 2 }
  0x61   : > { %v6004_v60 = vpack.i.bf16 %v5984_v45, %v5981_v0  ;;  %v6025_v7 = vpack.i.bf16 %v6010_v62, %v6007_v53  ;;  %v791_v57 = vrot.slane %v372_v21, 2  ;;  %v4953_v31 = vpack.i.bf16 %v5981_v0, %v5996_v54 }
  0x62   : > { %4864 = vrot.lane.b32.xlu0 %v5812_v10, %s9095_s13  ;;  %v5978_v10 = vpack.i.bf16 %v5960_v38, %v5957_v18  ;;  %v4978_v18 = vpack.i.bf16 %v5932_v19, %v5925_v8  ;;  %v373_v38 = vld [vmem:[%s5705_s21 + $0x130] sm:$0xff]  ;;  %v799_v0 = vrot.slane %v374_v40, 2 }
  0x63   : > { %v792_v1 = vsel %vm416_vm1, %v790_v25, %v791_v57  ;;  %v4988_v41 = vpack.i.bf16 %v373_v38, %v6037_v16  ;;  %v795_v42 = vrot.slane %v373_v38, 1  ;;  %v798_v50 = vrot.slane %v373_v38, 2 }
  0x64   : > { %4879 = vrot.lane.b32.xlu1 %v5942_v28, %s5582_s22  ;;  %v4968_v36 = vpack.i.bf16 %v792_v1, %v6010_v62 }
  0x65   : > { %v797_v8 = vsel %vm391_vm0, %v795_v42, %v796_v43  ;;  %v800_v63 = vsel %vm416_vm1, %v798_v50, %v799_v0 }
  0x66   : > { %4874 = vrot.lane.b32.xlu0 %v4873_v37, %s5582_s22  ;;  %v4963_v37 = vpack.i.bf16 %v6007_v53, %v6019_v6  ;;  %v5008_v46 = vpack.i.bf16 %v797_v8, %v789_v33  ;;  %v5028_v23 = vpack.i.bf16 %v800_v63, %v792_v1  ;;  %v325_v6 = vld [vmem:[%s9070_s3] sm:$0xff] }
  0x68   : > { %4889 = vrot.lane.b32.xlu1 %v5978_v10, %s5582_s22 }
  0x6a   : > { %4884 = vrot.lane.b32.xlu0 %v5992_v51, %s5582_s22 }
  0x6c   : > { %4899 = vrot.lane.b32.xlu1 %v6004_v60, %s5583_s23 }
  0x6e   : > { %4894 = vrot.lane.b32.xlu0 %v4893_v4, %s5583_s23 }
  0x70   : > { %4909 = vrot.lane.b32.xlu1 %v6025_v7, %s5583_s23 }
  0x72   : > { %4904 = vrot.lane.b32.xlu0 %v6030_v13, %s5583_s23 }
  0x74   : > { %4919 = vrot.lane.b32.xlu1 %v4918_v49, %s5584_s24 }
  0x76   : > { %4914 = vrot.lane.b32.xlu0 %v4913_v20, %s5584_s24 }
  0x78   : > { %4929 = vrot.lane.b32.xlu1 %v4928_v22, %s5584_s24 }
  0x7a   : > { %4924 = vrot.lane.b32.xlu0 %v4923_v14, %s5584_s24 }
  0x7c   : > { %4939 = vrot.lane.b32.xlu1 %v4938_v32, %s5585_s25 }
  0x7e   : > { %4934 = vrot.lane.b32.xlu0 %v4933_v34, %s5585_s25 }
  0x80   : > { %4949 = vrot.lane.b32.xlu1 %v4948_v12, %s5585_s25 }
  0x82   : > { %4944 = vrot.lane.b32.xlu0 %v4943_v15, %s5585_s25 }
  0x84   : > { %4959 = vrot.lane.b32.xlu1 %v4958_v35, %s9076_s26 }
  0x86   : > { %4954 = vrot.lane.b32.xlu0 %v4953_v31, %s9076_s26 }
  0x88   : > { %4969 = vrot.lane.b32.xlu1 %v4968_v36, %s9076_s26 }
  0x8a   : > { %4964 = vrot.lane.b32.xlu0 %v4963_v37, %s9076_s26  ;;  %s6160_s26 = scalar_lea.vmem %s9068_s1, %s4652_s18  ;;  %s5595_s18 = smov 40  }
  0x8b   : > { %v6171_v45 = vld [vmem:[%s6160_s26] sm:$0xff]  ;;  %v6174_v47 = vld [vmem:[%s6160_s26 + $0x8] sm:$0x3]  ;;  %v6187_v52 = vld [vmem:[%s6160_s26 + $0x10] sm:$0xff] }
  0x8c   : > { %4979 = vrot.lane.b32.xlu1 %v4978_v18, %s5588_s10  ;;  %v1342_v29 = vrot.slane %v6171_v45, 1  ;;  %v6190_v54 = vld [vmem:[%s6160_s26 + $0x18] sm:$0x3]  ;;  %v6196_v56 = vld [vmem:[%s6160_s26 + $0x20] sm:$0xff]  ;;  %v6199_v58 = vld [vmem:[%s6160_s26 + $0x28] sm:$0x3] }
  0x8d   : > { %v1346_v53 = vrot.slane %v6190_v54, 1  ;;  %v6209_v4 = vld [vmem:[%s6160_s26 + $0x30] sm:$0xff]  ;;  %v6212_v5 = vld [vmem:[%s6160_s26 + $0x38] sm:$0x3]  ;;  %v1349_v49 = vrot.slane %v6199_v58, 1  ;;  %v6249_v57 = vld [vmem:[%s6160_s26 + $0x60] sm:$0xff] }
  0x8e   : > { %4974 = vrot.lane.b32.xlu0 %v4973_v39, %s5588_s10  ;;  %v6226_v20 = vld [vmem:[%s6160_s26 + $0x48] sm:$0x3]  ;;  %v1351_v22 = vrot.slane %v6209_v4, 1  ;;  %v1352_v24 = vrot.slane %v6212_v5, 1  ;;  %v6236_v14 = vld [vmem:[%s6160_s26 + $0x50] sm:$0xff]  ;;  %v1360_v39 = vrot.slane %v6249_v57, 1 }
  0x8f   : > { %v1265_v32 = vld [vmem:[%s6160_s26 + $0x58] sm:$0x3]  ;;  %v1355_v12 = vrot.slane %v6226_v20, 1  ;;  %v1267_v15 = vld [vmem:[%s6160_s26 + $0x68] sm:$0x3]  ;;  %v1357_v1 = vrot.slane %v6236_v14, 1 }
  0x90   : > { %4989 = vrot.lane.b32.xlu1 %v4988_v41, %s5588_s10  ;;  %v6253_v35 = vsel %vm391_vm0, %v1351_v22, %v1352_v24  ;;  %v1358_v31 = vrot.slane %v1265_v32, 1  ;;  %v6261_v37 = vld [vmem:[%s6160_s26 + $0x70] sm:$0xff]  ;;  %v1269_v18 = vld [vmem:[%s6160_s26 + $0x78] sm:$0x3]  ;;  %v1361_v40 = vrot.slane %v1267_v15, 1  ;;  %v1366_v50 = vrot.slane %v6171_v45, 2 }
  0x91   : > { %v1363_v43 = vrot.slane %v6261_v37, 1  ;;  %v1367_v0 = vrot.slane %v6174_v47, 2  ;;  %v1379_v24 = vrot.slane %v6226_v20, 2  ;;  %v1384_v20 = vrot.slane %v6249_v57, 2 }
  0x92   : > { %4984 = vrot.lane.b32.xlu0 %v4983_v44, %s5588_s10  ;;  %v6273_v42 = vsel %vm391_vm0, %v1357_v1, %v1358_v31  ;;  %v1364_v44 = vrot.slane %v1269_v18, 1  ;;  %v1382_v1 = vrot.slane %v1265_v32, 2 }
  0x93   : > { %v1368_v45 = vsel %vm416_vm1, %v1366_v50, %v1367_v0  ;;  %v1388_v50 = vrot.slane %v1269_v18, 2 }
  0x94   : > { %4999 = vrot.lane.b32.xlu1 %v5992_v51, %s5589_s12  ;;  %v1343_v51 = vrot.slane %v6174_v47, 1  ;;  %v1372_v47 = vrot.slane %v6196_v56, 2 }
  0x95   : > { %v6153_v19 = vpop.permute.xlu1 %4724 }
  0x96   : > { %4994 = vrot.lane.b32.xlu0 %v5942_v28, %s5589_s12  ;;  %v1344_v59 = vsel %vm391_vm0, %v1342_v29, %v1343_v51  ;;  %v1369_v29 = vrot.slane %v6187_v52, 2  ;;  %v1370_v51 = vrot.slane %v6190_v54, 2  ;;  %v1375_v54 = vrot.slane %v6209_v4, 2 }
  0x98   : > { %v6162_v61 = vpop.permute.xlu0 %4714  ;;  %5009 = vrot.lane.b32.xlu1 %v5008_v46, %s5589_s12  ;;  %v6281_v46 = vsel %vm391_vm0, %v1360_v39, %v1361_v40  ;;  %v1385_v40 = vrot.slane %v1267_v15, 2 }
  0x9a   : > { %5004 = vrot.lane.b32.xlu0 %v5978_v10, %s5589_s12  ;;  %v6168_v28 = vpop.permute.xlu1 %4729 }
  0x9c   : > { %v6176_v48 = vpop.permute.xlu0 %4719  ;;  %5019 = vrot.lane.b32.xlu1 %v6030_v13, %s9095_s13  ;;  %v1348_v13 = vrot.slane %v6196_v56, 1 }
  0x9e   : > { %5014 = vrot.lane.b32.xlu0 %v6004_v60, %s9095_s13  ;;  %v6184_v10 = vpop.permute.xlu1 %4739  ;;  %v1345_v60 = vrot.slane %v6187_v52, 1  ;;  %v6240_v33 = vsel %vm391_vm0, %v1348_v13, %v1349_v49  ;;  %v1376_v13 = vrot.slane %v6212_v5, 2  ;;  %v1381_v5 = vrot.slane %v6236_v14, 2 }
  0xa0   : > { %v6192_v55 = vpop.permute.xlu0 %4734  ;;  %5029 = vrot.lane.b32.xlu1 %v5028_v23, %s9095_s13  ;;  %v6229_v21 = vsel %vm391_vm0, %v1345_v60, %v1346_v53  ;;  %v6290_v23 = vsel %vm391_vm0, %v1363_v43, %v1364_v44  ;;  %v1373_v60 = vrot.slane %v6199_v58, 2  ;;  %v6339_v32 = vsel %vm416_vm1, %v1381_v5, %v1382_v1 }
  0xa1   : > { %v1387_v44 = vrot.slane %v6261_v37, 2  ;;  %v4716_v5 = vunpack.i.l.bf16 %v6162_v61  ;;  %v4722_v1 = vunpack.i.h.bf16 %v6176_v48 }
  0xa2   : > { %5024 = vrot.lane.b32.xlu0 %v6025_v7, %s9095_s13  ;;  %v6206_v62 = vpop.permute.xlu1 %4749  ;;  %v6223_v7 = vld [vmem:[%s6160_s26 + $0x40] sm:$0xff]  ;;  %v6314_v22 = vsel %vm416_vm1, %v1372_v47, %v1373_v60 }
  0xa3   : > { %v1354_v34 = vrot.slane %v6223_v7, 1  ;;  %v1378_v58 = vrot.slane %v6223_v7, 2  ;;  %v6364_v47 = vld [vmem:[%s6160_s26 + $0x80] sm:$0xff] }
  0xa4   : > { %v6219_v16 = vpop.permute.xlu0 %4744  ;;  %1470 = vrot.lane.b32.xlu1 %v1344_v59, %s5582_s22 }
  0xa5   : > { %v6265_v38 = vsel %vm391_vm0, %v1354_v34, %v1355_v12  ;;  %v6323_v12 = vsel %vm416_vm1, %v1375_v54, %v1376_v13  ;;  %v6331_v39 = vsel %vm416_vm1, %v1378_v58, %v1379_v24  ;;  %v1392_v54 = vrot.slane %v6364_v47, 1 }
  0xa6   : > { %1059 = vperm.xlu0 %5033, %v325_v6   ;;  %v6233_v27 = vpop.permute.xlu1 %4759  ;;  %v6306_v6 = vsel %vm416_vm1, %v1369_v29, %v1370_v51  ;;  %v6347_v29 = vsel %vm416_vm1, %v1384_v20, %v1385_v40  ;;  %v6354_v51 = vsel %vm416_vm1, %v1387_v44, %v1388_v50  ;;  %v4727_v58 = vunpack.i.h.bf16 %v6153_v19 }
  0xa7   : > { %9133 = vst [vmem:[#allocation6_spill] sm:$0xff] %v6354_v51  ;;  %v4717_v24 = vunpack.i.h.bf16 %v6162_v61  ;;  %v4721_v40 = vunpack.i.l.bf16 %v6176_v48  ;;  %v4742_v50 = vunpack.i.h.bf16 %v6184_v10  ;;  %v4741_v61 = vunpack.i.l.bf16 %v6184_v10 }
  0xa8   : > { %v6244_v25 = vpop.permute.xlu0 %4754  ;;  %1472 = vrot.lane.b32.xlu1 %v6229_v21, %s5582_s22  ;;  %v6391_v48 = vsel %vm649_vm4, %v5714_v2, %v4727_v58  ;;  %v4737_v44 = vunpack.i.h.bf16 %v6192_v55  ;;  %v4736_v10 = vunpack.i.l.bf16 %v6192_v55  ;;  %v4761_v55 = vunpack.i.l.bf16 %v6233_v27 }
  0xa9   : > { %v651_v3 = vsel %vm649_vm4, %v5725_v9, %v4717_v24  ;;  %v652_v9 = vsel %vm649_vm4, %v5729_v11, %v4721_v40 }
  0xaa   : > { %1474 = vrot.lane.b32.xlu0 %v6240_v33, %s5582_s22  ;;  %v6258_v36 = vpop.permute.xlu1 %4769 }
  0xac   : > { %v6268_v41 = vpop.permute.xlu0 %4764  ;;  %1476 = vrot.lane.b32.xlu1 %v6253_v35, %s5582_s22 }
  0xae   : > { %1478 = vrot.lane.b32.xlu0 %v6265_v38, %s5582_s22  ;;  %v6278_v8 = vpop.permute.xlu1 %4779 }
  0xb0   : > { %v6285_v63 = vpop.permute.xlu0 %4774  ;;  %1480 = vrot.lane.b32.xlu1 %v6273_v42, %s5582_s22 }
  0xb1   : > { %v4777_v58 = vunpack.i.h.bf16 %v6285_v63 }
  0xb2   : > { %1482 = vrot.lane.b32.xlu0 %v6281_v46, %s5582_s22  ;;  %v6296_v59 = vpop.permute.xlu1 %4789 }
  0xb4   : > { %v6301_v53 = vpop.permute.xlu0 %4784  ;;  %1484 = vrot.lane.b32.xlu1 %v6290_v23, %s5582_s22 }
  0xb6   : > { %1494 = vrot.lane.b32.xlu0 %v1368_v45, %s5583_s23  ;;  %v6311_v49 = vpop.permute.xlu1 %4799  ;;  %v6357_v45 = vld [vmem:[%s6160_s26 + $0x88] sm:$0x3] }
  0xb7   : > { %v1393_v13 = vrot.slane %v6357_v45, 1 }
  0xb8   : > { %v6318_v34 = vpop.permute.xlu0 %4794  ;;  %1496 = vrot.lane.b32.xlu1 %v6306_v6, %s5583_s23 }
  0xba   : > { %1498 = vrot.lane.b32.xlu0 %v6314_v22, %s5583_s23  ;;  %v6328_v31 = vpop.permute.xlu1 %4809 }
  0xbc   : > { %v6334_v43 = vpop.permute.xlu0 %4804  ;;  %1500 = vrot.lane.b32.xlu1 %v6323_v12, %s5583_s23 }
  0xbe   : > { %1502 = vrot.lane.b32.xlu0 %v6331_v39, %s5583_s23  ;;  %v6344_v0 = vpop.permute.xlu1 %4819 }
  0xc0   : > { %v6349_v15 = vpop.permute.xlu0 %4814  ;;  %1504 = vrot.lane.b32.xlu1 %v6339_v32, %s5583_s23 }
  0xc1   : > { %v4817_v40 = vunpack.i.h.bf16 %v6349_v15 }
  0xc2   : > { %1506 = vrot.lane.b32.xlu0 %v6347_v29, %s5583_s23  ;;  %v6361_v18 = vpop.permute.xlu1 %4829 }
  0xc4   : > { %v6366_v60 = vpop.permute.xlu0 %4824  ;;  %1508 = vrot.lane.b32.xlu1 %v6354_v51, %s5583_s23  ;;  %v650_v51 = vsel %vm649_vm4, %v5738_v17, %v4716_v5  ;;  %v4776_v17 = vunpack.i.l.bf16 %v6285_v63  ;;  %v4796_v5 = vunpack.i.l.bf16 %v6318_v34  ;;  %v4816_v63 = vunpack.i.l.bf16 %v6349_v15 }
  0xc5   : > { %v659_v11 = vsel %vm658_vm2, %v650_v51, %v4736_v10  ;;  %v4782_v15 = vunpack.i.h.bf16 %v6278_v8  ;;  %v4781_v10 = vunpack.i.l.bf16 %v6278_v8 }
  0xc6   : > { %1518 = vrot.lane.b32.xlu0 %v6187_v52, %s5584_s24  ;;  %v6378_v20 = vpop.permute.xlu1 %4839  ;;  %v6387_v52 = vsel %vm391_vm0, %v1392_v54, %v1393_v13  ;;  %v4757_v54 = vunpack.i.h.bf16 %v6244_v25  ;;  %v4756_v13 = vunpack.i.l.bf16 %v6244_v25  ;;  %v4797_v25 = vunpack.i.h.bf16 %v6318_v34 }
  0xc8   : > { %v4835_v26 = vpop.permute.xlu0 %4834  ;;  %1520 = vrot.lane.b32.xlu1 %v6196_v56, %s5584_s24  ;;  %v653_v56 = vsel %vm649_vm4, %v5761_v30, %v4722_v1  ;;  %v661_v30 = vsel %vm658_vm2, %v652_v9, %v4741_v61  ;;  %v660_v1 = vsel %vm658_vm2, %v651_v3, %v4737_v44  ;;  %v668_v61 = vsel %vm667_vm5, %v659_v11, %v4756_v13 }
  0xc9   : > { %v662_v24 = vsel %vm658_vm2, %v653_v56, %v4742_v50  ;;  %v669_v50 = vsel %vm667_vm5, %v660_v1, %v4757_v54  ;;  %v4837_v56 = vunpack.i.h.bf16 %v4835_v26  ;;  %v4836_v9 = vunpack.i.l.bf16 %v4835_v26 }
  0xca   : > { %1522 = vrot.lane.b32.xlu0 %v6209_v4, %s5584_s24  ;;  %v6405_v2 = vpop.permute.xlu1 %4849  ;;  %v670_v51 = vsel %vm667_vm5, %v661_v30, %v4761_v55  ;;  %v677_v3 = vsel %vm676_vm6, %v668_v61, %v4776_v17  ;;  %v678_v44 = vsel %vm676_vm6, %v669_v50, %v4777_v58  ;;  %v4802_v58 = vunpack.i.h.bf16 %v6311_v49 }
  0xcb   : > { %v686_v54 = vsel %vm685_vm7, %v677_v3, %v4796_v5  ;;  %v687_v26 = vsel %vm685_vm7, %v678_v44, %v4797_v25  ;;  %v4801_v30 = vunpack.i.l.bf16 %v6311_v49  ;;  %v4821_v11 = vunpack.i.l.bf16 %v6344_v0 }
  0xcc   : > { %v6416_v4 = vpop.permute.xlu0 %4844  ;;  %1524 = vrot.lane.b32.xlu1 %v6223_v7, %s5584_s24  ;;  %v4762_v7 = vunpack.i.h.bf16 %v6233_v27  ;;  %v695_v27 = vsel %vm694_vm8, %v686_v54, %v4816_v63  ;;  %v4842_v63 = vunpack.i.h.bf16 %v6378_v20  ;;  %v4841_v61 = vunpack.i.l.bf16 %v6378_v20  ;;  %v5474_v54 = vld [vmem:[%s5705_s21 + $0x40] sm:$0xff] }
  0xcd   : > { %v704_v25 = vsel %vm703_vm9, %v695_v27, %v4836_v9  ;;  %v9137_v27 = vmov 0.0|0.0  }
  0xce   : > { %1526 = vrot.lane.b32.xlu0 %v6236_v14, %s5584_s24  ;;  %v4860_v34 = vpop.permute.xlu1 %4859  ;;  %v696_v14 = vsel %vm694_vm8, %v687_v26, %v4817_v40  ;;  %v9136_v26 = vunpack.i.l.bf16 %v6153_v19  ;;  %v4766_v19 = vunpack.i.l.bf16 %v6268_v41 }
  0xcf   : > { %v705_v5 = vsel %vm703_vm9, %v696_v14, %v4837_v56  ;;  %v679_v56 = vsel %vm676_vm6, %v670_v51, %v4781_v10  ;;  %v4862_v3 = vunpack.i.h.bf16 %v4860_v34  ;;  %v4861_v44 = vunpack.i.l.bf16 %v4860_v34 }
  0xd0   : > { %v4855_v13 = vpop.permute.xlu0 %4854  ;;  %1528 = vrot.lane.b32.xlu1 %v6249_v57, %s5584_s24  ;;  %v4822_v57 = vunpack.i.h.bf16 %v6344_v0  ;;  %v688_v20 = vsel %vm685_vm7, %v679_v56, %v4801_v30  ;;  %v4747_v34 = vunpack.i.h.bf16 %v6219_v16  ;;  %v4732_v14 = vunpack.i.h.bf16 %v6168_v28 }
  0xd1   : > { %v4857_v55 = vunpack.i.h.bf16 %v4855_v13  ;;  %v4856_v17 = vunpack.i.l.bf16 %v4855_v13  ;;  %v4786_v30 = vunpack.i.l.bf16 %v6301_v53 }
  0xd2   : > { %1530 = vrot.lane.b32.xlu0 %v6261_v37, %s5584_s24  ;;  %v6444_v8 = vpop.permute.xlu1 %4869  ;;  %v671_v37 = vsel %vm667_vm5, %v662_v24, %v4762_v7  ;;  %v654_v24 = vsel %vm649_vm4, %v5474_v54, %v9136_v26  ;;  %v4746_v7 = vunpack.i.l.bf16 %v6219_v16  ;;  %v4787_v16 = vunpack.i.h.bf16 %v6301_v53 }
  0xd3   : > { %v713_v1 = vsel %vm712_vm10, %v704_v25, %v4856_v17  ;;  %v714_v40 = vsel %vm712_vm10, %v705_v5, %v4857_v55  ;;  %v680_v9 = vsel %vm676_vm6, %v671_v37, %v4782_v15  ;;  %v697_v15 = vsel %vm694_vm8, %v688_v20, %v4821_v11 }
  0xd4   : > { %v6461_v50 = vpop.permute.xlu0 %4864  ;;  %1532 = vrot.lane.b32.xlu1 %v6364_v47, %s5584_s24  ;;  %v4564_v0 = vpack.c.bf16 %v714_v40, %v713_v1  ;;  %v689_v13 = vsel %vm685_vm7, %v680_v9, %v4802_v58  ;;  %v4767_v55 = vunpack.i.h.bf16 %v6268_v41  ;;  %v663_v41 = vsel %vm658_vm2, %v654_v24, %v4746_v7 }
  0xd5   : > { %v698_v10 = vsel %vm694_vm8, %v689_v13, %v4822_v57  ;;  %v4731_v57 = vunpack.i.l.bf16 %v6168_v28  ;;  %v4807_v11 = vunpack.i.h.bf16 %v6334_v43  ;;  %v4806_v1 = vunpack.i.l.bf16 %v6334_v43  ;;  %v5476_v13 = vld [vmem:[%s5705_s21 + $0x70] sm:$0xff] }
  0xd6   : > { %1542 = vrot.lane.b32.xlu0 %v6229_v21, %s5585_s25  ;;  %4566 = vmatpush3.bf16.xpose.msk.msra.mxu0 %vm6454_vm12, %v4564_v0  ;;  %v6478_v51 = vpop.permute.xlu1 %4879  ;;  %v706_v21 = vsel %vm703_vm9, %v697_v15, %v4841_v61  ;;  %v707_v17 = vsel %vm703_vm9, %v698_v10, %v4842_v63  ;;  %v664_v53 = vsel %vm658_vm2, %v6391_v48, %v4747_v34  ;;  %v4827_v37 = vunpack.i.h.bf16 %v6366_v60 }
  0xd7   : > { %4567 = vmatprep.subr.bf16.mxu0 %v9137_v27  ;;  %v715_v25 = vsel %vm712_vm10, %v706_v21, %v4861_v44  ;;  %v716_v5 = vsel %vm712_vm10, %v707_v17, %v4862_v3  ;;  %v672_v40 = vsel %vm667_vm5, %v663_v41, %v4766_v19  ;;  %v4826_v28 = vunpack.i.l.bf16 %v6366_v60  ;;  %v5475_v3 = vld [vmem:[%s5705_s21 + $0x60] sm:$0xff] }
  0xd8   : > { %v6489_v58 = vpop.permute.xlu0 %4874  ;;  %1544 = vrot.lane.b32.xlu1 %v6240_v33, %s5585_s25  ;;  %v673_v63 = vsel %vm667_vm5, %v664_v53, %v4767_v55  ;;  %v4847_v61 = vunpack.i.h.bf16 %v6416_v4  ;;  %v4846_v43 = vunpack.i.l.bf16 %v6416_v4  ;;  %v681_v48 = vsel %vm676_vm6, %v672_v40, %v4786_v30 }
  0xd9   : > { %v682_v56 = vsel %vm676_vm6, %v673_v63, %v4787_v16  ;;  %v4867_v9 = vunpack.i.h.bf16 %v6461_v50  ;;  %v4866_v60 = vunpack.i.l.bf16 %v6461_v50  ;;  %v656_v44 = vsel %vm649_vm4, %v5475_v3, %v4731_v57  ;;  %v6620_v3 = vld [vmem:[%s9069_s2] sm:$0xff] }
  0xda   : > { %1546 = vrot.lane.b32.xlu0 %v6253_v35, %s5585_s25  ;;  %v6503_v33 = vpop.permute.xlu1 %4889  ;;  %v4568_v35 = vpack.c.bf16 %v716_v5, %v715_v25  ;;  %v4751_v4 = vunpack.i.l.bf16 %v6206_v62  ;;  %v690_v54 = vsel %vm685_vm7, %v681_v48, %v4806_v1  ;;  %v691_v26 = vsel %vm685_vm7, %v682_v56, %v4807_v11 }
  0xdb   : > { %v4752_v24 = vunpack.i.h.bf16 %v6206_v62  ;;  %v4771_v50 = vunpack.i.l.bf16 %v6258_v36  ;;  %v699_v7 = vsel %vm694_vm8, %v690_v54, %v4826_v28  ;;  %v700_v20 = vsel %vm694_vm8, %v691_v26, %v4827_v37  ;;  %v6634_v54 = vld [vmem:[%s6160_s26 + $0x98] sm:$0x3] }
  0xdc   : > { %v6513_v0 = vpop.permute.xlu0 %4884  ;;  %1548 = vrot.lane.b32.xlu1 %v6265_v38, %s5585_s25  ;;  %v657_v34 = vsel %vm649_vm4, %v5476_v13, %v4732_v14  ;;  %v708_v19 = vsel %vm703_vm9, %v699_v7, %v4846_v43  ;;  %v709_v15 = vsel %vm703_vm9, %v700_v20, %v4847_v61  ;;  %v4792_v62 = vunpack.i.h.bf16 %v6296_v59  ;;  %v6649_v20 = vld [vmem:[%s6160_s26 + $0xb0] sm:$0xff]  ;;  %v6652_v13 = vld [vmem:[%s6160_s26 + $0xc8] sm:$0x3] }
  0xdd   : > { %v4791_v55 = vunpack.i.l.bf16 %v6296_v59  ;;  %v717_v21 = vsel %vm712_vm10, %v708_v19, %v4866_v60  ;;  %v718_v17 = vsel %vm712_vm10, %v709_v15, %v4867_v9  ;;  %v665_v14 = vsel %vm658_vm2, %v656_v44, %v4751_v4  ;;  %v6623_v44 = vld [vmem:[%s6160_s26 + $0x90] sm:$0xff]  ;;  %9143 = vst [vmem:[#allocation8_spill] sm:$0xff] %v6649_v20  ;;  %v6661_v15 = vld [vmem:[%s6160_s26 + $0xc0] sm:$0xff] }
  0xde   : > { %1550 = vrot.lane.b32.xlu0 %v6273_v42, %s5585_s25  ;;  %4570 = vmatpush3.bf16.xpose.msk.msra.mxu0 %vm6454_vm12, %v4568_v35  ;;  %v6530_v38 = vpop.permute.xlu1 %4899  ;;  %v4772_v42 = vunpack.i.h.bf16 %v6258_v36  ;;  %v4812_v36 = vunpack.i.h.bf16 %v6328_v31  ;;  %v4811_v16 = vunpack.i.l.bf16 %v6328_v31  ;;  %v674_v25 = vsel %vm667_vm5, %v665_v14, %v4771_v50  ;;  %v6644_v50 = vld [vmem:[%s6160_s26 + $0xb8] sm:$0x3]  ;;  %9144 = vst [vmem:[#allocation9_spill] sm:$0xff] %v6661_v15 }
  0xdf   : > { %4571 = vmatprep.subr.bf16.mxu0 %v9137_v27  ;;  %v4832_v59 = vunpack.i.h.bf16 %v6361_v18  ;;  %v4831_v5 = vunpack.i.l.bf16 %v6361_v18  ;;  %v4852_v41 = vunpack.i.h.bf16 %v6405_v2  ;;  %v4851_v11 = vunpack.i.l.bf16 %v6405_v2 }
  0xe0   : > { %v6542_v10 = vpop.permute.xlu0 %4894  ;;  %1552 = vrot.lane.b32.xlu1 %v6281_v46, %s5585_s25  ;;  %v666_v46 = vsel %vm658_vm2, %v657_v34, %v4752_v24  ;;  %v683_v1 = vsel %vm676_vm6, %v674_v25, %v4791_v55  ;;  %v4872_v40 = vunpack.i.h.bf16 %v6444_v8  ;;  %v4871_v18 = vunpack.i.l.bf16 %v6444_v8  ;;  %v6641_v24 = vld [vmem:[%s6160_s26 + $0xa8] sm:$0x3]  ;;  %v1281_v25 = vld [vmem:[%s6160_s26 + $0xd8] sm:$0x3] }
  0xe1   : > { %v675_v57 = vsel %vm667_vm5, %v666_v46, %v4772_v42  ;;  %v692_v37 = vsel %vm685_vm7, %v683_v1, %v4811_v16  ;;  %v1395_v60 = vrot.slane %v6364_v47, 2  ;;  %v9139_v47 = vld [vmem:[#allocation6_spill] sm:$0xff]  ;;  %v9142_v7 = vmov 0.0  }
  0xe2   : > { %1554 = vrot.lane.b32.xlu0 %v6290_v23, %s5585_s25  ;;  %v6555_v30 = vpop.permute.xlu1 %4909  ;;  %v4572_v23 = vpack.c.bf16 %v718_v17, %v717_v21  ;;  %v684_v53 = vsel %vm676_vm6, %v675_v57, %v4792_v62  ;;  %v701_v2 = vsel %vm694_vm8, %v692_v37, %v4831_v5  ;;  %9140 = vst [vmem:[#allocation6_spill] sm:$0xff] %v6620_v3  ;;  %v1414_v34 = vrot.slane %v6623_v44, 1  ;;  %v6674_v46 = vld [vmem:[%s6160_s26 + $0xd0] sm:$0xff]  ;;  %v1283_v5 = vld [vmem:[%s6160_s26 + $0xe8] sm:$0x3] }
  0xe3   : > { %v693_v28 = vsel %vm685_vm7, %v684_v53, %v4812_v36  ;;  %v710_v8 = vsel %vm703_vm9, %v701_v2, %v4851_v11  ;;  %v1415_v19 = vrot.slane %v6634_v54, 1  ;;  %v1418_v55 = vrot.slane %v6641_v24, 1  ;;  %v1285_v57 = vld [vmem:[%s6160_s26 + $0xf8] sm:$0x3]  ;;  %v6685_v11 = vld [vmem:[%s6160_s26 + $0xe0] sm:$0xff]  ;;  %v6702_v37 = vld [vmem:[%s6160_s26 + $0xf0] sm:$0xff] }
  0xe4   : > { %v6564_v31 = vpop.permute.xlu0 %4904  ;;  %1556 = vrot.lane.b32.xlu1 %v6387_v52, %s5585_s25  ;;  %v702_v63 = vsel %vm694_vm8, %v693_v28, %v4832_v59  ;;  %v1420_v21 = vrot.slane %v6649_v20, 1  ;;  %v1421_v17 = vrot.slane %v6644_v50, 1  ;;  %v1423_v36 = vrot.slane %v6661_v15, 1  ;;  %9146 = vst [vmem:[#allocation11_spill] sm:$0xff] %v6702_v37  ;;  %v6705_v28 = vld [vmem:[%s6160_s26 + $0x100] sm:$0xff] }
  0xe5   : > { %v711_v61 = vsel %vm703_vm9, %v702_v63, %v4852_v41  ;;  %v1424_v16 = vrot.slane %v6652_v13, 1  ;;  %v1438_v41 = vrot.slane %v6623_v44, 2  ;;  %v1426_v63 = vrot.slane %v6674_v46, 1 }
  0xe6   : > { %1566 = vrot.lane.b32.xlu0 %v6306_v6, %s9138_s19  ;;  %4574 = vmatpush3.bf16.xpose.msk.msra.mxu0 %vm6454_vm12, %v4572_v23  ;;  %v6578_v52 = vpop.permute.xlu1 %4919  ;;  %v719_v6 = vsel %vm712_vm10, %v710_v8, %v4871_v18  ;;  %v720_v35 = vsel %vm712_vm10, %v711_v61, %v4872_v40  ;;  %v6688_v23 = vsel %vm391_vm0, %v1414_v34, %v1415_v19  ;;  %v1287_v40 = vld [vmem:[%s6160_s26 + $0x108] sm:$0x3]  ;;  %v1427_v8 = vrot.slane %v1281_v25, 1 }
  0xe7   : > { %4575 = vmatprep.subr.bf16.mxu0 %v9137_v27  ;;  %v4576_v9 = vpack.c.bf16 %v720_v35, %v719_v6  ;;  %9145 = vst [vmem:[#allocation10_spill] sm:$0xff] %v6688_v23  ;;  %v6694_v53 = vsel %vm391_vm0, %v1420_v21, %v1421_v17  ;;  %v6708_v2 = vsel %vm391_vm0, %v1423_v36, %v1424_v16  ;;  %v1429_v61 = vrot.slane %v6685_v11, 1 }
  0xe8   : > { %v6585_v43 = vpop.permute.xlu0 %4914  ;;  %1568 = vrot.lane.b32.xlu1 %v6314_v22, %s9138_s19  ;;  %v1396_v22 = vrot.slane %v6357_v45, 2  ;;  %v1430_v6 = vrot.slane %v1283_v5, 1  ;;  %v1432_v35 = vrot.slane %v6702_v37, 1  ;;  %v1442_v34 = vrot.slane %v6641_v24, 2 }
  0xe9   : > { %v1444_v19 = vrot.slane %v6649_v20, 2  ;;  %v1448_v21 = vrot.slane %v6652_v13, 2  ;;  %v1450_v36 = vrot.slane %v6674_v46, 2  ;;  %v1453_v16 = vrot.slane %v6685_v11, 2 }
  0xea   : > { %1570 = vrot.lane.b32.xlu0 %v6323_v12, %s9138_s19  ;;  %v6593_v48 = vpop.permute.xlu1 %4929  ;;  %v1397_v45 = vsel %vm416_vm1, %v1395_v60, %v1396_v22  ;;  %v1435_v60 = vrot.slane %v6705_v28, 1  ;;  %v1456_v24 = vrot.slane %v6702_v37, 2  ;;  %v4881_v13 = vunpack.i.l.bf16 %v6478_v51 }
  0xec   : > { %v6595_v56 = vpop.permute.xlu0 %4924  ;;  %1572 = vrot.lane.b32.xlu1 %v6331_v39, %s9138_s19 }
  0xee   : > { %1574 = vrot.lane.b32.xlu0 %v6339_v32, %s9138_s19  ;;  %4578 = vmatpush3.bf16.xpose.msk.msra.mxu0 %vm6454_vm12, %v4576_v9  ;;  %v6605_v12 = vpop.permute.xlu1 %4939  ;;  %v1433_v9 = vrot.slane %v1285_v57, 1 }
  0xef   : > { %4619 = vmatprep.subr.bf16.mxu0 %v9137_v27 }
  0xf0   : > { %v6608_v39 = vpop.permute.xlu0 %4934  ;;  %1576 = vrot.lane.b32.xlu1 %v6347_v29, %s9138_s19  ;;  %v6631_v29 = vld [vmem:[%s6160_s26 + $0xa0] sm:$0xff] }
  0xf1   : > { %9141 = vst [vmem:[#allocation7_spill] sm:$0xff] %v6631_v29  ;;  %v1417_v62 = vrot.slane %v6631_v29, 1 }
  0xf2   : > { %1578 = vrot.lane.b32.xlu0 %v9139_v47, %s9138_s19  ;;  %v6615_v32 = vpop.permute.xlu1 %4949  ;;  %v1439_v47 = vrot.slane %v6634_v54, 2  ;;  %v1451_v54 = vrot.slane %v1281_v25, 2  ;;  %v6740_v25 = vsel %vm391_vm0, %v1426_v63, %v1427_v8 }
  0xf3   : > { %v6691_v1 = vsel %vm391_vm0, %v1417_v62, %v1418_v55  ;;  %v1445_v62 = vrot.slane %v6644_v50, 2  ;;  %v1447_v55 = vrot.slane %v6661_v15, 2  ;;  %v1459_v50 = vrot.slane %v6705_v28, 2 }
  0xf4   : > { %v6625_v4 = vpop.permute.xlu0 %4944  ;;  %1580 = vrot.lane.b32.xlu1 %v1397_v45, %s9138_s19  ;;  %v1436_v45 = vrot.slane %v1287_v40, 1  ;;  %v6758_v8 = vsel %vm416_vm1, %v1438_v41, %v1439_v47 }
  0xf5   : > { %4447 = vmatmul.mubr.msk.f32.vlgmr.msra.gmra.mrb[0].mxu0 %vm1062_vm11, %v6620_v3  ;;  %v1457_v3 = vrot.slane %v1285_v57, 2  ;;  %v4877_v57 = vunpack.i.h.bf16 %v6489_v58 }
  0xf6   : > { %1590 = vrot.lane.b32.xlu0 %v6623_v44, %s5588_s10  ;;  %v6638_v26 = vpop.permute.xlu1 %4959  ;;  %4560 = vmatprep.mubr.msk.f32.mxu0 %vm5592_vm3, %v9142_v7  ;;  %v1441_v44 = vrot.slane %v6631_v29, 2  ;;  %v1454_v7 = vrot.slane %v1283_v5, 2  ;;  %v6743_v5 = vsel %vm391_vm0, %v1429_v61, %v1430_v6  ;;  %v6767_v6 = vsel %vm416_vm1, %v1447_v55, %v1448_v21  ;;  %v5480_v21 = vld [vmem:[%s5705_s21 + $0xa0] sm:$0xff] }
  0xf7   : > { %v6776_v41 = vsel %vm416_vm1, %v1456_v24, %v1457_v3  ;;  %v4916_v24 = vunpack.i.l.bf16 %v6585_v43  ;;  %vm3002_vm3 = vcmask 58368  }
  0xf8   : > { %v6655_v42 = vpop.permute.xlu0 %4954  ;;  %1592 = vrot.lane.b32.xlu1 %v6631_v29, %s5588_s10  ;;  %v6761_v61 = vsel %vm416_vm1, %v1441_v44, %v1442_v34  ;;  %9148 = vst [vmem:[#allocation13_spill] sm:$0xff] %v6776_v41  ;;  %v5478_v44 = vld [vmem:[%s5705_s21 + $0xc0] sm:$0xff] }
  0xf9   : > { %v995_v34 = vsel %vm649_vm4, %v5478_v44, %v4881_v13 }
  0xfa   : > { %1594 = vrot.lane.b32.xlu0 %v6649_v20, %s5588_s10  ;;  %v6669_v14 = vpop.permute.xlu1 %4969  ;;  %v1460_v20 = vrot.slane %v1287_v40, 2  ;;  %v4876_v40 = vunpack.i.l.bf16 %v6489_v58  ;;  %v6764_v58 = vsel %vm416_vm1, %v1444_v19, %v1445_v62  ;;  %v4902_v19 = vunpack.i.h.bf16 %v6530_v38 }
  0xfb   : > { %v4901_v62 = vunpack.i.l.bf16 %v6530_v38  ;;  %v4917_v38 = vunpack.i.h.bf16 %v6585_v43  ;;  %v4956_v43 = vunpack.i.l.bf16 %v6655_v42 }
  0xfc   : > { %v6677_v59 = vpop.permute.xlu0 %4964  ;;  %1596 = vrot.lane.b32.xlu1 %v6661_v15, %s5588_s10  ;;  %v4882_v15 = vunpack.i.h.bf16 %v6478_v51  ;;  %v6751_v51 = vsel %vm391_vm0, %v1435_v60, %v1436_v45  ;;  %v6779_v60 = vsel %vm416_vm1, %v1459_v50, %v1460_v20  ;;  %v5477_v45 = vld [vmem:[%s5705_s21 + $0xd0] sm:$0xff]  ;;  %v993_v20 = vsel %vm649_vm4, %v5480_v21, %v4876_v40 }
  0xfd   : > { %9147 = vst [vmem:[#allocation12_spill] sm:$0xff] %v6751_v51  ;;  %9149 = vst [vmem:[#allocation14_spill] sm:$0xff] %v6779_v60  ;;  %v4937_v40 = vunpack.i.h.bf16 %v6608_v39 }
  0xfe   : > { %1598 = vrot.lane.b32.xlu0 %v6674_v46, %s5588_s10  ;;  %v6699_v18 = vpop.permute.xlu1 %4979  ;;  %v996_v47 = vsel %vm649_vm4, %v5477_v45, %v4882_v15  ;;  %v4896_v15 = vunpack.i.l.bf16 %v6542_v10  ;;  %v1003_v45 = vsel %vm658_vm2, %v995_v34, %v4901_v62 }
  0xff   : > { %v1004_v44 = vsel %vm658_vm2, %v996_v47, %v4902_v19 }
 0x100   : > { %v6714_v22 = vpop.permute.xlu0 %4974  ;;  %1600 = vrot.lane.b32.xlu1 %v6685_v11, %s5588_s10 }
 0x101   : > { %v4977_v13 = vunpack.i.h.bf16 %v6714_v22 }
 0x102   : > { %1602 = vrot.lane.b32.xlu0 %v6702_v37, %s5588_s10  ;;  %v6727_v17 = vpop.permute.xlu1 %4989  ;;  %v6748_v37 = vsel %vm391_vm0, %v1432_v35, %v1433_v9  ;;  %v6770_v35 = vsel %vm416_vm1, %v1450_v36, %v1451_v54  ;;  %v6773_v9 = vsel %vm416_vm1, %v1453_v16, %v1454_v7  ;;  %v5479_v7 = vld [vmem:[%s5705_s21 + $0xb0] sm:$0xff]  ;;  %v4897_v36 = vunpack.i.h.bf16 %v6542_v10 }
 0x103   : > { %v994_v3 = vsel %vm649_vm4, %v5479_v7, %v4877_v57  ;;  %v4921_v57 = vunpack.i.l.bf16 %v6578_v52  ;;  %v4936_v10 = vunpack.i.l.bf16 %v6608_v39  ;;  %v4957_v7 = vunpack.i.h.bf16 %v6655_v42 }
 0x104   : > { %v6735_v29 = vpop.permute.xlu0 %4984  ;;  %1604 = vrot.lane.b32.xlu1 %v6705_v28, %s5588_s10  ;;  %v1001_v54 = vsel %vm658_vm2, %v993_v20, %v4896_v15  ;;  %v1002_v16 = vsel %vm658_vm2, %v994_v3, %v4897_v36  ;;  %v4976_v39 = vunpack.i.l.bf16 %v6714_v22  ;;  %v4942_v22 = vunpack.i.h.bf16 %v6605_v12 }
 0x105   : > { %v1009_v34 = vsel %vm667_vm5, %v1001_v54, %v4916_v24  ;;  %v1010_v47 = vsel %vm667_vm5, %v1002_v16, %v4917_v38  ;;  %v1011_v20 = vsel %vm667_vm5, %v1003_v45, %v4921_v57  ;;  %v4941_v15 = vunpack.i.l.bf16 %v6605_v12 }
 0x106   : > { %1614 = vrot.lane.b32.xlu0 %v6688_v23, %s5589_s12  ;;  %v6755_v63 = vpop.permute.xlu1 %4999  ;;  %v4922_v23 = vunpack.i.h.bf16 %v6578_v52  ;;  %v1017_v3 = vsel %vm676_vm6, %v1009_v34, %v4936_v10  ;;  %v1018_v36 = vsel %vm676_vm6, %v1010_v47, %v4937_v40  ;;  %v4962_v40 = vunpack.i.h.bf16 %v6638_v26 }
 0x107   : > { %v1025_v54 = vsel %vm685_vm7, %v1017_v3, %v4956_v43  ;;  %v4961_v10 = vunpack.i.l.bf16 %v6638_v26  ;;  %v4982_v43 = vunpack.i.h.bf16 %v6699_v18  ;;  %v5002_v26 = vunpack.i.h.bf16 %v6755_v63 }
 0x108   : > { %v4995_v55 = vpop.permute.xlu0 %4994  ;;  %1616 = vrot.lane.b32.xlu1 %v6691_v1, %s5589_s12  ;;  %v1033_v52 = vsel %vm694_vm8, %v1025_v54, %v4976_v39  ;;  %v4981_v39 = vunpack.i.l.bf16 %v6699_v18  ;;  %v1012_v47 = vsel %vm667_vm5, %v1004_v44, %v4922_v23  ;;  %v5001_v3 = vunpack.i.l.bf16 %v6755_v63 }
 0x109   : > { %v4997_v19 = vunpack.i.h.bf16 %v4995_v55  ;;  %v4996_v62 = vunpack.i.l.bf16 %v4995_v55  ;;  %v1026_v55 = vsel %vm685_vm7, %v1018_v36, %v4957_v7  ;;  %v1020_v36 = vsel %vm676_vm6, %v1012_v47, %v4942_v22 }
 0x10a   : > { %1618 = vrot.lane.b32.xlu0 %v6694_v53, %s5589_s12  ;;  %v6801_v50 = vpop.permute.xlu1 %5009  ;;  %v1034_v38 = vsel %vm694_vm8, %v1026_v55, %v4977_v13  ;;  %v4887_v55 = vunpack.i.h.bf16 %v6513_v0  ;;  %v1028_v44 = vsel %vm685_vm7, %v1020_v36, %v4962_v40 }
 0x10b   : > { %v1041_v45 = vsel %vm703_vm9, %v1033_v52, %v4996_v62  ;;  %v1042_v7 = vsel %vm703_vm9, %v1034_v38, %v4997_v19  ;;  %v1019_v19 = vsel %vm676_vm6, %v1011_v20, %v4941_v15  ;;  %v4907_v20 = vunpack.i.h.bf16 %v6564_v31  ;;  %v5481_v52 = vld [vmem:[%s5705_s21 + $0xe0] sm:$0xff] }
 0x10c   : > { %v6811_v21 = vpop.permute.xlu0 %5004  ;;  %1620 = vrot.lane.b32.xlu1 %v6708_v2, %s5589_s12  ;;  %v1027_v23 = vsel %vm685_vm7, %v1019_v19, %v4961_v10  ;;  %v1036_v15 = vsel %vm694_vm8, %v1028_v44, %v4982_v43  ;;  %v9150_v38 = vunpack.i.l.bf16 %v6513_v0  ;;  %v5482_v0 = vld [vmem:[%s5705_s21 + $0xf0] sm:$0xff]  ;;  %v4986_v19 = vunpack.i.l.bf16 %v6735_v29 }
 0x10d   : > { %v1035_v22 = vsel %vm694_vm8, %v1027_v23, %v4981_v39  ;;  %v1044_v10 = vsel %vm703_vm9, %v1036_v15, %v5002_v26  ;;  %v998_v39 = vsel %vm649_vm4, %v5482_v0, %v4887_v55 }
 0x10e   : > { %1622 = vrot.lane.b32.xlu0 %v6740_v25, %s5589_s12  ;;  %v5020_v42 = vpop.permute.xlu1 %5019  ;;  %v1043_v40 = vsel %vm703_vm9, %v1035_v22, %v5001_v3  ;;  %v4911_v22 = vunpack.i.l.bf16 %v6555_v30 }
 0x10f   : > { %v5022_v18 = vunpack.i.h.bf16 %v5020_v42  ;;  %v5021_v54 = vunpack.i.l.bf16 %v5020_v42  ;;  %v4926_v42 = vunpack.i.l.bf16 %v6595_v56 }
 0x110   : > { %v5015_v16 = vpop.permute.xlu0 %5014  ;;  %1624 = vrot.lane.b32.xlu1 %v6743_v5, %s5589_s12 }
 0x111   : > { %v5017_v24 = vunpack.i.h.bf16 %v5015_v16  ;;  %v5016_v57 = vunpack.i.l.bf16 %v5015_v16  ;;  %v4906_v16 = vunpack.i.l.bf16 %v6564_v31  ;;  %v4947_v31 = vunpack.i.h.bf16 %v6625_v4 }
 0x112   : > { %1626 = vrot.lane.b32.xlu0 %v6748_v37, %s5589_s12  ;;  %v6839_v12 = vpop.permute.xlu1 %5029  ;;  %v1052_v43 = vsel %vm712_vm10, %v1044_v10, %v5022_v18  ;;  %v5007_v18 = vunpack.i.h.bf16 %v6811_v21  ;;  %v5484_v10 = vld [vmem:[%s5705_s21 + $0x110] sm:$0xff] }
 0x113   : > { %v1049_v13 = vsel %vm712_vm10, %v1041_v45, %v5016_v57  ;;  %v1050_v34 = vsel %vm712_vm10, %v1042_v7, %v5017_v24  ;;  %v997_v24 = vsel %vm649_vm4, %v5481_v52, %v9150_v38  ;;  %v4927_v57 = vunpack.i.h.bf16 %v6595_v56 }
 0x114   : > { %1628 = vrot.lane.b32.xlu1 %v6751_v51, %s5589_s12  ;;  %v4580_v62 = vpack.c.bf16 %v1050_v34, %v1049_v13  ;;  %v4946_v45 = vunpack.i.l.bf16 %v6625_v4  ;;  %v1051_v7 = vsel %vm712_vm10, %v1043_v40, %v5021_v54  ;;  %v1005_v56 = vsel %vm658_vm2, %v997_v24, %v4906_v16  ;;  %v5025_v47 = vpop.permute.xlu0 %5024 }
 0x115   : > { %v4967_v13 = vunpack.i.h.bf16 %v6677_v59  ;;  %v4966_v34 = vunpack.i.l.bf16 %v6677_v59  ;;  %v1006_v4 = vsel %vm658_vm2, %v998_v39, %v4907_v20  ;;  %v1013_v3 = vsel %vm667_vm5, %v1005_v56, %v4926_v42  ;;  %v5483_v20 = vld [vmem:[%s5705_s21 + $0x100] sm:$0xff]  ;;  %s9093_s21 = smov 36  }
 0x116   : > { %1638 = vrot.lane.b32.xlu0 %v6758_v8, %s9095_s13  ;;  %4582 = vmatpush3.bf16.xpose.msk.msra.mxu1 %vm6454_vm12, %v4580_v62  ;;  %v6862_v63 = vpop.permute.xlu1 %1470  ;;  %v4987_v62 = vunpack.i.h.bf16 %v6735_v29  ;;  %v1014_v36 = vsel %vm667_vm5, %v1006_v4, %v4927_v57  ;;  %v5006_v59 = vunpack.i.l.bf16 %v6811_v21  ;;  %v4584_v54 = vpack.c.bf16 %v1052_v43, %v1051_v7 }
 0x117   : > { %4583 = vmatprep.subr.bf16.mxu1 %v9137_v27  ;;  %v1021_v55 = vsel %vm676_vm6, %v1013_v3, %v4946_v45  ;;  %v1022_v16 = vsel %vm676_vm6, %v1014_v36, %v4947_v31  ;;  %v5027_v23 = vunpack.i.h.bf16 %v5025_v47  ;;  %v5026_v44 = vunpack.i.l.bf16 %v5025_v47 }
 0x118   : > { %1640 = vrot.lane.b32.xlu1 %v6761_v61, %s9095_s13  ;;  %v9151_v29 = vunpack.i.l.bf16 %v6503_v33  ;;  %v1029_v21 = vsel %vm685_vm7, %v1021_v55, %v4966_v34  ;;  %v1030_v15 = vsel %vm685_vm7, %v1022_v16, %v4967_v13  ;;  %v4912_v38 = vunpack.i.h.bf16 %v6555_v30 }
 0x119   : > { %v4931_v24 = vunpack.i.l.bf16 %v6593_v48  ;;  %v1037_v57 = vsel %vm694_vm8, %v1029_v21, %v4986_v19  ;;  %v1038_v40 = vsel %vm694_vm8, %v1030_v15, %v4987_v62  ;;  %v9152_v31 = vunpack.i.h.bf16 %v6503_v33  ;;  %v9155_v21 = vld [vmem:[#allocation8_spill] sm:$0xff] }
 0x11a   : > { %1642 = vrot.lane.b32.xlu0 %v6764_v58, %s9095_s13  ;;  %v6889_v26 = vpop.permute.xlu1 %1472  ;;  %v999_v42 = vsel %vm649_vm4, %v5483_v20, %v9151_v29  ;;  %v4932_v7 = vunpack.i.h.bf16 %v6593_v48  ;;  %v1045_v43 = vsel %vm703_vm9, %v1037_v57, %v5006_v59  ;;  %v1046_v0 = vsel %vm703_vm9, %v1038_v40, %v5007_v18  ;;  %v9156_v57 = vld [vmem:[#allocation9_spill] sm:$0xff] }
 0x11b   : > { %v1000_v45 = vsel %vm649_vm4, %v5484_v10, %v9152_v31  ;;  %v4952_v30 = vunpack.i.h.bf16 %v6615_v32  ;;  %v4951_v39 = vunpack.i.l.bf16 %v6615_v32  ;;  %v1053_v56 = vsel %vm712_vm10, %v1045_v43, %v5026_v44 }
 0x11c   : > { %1644 = vrot.lane.b32.xlu1 %v6767_v6, %s9095_s13  ;;  %v1054_v13 = vsel %vm712_vm10, %v1046_v0, %v5027_v23  ;;  %v1007_v33 = vsel %vm658_vm2, %v999_v42, %v4911_v22  ;;  %v4972_v34 = vunpack.i.h.bf16 %v6669_v14  ;;  %v4971_v48 = vunpack.i.l.bf16 %v6669_v14  ;;  %v6993_v0 = vld [vmem:[%s6160_s26 + $0x110] sm:$0xff] }
 0x11d   : > { %v1008_v4 = vsel %vm658_vm2, %v1000_v45, %v4912_v38  ;;  %v1015_v3 = vsel %vm667_vm5, %v1007_v33, %v4931_v24  ;;  %v4992_v32 = vunpack.i.h.bf16 %v6727_v17  ;;  %v4991_v62 = vunpack.i.l.bf16 %v6727_v17  ;;  %v327_v33 = vld [vmem:[%s9071_s4 + $0x8] sm:$0xff] }
 0x11e   : > { %1646 = vrot.lane.b32.xlu0 %v6770_v35, %s9095_s13  ;;  %4586 = vmatpush3.bf16.xpose.msk.msra.mxu1 %vm6454_vm12, %v4584_v54  ;;  %v6913_v52 = vpop.permute.xlu1 %1476  ;;  %v1016_v19 = vsel %vm667_vm5, %v1008_v4, %v4932_v7  ;;  %v5012_v36 = vunpack.i.h.bf16 %v6801_v50  ;;  %v5011_v18 = vunpack.i.l.bf16 %v6801_v50  ;;  %v4588_v14 = vpack.c.bf16 %v1054_v13, %v1053_v56  ;;  %v9154_v50 = vld [vmem:[#allocation7_spill] sm:$0xff]  ;;  %v326_v13 = vld [vmem:[%s9071_s4] sm:$0xff] }
 0x11f   : > { %4587 = vmatprep.subr.bf16.mxu1 %v9137_v27  ;;  %v1023_v59 = vsel %vm676_vm6, %v1015_v3, %v4951_v39  ;;  %v1024_v54 = vsel %vm676_vm6, %v1016_v19, %v4952_v30  ;;  %v5032_v55 = vunpack.i.h.bf16 %v6839_v12  ;;  %v5031_v16 = vunpack.i.l.bf16 %v6839_v12  ;;  %v9157_v7 = vld [vmem:[#allocation11_spill] sm:$0xff]  ;;  %9158 = vst [vmem:[#allocation7_spill] sm:$0xff] %v6993_v0  ;;  %v9159_v39 = vld [vmem:[#allocation6_spill] sm:$0xff] }
 0x120   : > { %1648 = vrot.lane.b32.xlu1 %v6773_v9, %s9095_s13  ;;  %v1031_v17 = vsel %vm685_vm7, %v1023_v59, %v4971_v48  ;;  %v1032_v44 = vsel %vm685_vm7, %v1024_v54, %v4972_v34  ;;  %v1289_v48 = vld [vmem:[%s6160_s26 + $0x118] sm:$0x3]  ;;  %v7024_v4 = vpack.c.bf16 %v327_v33, %v326_v13  ;;  %v1464_v3 = vrot.slane %v6993_v0, 1  ;;  %v328_v19 = vld [vmem:[%s9071_s4 + $0x10] sm:$0xff] }
 0x121   : > { %v1039_v29 = vsel %vm694_vm8, %v1031_v17, %v4991_v62  ;;  %v1040_v42 = vsel %vm694_vm8, %v1032_v44, %v4992_v32  ;;  %v1465_v62 = vrot.slane %v1289_v48, 1 }
 0x122   : > { %1650 = vrot.lane.b32.xlu0 %v6776_v41, %s9095_s13  ;;  %v6938_v47 = vpop.permute.xlu1 %1480  ;;  %v1047_v12 = vsel %vm703_vm9, %v1039_v29, %v5011_v18  ;;  %v1048_v22 = vsel %vm703_vm9, %v1040_v42, %v5012_v36  ;;  %9160 = vst [vmem:[#allocation8_spill] sm:$0xff] %v7024_v4  ;;  %v329_v36 = vld [vmem:[%s9071_s4 + $0x18] sm:$0xff] }
 0x123   : > { %v1055_v15 = vsel %vm712_vm10, %v1047_v12, %v5031_v16  ;;  %v1056_v38 = vsel %vm712_vm10, %v1048_v22, %v5032_v55  ;;  %v7051_v54 = vsel %vm391_vm0, %v1464_v3, %v1465_v62  ;;  %v330_v55 = vld [vmem:[%s9071_s4 + $0x20] sm:$0xff]  ;;  %v331_v16 = vld [vmem:[%s9071_s4 + $0x28] sm:$0xff]  ;;  %v9165_v62 = vld [vmem:[#allocation10_spill] sm:$0xff] }
 0x124   : > { %1652 = vrot.lane.b32.xlu1 %v6779_v60, %s9095_s13  ;;  %v4592_v10 = vpack.c.bf16 %v1056_v38, %v1055_v15  ;;  %9162 = vst [vmem:[#allocation11_spill] sm:$0xff] %v7051_v54  ;;  %v7064_v44 = vpack.c.bf16 %v331_v16, %v330_v55  ;;  %s5596_s13 = smov 44   ;;  %v1467_v15 = vrot.slane %v6993_v0, 2 }
 0x125   : > { %v6953_v23 = vpop.permute.xlu0 %1059 }
 0x126   : > { %9153 = vst [vmem:[#allocation15_spill] sm:$0xff] %v6953_v23  ;;  %1662 = vrot.lane.b32.xlu0 %v9154_v50, %s9093_s21  ;;  %4590 = vmatpush3.bf16.xpose.msk.msra.mxu1 %vm6454_vm12, %v4588_v14  ;;  %v6961_v20 = vpop.permute.xlu1 %1484  ;;  %v7043_v14 = vpack.c.bf16 %v329_v36, %v328_v19  ;;  %9163 = vst [vmem:[#allocation6_spill] sm:$0xff] %v7064_v44 }
 0x127   : > { %4591 = vmatprep.subr.bf16.mxu1 %v9137_v27 }
 0x128   : > { %1664 = vrot.lane.b32.xlu1 %v9155_v21, %s9093_s21  ;;  %9161 = vst [vmem:[#allocation9_spill] sm:$0xff] %v7043_v14 }
 0x129   : > { %v6972_v24 = vpop.permute.xlu0 %1474 }
 0x12a   : > { %1666 = vrot.lane.b32.xlu0 %v9156_v57, %s9093_s21  ;;  %v6976_v40 = vpop.permute.xlu1 %1496 }
 0x12c   : > { %1668 = vrot.lane.b32.xlu1 %v6674_v46, %s9093_s21 }
 0x12d   : > { %v6980_v31 = vpop.permute.xlu0 %1478 }
 0x12e   : > { %1670 = vrot.lane.b32.xlu0 %v6685_v11, %s9093_s21  ;;  %4594 = vmatpush3.bf16.xpose.msk.msra.mxu1 %vm6454_vm12, %v4592_v10  ;;  %v6986_v45 = vpop.permute.xlu1 %1500  ;;  %v1468_v10 = vrot.slane %v1289_v48, 2  ;;  %vm4066_vm12 = vcmask 785408  }
 0x12f   : > { %4596 = vmatprep.subr.bf16.mxu1 %v7024_v4 }
 0x130   : > { %1672 = vrot.lane.b32.xlu1 %v9157_v7, %s9093_s21  ;;  %v7099_v33 = vsel %vm416_vm1, %v1467_v15, %v1468_v10 }
 0x131   : > { %v6990_v43 = vpop.permute.xlu0 %1482  ;;  %9164 = vst [vmem:[#allocation16_spill] sm:$0xff] %v7099_v33 }
 0x132   : > { %1674 = vrot.lane.b32.xlu0 %v6705_v28, %s9093_s21  ;;  %v6997_v30 = vpop.permute.xlu1 %1504 }
 0x134   : > { %1676 = vrot.lane.b32.xlu1 %v6993_v0, %s9093_s21  ;;  %v1290_v0 = vld [vmem:[%s6160_s26 + $0x120] sm:$0xff]  ;;  %s9181_s21 = smov 32  }
 0x135   : > { %v7001_v49 = vpop.permute.xlu0 %1494  ;;  %4466 = vmatmul.mubr.msk.f32.vlgmr.msra.gmra.mrb[0].mxu1 %vm1062_vm11, %v9159_v39 }
 0x136   : > { %1686 = vrot.lane.b32.xlu0 %v6691_v1, %s5595_s18  ;;  %v7007_v56 = vpop.permute.xlu1 %1508  ;;  %4598 = vmatpush3.bf16.msra.mxu1 %v7024_v4 }
 0x137   : > { %4600 = vmatprep.subr.bf16.mxu1 %v7043_v14 }
 0x138   : > { %1688 = vrot.lane.b32.xlu1 %v6694_v53, %s5595_s18 }
 0x139   : > { %v7011_v28 = vpop.permute.xlu0 %1498 }
 0x13a   : > { %1690 = vrot.lane.b32.xlu0 %v6708_v2, %s5595_s18  ;;  %v7021_v34 = vpop.permute.xlu1 %1520  ;;  %4602 = vmatpush3.bf16.msra.mxu1 %v7043_v14  ;;  %v1976_v14 = vrot.slane %v1290_v0, 1 }
 0x13b   : > { %4604 = vmatprep.subr.bf16.mxu1 %v7064_v44 }
 0x13c   : > { %1692 = vrot.lane.b32.xlu1 %v6740_v25, %s5595_s18 }
 0x13d   : > { %v7030_v32 = vpop.permute.xlu0 %1502 }
 0x13e   : > { %1694 = vrot.lane.b32.xlu0 %v6743_v5, %s5595_s18  ;;  %v7041_v18 = vpop.permute.xlu1 %1524  ;;  %4606 = vmatpush3.bf16.msra.mxu1 %v7064_v44 }
 0x13f   : > { %4608 = vmatprep.subr.bf16.mxu1 %v7024_v4 }
 0x140   : > { %1696 = vrot.lane.b32.xlu1 %v6748_v37, %s5595_s18 }
 0x141   : > { %v7048_v59 = vpop.permute.xlu0 %1506 }
 0x142   : > { %1698 = vrot.lane.b32.xlu0 %v6751_v51, %s5595_s18  ;;  %v7062_v17 = vpop.permute.xlu1 %1528 }
 0x144   : > { %1700 = vrot.lane.b32.xlu1 %v7051_v54, %s5595_s18 }
 0x145   : > { %v7069_v29 = vpop.permute.xlu0 %1518 }
 0x146   : > { %1710 = vrot.lane.b32.xlu0 %v6761_v61, %s5596_s13  ;;  %v7074_v42 = vpop.permute.xlu1 %1532 }
 0x148   : > { %1712 = vrot.lane.b32.xlu1 %v6764_v58, %s5596_s13 }
 0x149   : > { %v7079_v12 = vpop.permute.xlu0 %1522 }
 0x14a   : > { %1714 = vrot.lane.b32.xlu0 %v6767_v6, %s5596_s13  ;;  %v7083_v22 = vpop.permute.xlu1 %1544 }
 0x14c   : > { %1716 = vrot.lane.b32.xlu1 %v6770_v35, %s5596_s13 }
 0x14d   : > { %v7088_v38 = vpop.permute.xlu0 %1526 }
 0x14e   : > { %1718 = vrot.lane.b32.xlu0 %v6773_v9, %s5596_s13  ;;  %v7092_v39 = vpop.permute.xlu1 %1548 }
 0x150   : > { %1720 = vrot.lane.b32.xlu1 %v6776_v41, %s5596_s13 }
 0x151   : > { %v7096_v13 = vpop.permute.xlu0 %1530 }
 0x152   : > { %1722 = vrot.lane.b32.xlu0 %v6779_v60, %s5596_s13  ;;  %v7103_v3 = vpop.permute.xlu1 %1552  ;;  %v1291_v60 = vld [vmem:[%s6160_s26 + $0x128] sm:$0x3] }
 0x153   : > { %v1977_v4 = vrot.slane %v1291_v60, 1 }
 0x154   : > { %1724 = vrot.lane.b32.xlu1 %v7099_v33, %s5596_s13 }
 0x155   : > { %v7107_v48 = vpop.permute.xlu0 %1542 }
 0x156   : > { %2104 = vrot.lane.b32.xlu0 %v9165_v62, %s5582_s22  ;;  %v7111_v19 = vpop.permute.xlu1 %1556 }
 0x158   : > { %2106 = vrot.lane.b32.xlu1 %v6691_v1, %s5582_s22 }
 0x159   : > { %v7115_v36 = vpop.permute.xlu0 %1546 }
 0x15a   : > { %2108 = vrot.lane.b32.xlu0 %v6694_v53, %s5582_s22  ;;  %v7119_v55 = vpop.permute.xlu1 %1568 }
 0x15c   : > { %2110 = vrot.lane.b32.xlu1 %v6708_v2, %s5582_s22 }
 0x15d   : > { %v7123_v16 = vpop.permute.xlu0 %1550 }
 0x15e   : > { %2112 = vrot.lane.b32.xlu0 %v6740_v25, %s5582_s22  ;;  %v7127_v15 = vpop.permute.xlu1 %1572 }
 0x160   : > { %2114 = vrot.lane.b32.xlu1 %v6743_v5, %s5582_s22 }
 0x161   : > { %v7131_v10 = vpop.permute.xlu0 %1554 }
 0x162   : > { %9166 = vst [vmem:[#allocation10_spill] sm:$0xff] %v7131_v10  ;;  %2116 = vrot.lane.b32.xlu0 %v6748_v37, %s5582_s22  ;;  %v7135_v62 = vpop.permute.xlu1 %1576 }
 0x163   : > { %9167 = vst [vmem:[#allocation17_spill] sm:$0xff] %v7135_v62  ;;  %v2001_v62 = vrot.slane %v1291_v60, 2 }
 0x164   : > { %2118 = vrot.lane.b32.xlu1 %v6751_v51, %s5582_s22 }
 0x165   : > { %v7139_v23 = vpop.permute.xlu0 %1566 }
 0x166   : > { %2152 = vrot.lane.b32.xlu0 %v6758_v8, %s5583_s23  ;;  %v7143_v27 = vpop.permute.xlu1 %1580 }
 0x167   : > { %9168 = vst [vmem:[#allocation18_spill] sm:$0xff] %v7143_v27  ;;  %v1293_v27 = vld [vmem:[%s6160_s26 + $0x138] sm:$0x3] }
 0x168   : > { %2154 = vrot.lane.b32.xlu1 %v6761_v61, %s5583_s23 }
 0x169   : > { %v7147_v33 = vpop.permute.xlu0 %1570 }
 0x16a   : > { %9169 = vst [vmem:[#allocation19_spill] sm:$0xff] %v7147_v33  ;;  %2200 = vrot.lane.b32.xlu0 %v9154_v50, %s5584_s24  ;;  %v7151_v54 = vpop.permute.xlu1 %1592  ;;  %v2004_v33 = vrot.slane %v1293_v27, 2 }
 0x16c   : > { %2202 = vrot.lane.b32.xlu1 %v9155_v21, %s5584_s24  ;;  %v7172_v21 = vld [vmem:[%s6160_s26 + $0x130] sm:$0xff] }
 0x16d   : > { %v7155_v51 = vpop.permute.xlu0 %1574  ;;  %9174 = vst [vmem:[#allocation24_spill] sm:$0xff] %v7172_v21  ;;  %v2003_v41 = vrot.slane %v7172_v21, 2 }
 0x16e   : > { %9170 = vst [vmem:[#allocation20_spill] sm:$0xff] %v7155_v51  ;;  %2248 = vrot.lane.b32.xlu0 %v6691_v1, %s5585_s25  ;;  %v7159_v8 = vpop.permute.xlu1 %1596  ;;  %v1980_v51 = vrot.slane %v1293_v27, 1 }
 0x16f   : > { %9171 = vst [vmem:[#allocation21_spill] sm:$0xff] %v7159_v8 }
 0x170   : > { %2250 = vrot.lane.b32.xlu1 %v6694_v53, %s5585_s25  ;;  %v1979_v53 = vrot.slane %v7172_v21, 1 }
 0x171   : > { %v7165_v44 = vpop.permute.xlu0 %1578 }
 0x172   : > { %9172 = vst [vmem:[#allocation22_spill] sm:$0xff] %v7165_v44  ;;  %2296 = vrot.lane.b32.xlu0 %v6761_v61, %s9138_s19  ;;  %v7169_v50 = vpop.permute.xlu1 %1600  ;;  %v2000_v61 = vrot.slane %v1290_v0, 2  ;;  %v7191_v10 = vsel %vm391_vm0, %v1979_v53, %v1980_v51  ;;  %v7206_v51 = vsel %vm416_vm1, %v2003_v41, %v2004_v33  ;;  %v7221_v53 = vld [vmem:[%s6160_s26 + $0x140] sm:$0xff]  ;;  %v1295_v41 = vld [vmem:[%s6160_s26 + $0x148] sm:$0x3] }
 0x173   : > { %9173 = vst [vmem:[#allocation23_spill] sm:$0xff] %v7169_v50  ;;  %v7184_v50 = vsel %vm391_vm0, %v1976_v14, %v1977_v4  ;;  %9177 = vst [vmem:[#allocation27_spill] sm:$0xff] %v7191_v10 }
 0x174   : > { %2298 = vrot.lane.b32.xlu1 %v6764_v58, %s9138_s19  ;;  %9176 = vst [vmem:[#allocation26_spill] sm:$0xff] %v7184_v50  ;;  %v7199_v60 = vsel %vm416_vm1, %v2000_v61, %v2001_v62  ;;  %9180 = vst [vmem:[#allocation30_spill] sm:$0xff] %v7206_v51 }
 0x175   : > { %v7177_v1 = vpop.permute.xlu0 %1590  ;;  %9178 = vst [vmem:[#allocation28_spill] sm:$0xff] %v7199_v60  ;;  %9186 = vst [vmem:[#allocation34_spill] sm:$0xff] %v7221_v53 }
 0x176   : > { %2344 = vrot.lane.b32.xlu0 %v1290_v0, %s5588_s10  ;;  %v7181_v44 = vpop.permute.xlu1 %1604 }
 0x177   : > { %9175 = vst [vmem:[#allocation25_spill] sm:$0xff] %v7181_v44 }
 0x178   : > { %2346 = vrot.lane.b32.xlu1 %v7172_v21, %s5588_s10 }
 0x179   : > { %v7188_v8 = vpop.permute.xlu0 %1594 }
 0x17a   : > { %2392 = vrot.lane.b32.xlu0 %v7184_v50, %s5589_s12  ;;  %v7196_v0 = vpop.permute.xlu1 %1616  ;;  %v1983_v50 = vrot.slane %v1295_v41, 1 }
 0x17c   : > { %2394 = vrot.lane.b32.xlu1 %v7191_v10, %s5589_s12 }
 0x17d   : > { %v7203_v4 = vpop.permute.xlu0 %1598 }
 0x17e   : > { %9179 = vst [vmem:[#allocation29_spill] sm:$0xff] %v7203_v4  ;;  %2440 = vrot.lane.b32.xlu0 %v7199_v60, %s9181_s21  ;;  %v7210_v27 = vpop.permute.xlu1 %1620  ;;  %v1982_v60 = vrot.slane %v7221_v53, 1 }
 0x17f   : > { %9182 = vst [vmem:[#allocation31_spill] sm:$0xff] %v7210_v27 }
 0x180   : > { %2442 = vrot.lane.b32.xlu1 %v7206_v51, %s9181_s21 }
 0x181   : > { %v7214_v14 = vpop.permute.xlu0 %1602 }
 0x182   : > { %9183 = vst [vmem:[#allocation32_spill] sm:$0xff] %v7214_v14  ;;  %2488 = vrot.lane.b32.xlu0 %v7172_v21, %s9184_s20  ;;  %v7218_v62 = vpop.permute.xlu1 %1624  ;;  %v7242_v14 = vsel %vm391_vm0, %v1982_v60, %v1983_v50 }
 0x183   : > { %9185 = vst [vmem:[#allocation33_spill] sm:$0xff] %v7218_v62  ;;  %9188 = vst [vmem:[#allocation36_spill] sm:$0xff] %v7242_v14  ;;  %v2007_v62 = vrot.slane %v1295_v41, 2 }
 0x184   : > { %2156 = vrot.lane.b32.xlu1 %v6764_v58, %s5583_s23 }
 0x185   : > { %v7226_v33 = vpop.permute.xlu0 %1614 }
 0x186   : > { %2490 = vrot.lane.b32.xlu0 %v7221_v53, %s9184_s20  ;;  %v7230_v61 = vpop.permute.xlu1 %1628 }
 0x187   : > { %9187 = vst [vmem:[#allocation35_spill] sm:$0xff] %v7230_v61 }
 0x188   : > { %2536 = vrot.lane.b32.xlu1 %v7191_v10, %s5595_s18  ;;  %v2006_v10 = vrot.slane %v7221_v53, 2 }
 0x189   : > { %v7235_v21 = vpop.permute.xlu0 %1618 }
 0x18a   : > { %2158 = vrot.lane.b32.xlu0 %v6767_v6, %s5583_s23  ;;  %v7239_v58 = vpop.permute.xlu1 %1640  ;;  %v7262_v60 = vsel %vm416_vm1, %v2006_v10, %v2007_v62  ;;  %v7281_v10 = vld [vmem:[%s6160_s26 + $0x150] sm:$0xff] }
 0x18b   : > { %9193 = vst [vmem:[#allocation41_spill] sm:$0xff] %v7262_v60  ;;  %9196 = vst [vmem:[#allocation44_spill] sm:$0xff] %v7281_v10 }
 0x18c   : > { %2204 = vrot.lane.b32.xlu1 %v9156_v57, %s5584_s24 }
 0x18d   : > { %v7246_v61 = vpop.permute.xlu0 %1622 }
 0x18e   : > { %9189 = vst [vmem:[#allocation37_spill] sm:$0xff] %v7246_v61  ;;  %2538 = vrot.lane.b32.xlu0 %v7242_v14, %s5595_s18  ;;  %v7250_v44 = vpop.permute.xlu1 %1644 }
 0x18f   : > { %9190 = vst [vmem:[#allocation38_spill] sm:$0xff] %v7250_v44 }
 0x190   : > { %2584 = vrot.lane.b32.xlu1 %v7206_v51, %s5596_s13 }
 0x191   : > { %v7255_v50 = vpop.permute.xlu0 %1626 }
 0x192   : > { %9191 = vst [vmem:[#allocation39_spill] sm:$0xff] %v7255_v50  ;;  %2206 = vrot.lane.b32.xlu0 %v6674_v46, %s5584_s24  ;;  %v7259_v57 = vpop.permute.xlu1 %1648 }
 0x193   : > { %9192 = vst [vmem:[#allocation40_spill] sm:$0xff] %v7259_v57 }
 0x194   : > { %2252 = vrot.lane.b32.xlu1 %v6708_v2, %s5585_s25  ;;  %v1297_v2 = vld [vmem:[%s6160_s26 + $0x158] sm:$0x3] }
 0x195   : > { %v7266_v61 = vpop.permute.xlu0 %1638  ;;  %v1986_v50 = vrot.slane %v1297_v2, 1  ;;  %v2010_v4 = vrot.slane %v1297_v2, 2 }
 0x196   : > { %2586 = vrot.lane.b32.xlu0 %v7262_v60, %s5596_s13  ;;  %v7270_v41 = vpop.permute.xlu1 %1652 }
 0x197   : > { %9194 = vst [vmem:[#allocation42_spill] sm:$0xff] %v7270_v41  ;;  %v1985_v41 = vrot.slane %v7281_v10, 1 }
 0x198   : > { %2254 = vrot.lane.b32.xlu1 %v6740_v25, %s5585_s25 }
 0x199   : > { %v7274_v51 = vpop.permute.xlu0 %1642  ;;  %v7298_v57 = vsel %vm391_vm0, %v1985_v41, %v1986_v50 }
 0x19a   : > { %9195 = vst [vmem:[#allocation43_spill] sm:$0xff] %v7274_v51  ;;  %2300 = vrot.lane.b32.xlu0 %v6767_v6, %s9138_s19  ;;  %v7278_v46 = vpop.permute.xlu1 %1664  ;;  %9200 = vst [vmem:[#allocation48_spill] sm:$0xff] %v7298_v57  ;;  %v5489_v51 = vld [vmem:[%s6160_s26 + $0x70] sm:$0xff] }
 0x19c   : > { %2302 = vrot.lane.b32.xlu1 %v6770_v35, %s9138_s19 }
 0x19d   : > { %v7286_v62 = vpop.permute.xlu0 %1646 }
 0x19e   : > { %9197 = vst [vmem:[#allocation45_spill] sm:$0xff] %v7286_v62  ;;  %2348 = vrot.lane.b32.xlu0 %v7221_v53, %s5588_s10  ;;  %v7291_v25 = vpop.permute.xlu1 %1668  ;;  %v2009_v62 = vrot.slane %v7281_v10, 2 }
 0x19f   : > { %9198 = vst [vmem:[#allocation46_spill] sm:$0xff] %v7291_v25 }
 0x1a0   : > { %2350 = vrot.lane.b32.xlu1 %v7281_v10, %s5588_s10  ;;  %v7310_v25 = vsel %vm416_vm1, %v2009_v62, %v2010_v4  ;;  %v1299_v4 = vld [vmem:[%s6160_s26 + $0x168] sm:$0x3] }
 0x1a1   : > { %v7295_v6 = vpop.permute.xlu0 %1650  ;;  %9202 = vst [vmem:[#allocation50_spill] sm:$0xff] %v7310_v25 }
 0x1a2   : > { %9199 = vst [vmem:[#allocation47_spill] sm:$0xff] %v7295_v6  ;;  %2396 = vrot.lane.b32.xlu0 %v7242_v14, %s5589_s12  ;;  %v7303_v44 = vpop.permute.xlu1 %1672  ;;  %v7325_v14 = vld [vmem:[%s6160_s26 + $0x160] sm:$0xff] }
 0x1a3   : > { %9201 = vst [vmem:[#allocation49_spill] sm:$0xff] %v7303_v44 }
 0x1a4   : > { %2398 = vrot.lane.b32.xlu1 %v7298_v57, %s5589_s12 }
 0x1a5   : > { %v7307_v53 = vpop.permute.xlu0 %1662 }
 0x1a6   : > { %2444 = vrot.lane.b32.xlu0 %v7262_v60, %s9181_s21  ;;  %v7314_v50 = vpop.permute.xlu1 %1676 }
 0x1a7   : > { %9203 = vst [vmem:[#allocation51_spill] sm:$0xff] %v7314_v50  ;;  %v1988_v50 = vrot.slane %v7325_v14, 1 }
 0x1a8   : > { %2446 = vrot.lane.b32.xlu1 %v7310_v25, %s9181_s21 }
 0x1a9   : > { %v7318_v41 = vpop.permute.xlu0 %1666 }
 0x1aa   : > { %9204 = vst [vmem:[#allocation52_spill] sm:$0xff] %v7318_v41  ;;  %2492 = vrot.lane.b32.xlu0 %v7281_v10, %s9184_s20  ;;  %v7322_v2 = vpop.permute.xlu1 %1688  ;;  %v1989_v10 = vrot.slane %v1299_v4, 1  ;;  %v5487_v41 = vld [vmem:[%s6160_s26 + $0x30] sm:$0xff] }
 0x1ac   : > { %2160 = vrot.lane.b32.xlu1 %v6770_v35, %s5583_s23  ;;  %v7346_v44 = vsel %vm391_vm0, %v1988_v50, %v1989_v10  ;;  %v5486_v50 = vld [vmem:[%s6160_s26 + $0x10] sm:$0xff] }
 0x1ad   : > { %v7330_v62 = vpop.permute.xlu0 %1670  ;;  %9209 = vst [vmem:[#allocation57_spill] sm:$0xff] %v7346_v44 }
 0x1ae   : > { %9205 = vst [vmem:[#allocation53_spill] sm:$0xff] %v7330_v62  ;;  %2494 = vrot.lane.b32.xlu0 %v7325_v14, %s9184_s20  ;;  %v7334_v60 = vpop.permute.xlu1 %1692 }
 0x1af   : > { %9206 = vst [vmem:[#allocation54_spill] sm:$0xff] %v7334_v60  ;;  %v2013_v60 = vrot.slane %v1299_v4, 2  ;;  %v5488_v4 = vld [vmem:[%s6160_s26 + $0x50] sm:$0xff] }
 0x1b0   : > { %2540 = vrot.lane.b32.xlu1 %v7298_v57, %s5595_s18 }
 0x1b1   : > { %v7339_v6 = vpop.permute.xlu0 %1674 }
 0x1b2   : > { %9207 = vst [vmem:[#allocation55_spill] sm:$0xff] %v7339_v6  ;;  %2162 = vrot.lane.b32.xlu0 %v6773_v9, %s5583_s23  ;;  %v7343_v35 = vpop.permute.xlu1 %1696  ;;  %v2012_v6 = vrot.slane %v7325_v14, 2 }
 0x1b3   : > { %9208 = vst [vmem:[#allocation56_spill] sm:$0xff] %v7343_v35  ;;  %v5485_v35 = vld [vmem:[%s6160_s26] sm:$0xff] }
 0x1b4   : > { %2208 = vrot.lane.b32.xlu1 %v6685_v11, %s5584_s24  ;;  %v1734_v10 = vsel %vm649_vm4, %v5485_v35, %v6862_v63  ;;  %v1735_v11 = vsel %vm649_vm4, %v5486_v50, %v6889_v26  ;;  %v1741_v63 = vsel %vm649_vm4, %v5489_v51, %v6961_v20  ;;  %v5490_v35 = vld [vmem:[%s6160_s26 + $0x20] sm:$0xff] }
 0x1b5   : > { %v7350_v62 = vpop.permute.xlu0 %1686  ;;  %v1736_v26 = vsel %vm649_vm4, %v5490_v35, %v6972_v24  ;;  %v1743_v50 = vsel %vm658_vm2, %v1735_v11, %v6976_v40  ;;  %v5492_v20 = vld [vmem:[%s6160_s26 + $0x60] sm:$0xff]  ;;  %v1742_v11 = vsel %vm658_vm2, %v1734_v10, %v7001_v49 }
 0x1b6   : > { %2542 = vrot.lane.b32.xlu0 %v7346_v44, %s5595_s18  ;;  %v7354_v57 = vpop.permute.xlu1 %1700  ;;  %v1737_v44 = vsel %vm649_vm4, %v5487_v41, %v6913_v52  ;;  %v7382_v52 = vld [vmem:[%s6160_s26 + $0x170] sm:$0xff]  ;;  %v1301_v41 = vld [vmem:[%s6160_s26 + $0x178] sm:$0x3]  ;;  %v1740_v51 = vsel %vm649_vm4, %v5492_v20, %v6990_v43  ;;  %v7406_v43 = vsel %vm416_vm1, %v2012_v6, %v2013_v60 }
 0x1b7   : > { %9210 = vst [vmem:[#allocation58_spill] sm:$0xff] %v7354_v57  ;;  %v1739_v57 = vsel %vm649_vm4, %v5488_v4, %v6938_v47  ;;  %v1745_v4 = vsel %vm658_vm2, %v1737_v44, %v6986_v45  ;;  %v1744_v45 = vsel %vm658_vm2, %v1736_v26, %v7011_v28  ;;  %v1992_v49 = vrot.slane %v1301_v41, 1  ;;  %v9211_v26 = vld [vmem:[#allocation19_spill] sm:$0xff] }
 0x1b8   : > { %2588 = vrot.lane.b32.xlu1 %v7310_v25, %s5596_s13  ;;  %v5491_v25 = vld [vmem:[%s6160_s26 + $0x40] sm:$0xff]  ;;  %v1747_v24 = vsel %vm658_vm2, %v1739_v57, %v6997_v30  ;;  %v1751_v30 = vsel %vm667_vm5, %v1743_v50, %v7021_v34  ;;  %v1753_v28 = vsel %vm667_vm5, %v1745_v4, %v7041_v18  ;;  %v2015_v57 = vrot.slane %v7382_v52, 2 }
 0x1b9   : > { %v7379_v27 = vpop.permute.xlu0 %1690  ;;  %v1738_v47 = vsel %vm649_vm4, %v5491_v25, %v6980_v31  ;;  %v1749_v31 = vsel %vm658_vm2, %v1741_v63, %v7007_v56  ;;  %v2016_v60 = vrot.slane %v1301_v41, 2  ;;  %v1748_v34 = vsel %vm658_vm2, %v1740_v51, %v7048_v59  ;;  %v9213_v41 = vld [vmem:[#allocation10_spill] sm:$0xff] }
 0x1ba   : > { %2210 = vrot.lane.b32.xlu0 %v9157_v7, %s5584_s24  ;;  %v7397_v40 = vpop.permute.xlu1 %1712  ;;  %v1991_v7 = vrot.slane %v7382_v52, 1  ;;  %v1746_v56 = vsel %vm658_vm2, %v1738_v47, %v7030_v32  ;;  %v1750_v25 = vsel %vm667_vm5, %v1742_v11, %v7069_v29  ;;  %v1757_v18 = vsel %vm667_vm5, %v1749_v31, %v7074_v42  ;;  %v9216_v11 = vld [vmem:[#allocation31_spill] sm:$0xff] }
 0x1bb   : > { %v1752_v6 = vsel %vm667_vm5, %v1744_v45, %v7079_v12  ;;  %v1759_v59 = vsel %vm676_vm6, %v1751_v30, %v7083_v22  ;;  %v1754_v29 = vsel %vm667_vm5, %v1746_v56, %v7088_v38  ;;  %v1761_v10 = vsel %vm676_vm6, %v1753_v28, %v7092_v39  ;;  %v9217_v45 = vld [vmem:[#allocation43_spill] sm:$0xff]  ;;  %v9220_v28 = vld [vmem:[#allocation52_spill] sm:$0xff] }
 0x1bc   : > { %2256 = vrot.lane.b32.xlu1 %v6743_v5, %s5585_s25  ;;  %v1755_v5 = vsel %vm667_vm5, %v1747_v24, %v7062_v17  ;;  %v1758_v17 = vsel %vm676_vm6, %v1750_v25, %v7107_v48  ;;  %v7447_v42 = vsel %vm391_vm0, %v1991_v7, %v1992_v49  ;;  %v1756_v12 = vsel %vm667_vm5, %v1748_v34, %v7096_v13  ;;  %v9219_v49 = vld [vmem:[#allocation38_spill] sm:$0xff]  ;;  %v9221_v34 = vld [vmem:[#allocation23_spill] sm:$0xff] }
 0x1bd   : > { %v7417_v44 = vpop.permute.xlu0 %1694  ;;  %v1766_v63 = vsel %vm685_vm7, %v1758_v17, %v7139_v23  ;;  %v1767_v22 = vsel %vm685_vm7, %v1759_v59, %v7119_v55  ;;  %v7458_v39 = vsel %vm416_vm1, %v2015_v57, %v2016_v60  ;;  %v1765_v23 = vsel %vm676_vm6, %v1757_v18, %v7111_v19  ;;  %v9223_v18 = vld [vmem:[#allocation46_spill] sm:$0xff] }
 0x1be   : > { %2590 = vrot.lane.b32.xlu0 %v7406_v43, %s5596_s13  ;;  %v7428_v32 = vpop.permute.xlu1 %1716  ;;  %v1774_v38 = vsel %vm694_vm8, %v1766_v63, %v7177_v1  ;;  %v1775_v13 = vsel %vm694_vm8, %v1767_v22, %v7151_v54  ;;  %v1760_v35 = vsel %vm676_vm6, %v1752_v6, %v7115_v36  ;;  %v9225_v63 = vld [vmem:[#allocation37_spill] sm:$0xff]  ;;  %v9226_v22 = vld [vmem:[#allocation54_spill] sm:$0xff] }
 0x1bf   : > { %v1782_v55 = vsel %vm703_vm9, %v1774_v38, %v7226_v33  ;;  %v1783_v19 = vsel %vm703_vm9, %v1775_v13, %v7196_v0  ;;  %v1769_v33 = vsel %vm685_vm7, %v1761_v10, %v7127_v15  ;;  %v1764_v0 = vsel %vm676_vm6, %v1756_v12, %v9213_v41  ;;  %v9227_v13 = vld [vmem:[#allocation57_spill] sm:$0xff]  ;;  %v9233_v41 = vld [vmem:[#allocation40_spill] sm:$0xff] }
 0x1c0   : > { %2258 = vrot.lane.b32.xlu1 %v6748_v37, %s5585_s25  ;;  %v1763_v37 = vsel %vm676_vm6, %v1755_v5, %v7103_v3  ;;  %v1762_v3 = vsel %vm676_vm6, %v1754_v29, %v7123_v16  ;;  %v1790_v54 = vsel %vm712_vm10, %v1782_v55, %v7266_v61  ;;  %v1791_v50 = vsel %vm712_vm10, %v1783_v19, %v7239_v58  ;;  %v9212_v16 = vld [vmem:[#allocation13_spill] sm:$0xff]  ;;  %v9224_v29 = vld [vmem:[#allocation8_spill] sm:$0xff] }
 0x1c1   : > { %v7455_v48 = vpop.permute.xlu0 %1698  ;;  %v1798_v36 = vsel %vm1062_vm11, %v1790_v54, %v7307_v53  ;;  %v1799_v15 = vsel %vm1062_vm11, %v1791_v50, %v7278_v46  ;;  %v9214_v58 = vld [vmem:[#allocation21_spill] sm:$0xff]  ;;  %v9232_v50 = vld [vmem:[#allocation22_spill] sm:$0xff] }
 0x1c2   : > { %2304 = vrot.lane.b32.xlu0 %v6773_v9, %s9138_s19  ;;  %v7470_v1 = vpop.permute.xlu1 %1720  ;;  %v1768_v9 = vsel %vm685_vm7, %v1760_v35, %v9211_v26  ;;  %v1807_v47 = vsel %vm1806_vm13, %v1798_v36, %v7350_v62  ;;  %v1777_v20 = vsel %vm694_vm8, %v1769_v33, %v9214_v58  ;;  %v1808_v51 = vsel %vm1806_vm13, %v1799_v15, %v7322_v2  ;;  %v9215_v46 = vld [vmem:[#allocation17_spill] sm:$0xff]  ;;  %v9218_v2 = vld [vmem:[#allocation20_spill] sm:$0xff] }
 0x1c3   : > { %v1776_v61 = vsel %vm694_vm8, %v1768_v9, %v7188_v8  ;;  %v1771_v62 = vsel %vm685_vm7, %v1763_v37, %v9215_v46  ;;  %v1785_v31 = vsel %vm703_vm9, %v1777_v20, %v9216_v11  ;;  %v1770_v7 = vsel %vm685_vm7, %v1762_v3, %v9218_v2  ;;  %v9222_v5 = vld [vmem:[#allocation29_spill] sm:$0xff]  ;;  %v9242_v2 = vld [vmem:[#allocation47_spill] sm:$0xff] }
 0x1c4   : > { %2306 = vrot.lane.b32.xlu1 %v9212_v16, %s9138_s19  ;;  %v1784_v53 = vsel %vm703_vm9, %v1776_v61, %v7235_v21  ;;  %v1817_v21 = vsel %vm1815_vm14, %v1808_v51, %v7397_v40  ;;  %v1793_v56 = vsel %vm712_vm10, %v1785_v31, %v9219_v49  ;;  %v1779_v40 = vsel %vm694_vm8, %v1771_v62, %v9221_v34  ;;  %v9228_v35 = vld [vmem:[#allocation9_spill] sm:$0xff]  ;;  %v9239_v62 = vld [vmem:[#allocation56_spill] sm:$0xff] }
 0x1c5   : > { %v1711_v4 = vpop.permute.xlu0 %1710  ;;  %v1792_v30 = vsel %vm712_vm10, %v1784_v53, %v9217_v45  ;;  %v1778_v25 = vsel %vm694_vm8, %v1770_v7, %v9222_v5  ;;  %v1801_v6 = vsel %vm1062_vm11, %v1793_v56, %v9223_v18  ;;  %v9230_v19 = vld [vmem:[#allocation33_spill] sm:$0xff]  ;;  %v1772_v36 = vsel %vm685_vm7, %v1764_v0, %v9232_v50  ;;  %v9243_v56 = vld [vmem:[#allocation42_spill] sm:$0xff] }
 0x1c6   : > { %v1816_v24 = vsel %vm1815_vm14, %v1807_v47, %v1711_v4  ;;  %2352 = vrot.lane.b32.xlu0 %v7325_v14, %s5588_s10  ;;  %v7507_v8 = vpop.permute.xlu1 %1724  ;;  %v1800_v57 = vsel %vm1062_vm11, %v1792_v30, %v9220_v28  ;;  %v1786_v12 = vsel %vm703_vm9, %v1778_v25, %v9225_v63  ;;  %v1810_v38 = vsel %vm1806_vm13, %v1801_v6, %v9226_v22  ;;  %v9231_v33 = vld [vmem:[#allocation45_spill] sm:$0xff]  ;;  %v9240_v30 = vld [vmem:[#allocation6_spill] sm:$0xff] }
 0x1c7   : > { %4480 = vmatprep.mubr.msk.f32.mxu1 %vm1830_vm15, %v1816_v24  ;;  %v1809_v59 = vsel %vm1806_vm13, %v1800_v57, %v7379_v27  ;;  %v9229_v27 = vld [vmem:[#allocation18_spill] sm:$0xff]  ;;  %v1787_v54 = vsel %vm703_vm9, %v1779_v40, %v9230_v19  ;;  %v1794_v26 = vsel %vm712_vm10, %v1786_v12, %v9231_v33  ;;  %v1819_v9 = vsel %vm1815_vm14, %v1810_v38, %v7428_v32  ;;  %v9234_v15 = vld [vmem:[#allocation53_spill] sm:$0xff]  ;;  %v9236_v32 = vld [vmem:[#allocation32_spill] sm:$0xff] }
 0x1c8   : > { %v7524_v60 = vpop.f32.mrb[0].mxu0  ;;  %4481 = vmatmul.mubr.msk.f32.vlgmr.msra.gmra.mrb[2].mxu1 %vm1830_vm15, %v1817_v21  ;;  %2354 = vrot.lane.b32.xlu1 %v7382_v52, %s5588_s10  ;;  %v1773_v3 = vsel %vm685_vm7, %v1765_v23, %v9229_v27  ;;  %v1795_v61 = vsel %vm712_vm10, %v1787_v54, %v9233_v41  ;;  %v1802_v23 = vsel %vm1062_vm11, %v1794_v26, %v9234_v15  ;;  %v9235_v47 = vld [vmem:[#allocation25_spill] sm:$0xff]  ;;  %v9238_v24 = vld [vmem:[#allocation39_spill] sm:$0xff]  ;;  %v9246_v18 = vld [vmem:[#allocation58_spill] sm:$0xff] }
 0x1c9   : > { %v1715_v17 = vpop.permute.xlu0 %1714  ;;  %4610 = vmatpush3.bf16.msra.mxu1 %v9224_v29  ;;  %v4448_v10 = vpop.f32.mrb[1].mxu0  ;;  %v1781_v4 = vsel %vm694_vm8, %v1773_v3, %v9235_v47  ;;  %v1780_v58 = vsel %vm694_vm8, %v1772_v36, %v9236_v32  ;;  %v9237_v20 = vld [vmem:[#allocation49_spill] sm:$0xff]  ;;  %v1811_v53 = vsel %vm1806_vm13, %v1802_v23, %v7417_v44  ;;  %v9241_v21 = vld [vmem:[#allocation35_spill] sm:$0xff]  ;;  %v7638_v27 = vld [vmem:[%s6160_s26 + $0x100] sm:$0xff] }
 0x1ca   : > { %v1818_v37 = vsel %vm1815_vm14, %v1809_v59, %v1715_v17  ;;  %2400 = vrot.lane.b32.xlu0 %v9227_v13, %s5589_s12  ;;  %v7545_v55 = vpop.permute.xlu1 %2106  ;;  %4612 = vmatprep.subr.bf16.mxu1 %v9228_v35  ;;  %v1803_v0 = vsel %vm1062_vm11, %v1795_v61, %v9237_v20  ;;  %v1788_v46 = vsel %vm703_vm9, %v1780_v58, %v9238_v24  ;;  %v9244_v57 = vld [vmem:[#allocation55_spill] sm:$0xff]  ;;  %v1303_v10 = vld [vmem:[%s6160_s26 + $0x188] sm:$0x3]  ;;  %v9249_v41 = vld [vmem:[#allocation12_spill] sm:$0xff] }
 0x1cb   : > { %4483 = vmatprep.mubr.msk.f32.mxu1 %vm1830_vm15, %v1818_v37  ;;  %v1812_v11 = vsel %vm1806_vm13, %v1803_v0, %v9239_v62  ;;  %v1789_v44 = vsel %vm703_vm9, %v1781_v4, %v9241_v21  ;;  %v1796_v7 = vsel %vm712_vm10, %v1788_v46, %v9242_v2  ;;  %v9245_v40 = vld [vmem:[#allocation51_spill] sm:$0xff]  ;;  %v9247_v37 = vld [vmem:[#allocation14_spill] sm:$0xff]  ;;  %v2019_v33 = vrot.slane %v1303_v10, 2  ;;  %v9251_v20 = vld [vmem:[#allocation16_spill] sm:$0xff] }
 0x1cc   : > { %4484 = vmatmul.mubr.msk.f32.gmra.mrb[4].mxu1 %vm1830_vm15, %v1819_v9  ;;  %2402 = vrot.lane.b32.xlu1 %v7447_v42, %s5589_s12  ;;  %v1821_v49 = vsel %vm1815_vm14, %v1812_v11, %v7470_v1  ;;  %v1797_v28 = vsel %vm712_vm10, %v1789_v44, %v9243_v56  ;;  %v1804_v34 = vsel %vm1062_vm11, %v1796_v7, %v9244_v57  ;;  %v9248_v9 = vld [vmem:[#allocation7_spill] sm:$0xff]  ;;  %v7673_v32 = vld [vmem:[%s6160_s26 + $0x190] sm:$0xff] }
 0x1cd   : > { %v1719_v51 = vpop.permute.xlu0 %1718  ;;  %4614 = vmatpush3.bf16.msra.mxu1 %v9228_v35  ;;  %v1805_v5 = vsel %vm1062_vm11, %v1797_v28, %v9245_v40  ;;  %v1813_v1 = vsel %vm1806_vm13, %v1804_v34, %v7455_v48  ;;  %v7615_v48 = vld [vmem:[%s6160_s26 + $0x180] sm:$0xff]  ;;  %v9250_v23 = vld [vmem:[#allocation11_spill] sm:$0xff]  ;;  %v9252_v7 = vld [vmem:[#allocation26_spill] sm:$0xff] }
 0x1ce   : > { %v1820_v31 = vsel %vm1815_vm14, %v1811_v53, %v1719_v51  ;;  %2448 = vrot.lane.b32.xlu0 %v7406_v43, %s9181_s21  ;;  %v7582_v45 = vpop.permute.xlu1 %2110  ;;  %4616 = vmatprep.subr.bf16.mxu1 %v9240_v30  ;;  %v1814_v6 = vsel %vm1806_vm13, %v1805_v5, %v9246_v18  ;;  %v1994_v22 = vrot.slane %v7615_v48, 1  ;;  %v2018_v54 = vrot.slane %v7615_v48, 2  ;;  %v1305_v58 = vld [vmem:[%s6160_s26 + $0x198] sm:$0x3]  ;;  %v5494_v56 = vld [vmem:[%s6160_s26 + $0x90] sm:$0xff] }
 0x1cf   : > { %4486 = vmatprep.mubr.msk.f32.mxu1 %vm1830_vm15, %v1820_v31  ;;  %v1823_v29 = vsel %vm1815_vm14, %v1814_v6, %v7507_v8  ;;  %v1995_v8 = vrot.slane %v1303_v10, 1  ;;  %v1997_v53 = vrot.slane %v7673_v32, 1  ;;  %v1998_v51 = vrot.slane %v1305_v58, 1  ;;  %v9253_v18 = vld [vmem:[#allocation27_spill] sm:$0xff] }
 0x1d0   : > { %4487 = vmatmul.mubr.msk.f32.gmra.mrb[6].mxu1 %vm1830_vm15, %v1821_v49  ;;  %2450 = vrot.lane.b32.xlu1 %v7458_v39, %s9181_s21  ;;  %v7658_v36 = vsel %vm416_vm1, %v2018_v54, %v2019_v33  ;;  %v2021_v31 = vrot.slane %v7673_v32, 2 }
 0x1d1   : > { %v1723_v25 = vpop.permute.xlu0 %1722  ;;  %4618 = vmatpush3.bf16.msra.mxu1 %v9240_v30  ;;  %v7686_v62 = vsel %vm391_vm0, %v1997_v53, %v1998_v51  ;;  %v2022_v30 = vrot.slane %v1305_v58, 2  ;;  %v9255_v58 = vld [vmem:[#allocation30_spill] sm:$0xff]  ;;  %v9256_v51 = vld [vmem:[#allocation24_spill] sm:$0xff] }
 0x1d2   : > { %v1822_v59 = vsel %vm1815_vm14, %v1813_v1, %v1723_v25  ;;  %2496 = vrot.lane.b32.xlu0 %v7382_v52, %s9184_s20  ;;  %v7609_v17 = vpop.permute.xlu1 %2114 }
 0x1d3   : > { %4489 = vmatprep.mubr.msk.f32.mxu1 %vm1830_vm15, %v1822_v59  ;;  %v7700_v2 = vsel %vm416_vm1, %v2021_v31, %v2022_v30 }
 0x1d4   : > { %4490 = vmatmul.mubr.msk.f32.gmra.mrb[8].mxu1 %vm1830_vm15, %v1823_v29  ;;  %2164 = vrot.lane.b32.xlu1 %v9212_v16, %s5583_s23  ;;  %v7635_v16 = vsel %vm391_vm0, %v1994_v22, %v1995_v8  ;;  %v7720_v29 = vld [vmem:[%s6160_s26 + $0x1a0] sm:$0xff]  ;;  %v1307_v22 = vld [vmem:[%s6160_s26 + $0x1a8] sm:$0x3] }
 0x1d5   : > { %v2105_v63 = vpop.permute.xlu0 %2104 }
 0x1d6   : > { %2498 = vrot.lane.b32.xlu0 %v7615_v48, %s9184_s20  ;;  %v7623_v12 = vpop.permute.xlu1 %2118  ;;  %v2632_v28 = vsel %vm649_vm4, %v5494_v56, %v2105_v63  ;;  %v9254_v63 = vld [vmem:[#allocation28_spill] sm:$0xff] }
 0x1d8   : > { %2544 = vrot.lane.b32.xlu1 %v7447_v42, %s5595_s18 }
 0x1d9   : > { %v7628_v38 = vpop.permute.xlu0 %2108 }
 0x1da   : > { %2166 = vrot.lane.b32.xlu0 %v9247_v37, %s5583_s23  ;;  %v7632_v35 = vpop.permute.xlu1 %2154 }
 0x1dc   : > { %2212 = vrot.lane.b32.xlu1 %v7638_v27, %s5584_s24 }
 0x1dd   : > { %v7642_v3 = vpop.permute.xlu0 %2112 }
 0x1de   : > { %2546 = vrot.lane.b32.xlu0 %v7635_v16, %s5595_s18  ;;  %v7646_v19 = vpop.permute.xlu1 %2202 }
 0x1e0   : > { %2592 = vrot.lane.b32.xlu1 %v7458_v39, %s5596_s13 }
 0x1e1   : > { %v7651_v26 = vpop.permute.xlu0 %2116 }
 0x1e2   : > { %2214 = vrot.lane.b32.xlu0 %v9248_v9, %s5584_s24  ;;  %v7655_v50 = vpop.permute.xlu1 %2250  ;;  %v2026_v9 = vrot.slane %v7720_v29, 1 }
 0x1e4   : > { %2260 = vrot.lane.b32.xlu1 %v9249_v41, %s5585_s25 }
 0x1e5   : > { %v2153_v61 = vpop.permute.xlu0 %2152 }
 0x1e6   : > { %2594 = vrot.lane.b32.xlu0 %v7658_v36, %s5596_s13  ;;  %v7664_v15 = vpop.permute.xlu1 %2298  ;;  %v2648_v34 = vsel %vm658_vm2, %v2632_v28, %v2153_v61  ;;  %v2027_v61 = vrot.slane %v1307_v22, 1 }
 0x1e8   : > { %2262 = vrot.lane.b32.xlu1 %v9250_v23, %s5585_s25 }
 0x1e9   : > { %v2201_v47 = vpop.permute.xlu0 %2200 }
 0x1ea   : > { %2308 = vrot.lane.b32.xlu0 %v9247_v37, %s9138_s19  ;;  %v7670_v4 = vpop.permute.xlu1 %2346  ;;  %v2664_v40 = vsel %vm667_vm5, %v2648_v34, %v2201_v47 }
 0x1ec   : > { %2310 = vrot.lane.b32.xlu1 %v9251_v20, %s9138_s19 }
 0x1ed   : > { %v2249_v0 = vpop.permute.xlu0 %2248 }
 0x1ee   : > { %2356 = vrot.lane.b32.xlu0 %v7615_v48, %s5588_s10  ;;  %v7681_v24 = vpop.permute.xlu1 %2394  ;;  %v2680_v5 = vsel %vm676_vm6, %v2664_v40, %v2249_v0  ;;  %v7741_v0 = vsel %vm391_vm0, %v2026_v9, %v2027_v61  ;;  %v9257_v40 = vld [vmem:[#allocation34_spill] sm:$0xff] }
 0x1f0   : > { %2358 = vrot.lane.b32.xlu1 %v7673_v32, %s5588_s10 }
 0x1f1   : > { %v2297_v46 = vpop.permute.xlu0 %2296 }
 0x1f2   : > { %2404 = vrot.lane.b32.xlu0 %v7635_v16, %s5589_s12  ;;  %v7690_v11 = vpop.permute.xlu1 %2442  ;;  %v2696_v25 = vsel %vm685_vm7, %v2680_v5, %v2297_v46 }
 0x1f4   : > { %2406 = vrot.lane.b32.xlu1 %v7686_v62, %s5589_s12 }
 0x1f5   : > { %v2345_v21 = vpop.permute.xlu0 %2344 }
 0x1f6   : > { %2452 = vrot.lane.b32.xlu0 %v7658_v36, %s9181_s21  ;;  %v7697_v44 = vpop.permute.xlu1 %2156  ;;  %v2712_v59 = vsel %vm694_vm8, %v2696_v25, %v2345_v21  ;;  %v2029_v21 = vrot.slane %v7720_v29, 2 }
 0x1f8   : > { %2120 = vrot.lane.b32.xlu1 %v9252_v7, %s5582_s22  ;;  %v2030_v7 = vrot.slane %v1307_v22, 2 }
 0x1f9   : > { %v2393_v49 = vpop.permute.xlu0 %2392 }
 0x1fa   : > { %2454 = vrot.lane.b32.xlu0 %v7700_v2, %s9181_s21  ;;  %v2537_v57 = vpop.permute.xlu1 %2536  ;;  %v2728_v10 = vsel %vm703_vm9, %v2712_v59, %v2393_v49  ;;  %v5495_v49 = vld [vmem:[%s6160_s26 + $0xa0] sm:$0xff] }
 0x1fb   : > { %v2633_v56 = vsel %vm649_vm4, %v5495_v49, %v7545_v55 }
 0x1fc   : > { %2500 = vrot.lane.b32.xlu1 %v7673_v32, %s9184_s20  ;;  %v2649_v28 = vsel %vm658_vm2, %v2633_v56, %v7632_v35  ;;  %v9260_v56 = vmov 0.0  }
 0x1fd   : > { %v2441_v1 = vpop.permute.xlu0 %2440  ;;  %v2665_v34 = vsel %vm667_vm5, %v2649_v28, %v7646_v19  ;;  %3007 = vst.msk [vmem:[#allocation2 + $0x28] sm:$0x3] %vm3002_vm3, %v9260_v56  ;;  %3003 = vst.msk [vmem:[#allocation2 + $0x8] sm:$0x3] %vm3002_vm3, %v9260_v56 }
 0x1fe   : > { %2122 = vrot.lane.b32.xlu0 %v9253_v18, %s5582_s22  ;;  %v7716_v6 = vpop.permute.xlu1 %2204  ;;  %v2744_v8 = vsel %vm712_vm10, %v2728_v10, %v2441_v1  ;;  %v2681_v55 = vsel %vm676_vm6, %v2665_v34, %v7655_v50  ;;  %v7770_v1 = vsel %vm416_vm1, %v2029_v21, %v2030_v7  ;;  %v9258_v10 = vld [vmem:[#allocation36_spill] sm:$0xff]  ;;  %3005 = vst.msk [vmem:[#allocation2 + $0x18] sm:$0x3] %vm3002_vm3, %v9260_v56  ;;  %3009 = vst.msk [vmem:[#allocation2 + $0x38] sm:$0x3] %vm3002_vm3, %v9260_v56 }
 0x1ff   : > { %v2697_v35 = vsel %vm685_vm7, %v2681_v55, %v7664_v15  ;;  %3011 = vst.msk [vmem:[#allocation2 + $0x48] sm:$0x3] %vm3002_vm3, %v9260_v56  ;;  %3013 = vst.msk [vmem:[#allocation2 + $0x58] sm:$0x3] %vm3002_vm3, %v9260_v56 }
 0x200   : > { %2168 = vrot.lane.b32.xlu1 %v9254_v63, %s5583_s23  ;;  %v2713_v19 = vsel %vm694_vm8, %v2697_v35, %v7670_v4  ;;  %v1308_v4 = vld [vmem:[%s6160_s26 + $0x1b0] sm:$0xff]  ;;  %v1309_v63 = vld [vmem:[%s6160_s26 + $0x1b8] sm:$0x3]  ;;  %3015 = vst.msk [vmem:[#allocation2 + $0x68] sm:$0x3] %vm3002_vm3, %v9260_v56 }
 0x201   : > { %v2489_v37 = vpop.permute.xlu0 %2488  ;;  %v2729_v59 = vsel %vm703_vm9, %v2713_v19, %v7681_v24  ;;  %v2049_v9 = vrot.slane %v1309_v63, 1  ;;  %v2073_v21 = vrot.slane %v1309_v63, 2  ;;  %3017 = vst.msk [vmem:[#allocation2 + $0x78] sm:$0x3] %vm3002_vm3, %v9260_v56  ;;  %3019 = vst.msk [vmem:[#allocation2 + $0x88] sm:$0x3] %vm3002_vm3, %v9260_v56 }
 0x202   : > { %v2760_v54 = vsel %vm1062_vm11, %v2744_v8, %v2489_v37  ;;  %2502 = vrot.lane.b32.xlu0 %v7720_v29, %s9184_s20  ;;  %v2585_v33 = vpop.permute.xlu1 %2584  ;;  %v2745_v15 = vsel %vm712_vm10, %v2729_v59, %v7690_v11  ;;  %v1311_v11 = vld [vmem:[%s6160_s26 + $0x1c8] sm:$0x3]  ;;  %3021 = vst.msk [vmem:[#allocation2 + $0x98] sm:$0x3] %vm3002_vm3, %v9260_v56  ;;  %3023 = vst.msk [vmem:[#allocation2 + $0xa8] sm:$0x3] %vm3002_vm3, %v9260_v56 }
 0x203   : > { %v2776_v41 = vsel %vm1806_vm13, %v2760_v54, %v2537_v57  ;;  %v7800_v54 = vld [vmem:[%s6160_s26 + $0x1c0] sm:$0xff]  ;;  %3025 = vst.msk [vmem:[#allocation2 + $0xb8] sm:$0x3] %vm3002_vm3, %v9260_v56  ;;  %3027 = vst.msk [vmem:[#allocation2 + $0xc8] sm:$0x3] %vm3002_vm3, %v9260_v56  ;;  %v5496_v35 = vld [vmem:[%s6160_s26 + $0xb0] sm:$0xff] }
 0x204   : > { %v2792_v23 = vsel %vm1815_vm14, %v2776_v41, %v2585_v33  ;;  %2548 = vrot.lane.b32.xlu1 %v7686_v62, %s5595_s18  ;;  %v2048_v33 = vrot.slane %v1308_v4, 1  ;;  %v9259_v41 = vld [vmem:[#allocation41_spill] sm:$0xff]  ;;  %3029 = vst.msk [vmem:[#allocation2 + $0xd8] sm:$0x3] %vm3002_vm3, %v9260_v56  ;;  %3031 = vst.msk [vmem:[#allocation2 + $0xe8] sm:$0x3] %vm3002_vm3, %v9260_v56  ;;  %v2634_v19 = vsel %vm649_vm4, %v5496_v35, %v7628_v38 }
 0x205   : > { %v2491_v47 = vpop.permute.xlu0 %2490  ;;  %4504 = vmatprep.mubr.msk.f32.mxu1 %vm1830_vm15, %v2792_v23  ;;  %v2051_v23 = vrot.slane %v7800_v54, 1  ;;  %3033 = vst.msk [vmem:[#allocation2 + $0xf8] sm:$0x3] %vm3002_vm3, %v9260_v56  ;;  %3035 = vst.msk [vmem:[#allocation2 + $0x108] sm:$0x3] %vm3002_vm3, %v9260_v56  ;;  %v9263_v35 = vld [vmem:[#allocation44_spill] sm:$0xff] }
 0x206   : > { %2170 = vrot.lane.b32.xlu0 %v9255_v58, %s5583_s23  ;;  %v7738_v20 = vpop.permute.xlu1 %2252  ;;  %3037 = vst.msk [vmem:[#allocation2 + $0x118] sm:$0x3] %vm3002_vm3, %v9260_v56  ;;  %3039 = vst.msk [vmem:[#allocation2 + $0x128] sm:$0x3] %vm3002_vm3, %v9260_v56 }
 0x207   : > { %3041 = vst.msk [vmem:[#allocation2 + $0x138] sm:$0x3] %vm3002_vm3, %v9260_v56  ;;  %3043 = vst.msk [vmem:[#allocation2 + $0x148] sm:$0x3] %vm3002_vm3, %v9260_v56 }
 0x208   : > { %v7743_v53 = vpop.f32.mrb[0].mxu1  ;;  %2216 = vrot.lane.b32.xlu1 %v9256_v51, %s5584_s24  ;;  %3045 = vst.msk [vmem:[#allocation2 + $0x158] sm:$0x3] %vm3002_vm3, %v9260_v56  ;;  %3047 = vst.msk [vmem:[#allocation2 + $0x168] sm:$0x3] %vm3002_vm3, %v9260_v56 }
 0x209   : > { %v7747_v46 = vpop.permute.xlu0 %2158  ;;  %v4467_v31 = vpop.f32.mrb[1].mxu1  ;;  %3049 = vst.msk [vmem:[#allocation2 + $0x178] sm:$0x3] %vm3002_vm3, %v9260_v56  ;;  %3051 = vst.msk [vmem:[#allocation2 + $0x188] sm:$0x3] %vm3002_vm3, %v9260_v56 }
 0x20a   : > { %2550 = vrot.lane.b32.xlu0 %v7741_v0, %s5595_s18  ;;  %v7751_v30 = vpop.permute.xlu1 %2254  ;;  %v2050_v31 = vsel %vm391_vm0, %v2048_v33, %v2049_v9  ;;  %3053 = vst.msk [vmem:[#allocation2 + $0x198] sm:$0x3] %vm3002_vm3, %v9260_v56  ;;  %3055 = vst.msk [vmem:[#allocation2 + $0x1a8] sm:$0x3] %vm3002_vm3, %v9260_v56 }
 0x20c   : > { %2596 = vrot.lane.b32.xlu1 %v7700_v2, %s5596_s13 }
 0x20d   : > { %v2539_v57 = vpop.permute.xlu0 %2538 }
 0x20e   : > { %2218 = vrot.lane.b32.xlu0 %v9257_v40, %s5584_s24  ;;  %v7765_v5 = vpop.permute.xlu1 %2302  ;;  %v2076_v40 = vrot.slane %v1311_v11, 2 }
 0x210   : > { %2264 = vrot.lane.b32.xlu1 %v9253_v18, %s5585_s25  ;;  %v2761_v18 = vsel %vm1062_vm11, %v2745_v15, %v2491_v47  ;;  %v2052_v47 = vrot.slane %v1311_v11, 1  ;;  %v2650_v15 = vsel %vm658_vm2, %v2634_v19, %v7697_v44  ;;  %v9261_v11 = vld [vmem:[#allocation48_spill] sm:$0xff] }
 0x211   : > { %v7778_v25 = vpop.permute.xlu0 %2206  ;;  %v2777_v22 = vsel %vm1806_vm13, %v2761_v18, %v2539_v57  ;;  %v2075_v57 = vrot.slane %v7800_v54, 2 }
 0x212   : > { %2598 = vrot.lane.b32.xlu0 %v7770_v1, %s5596_s13  ;;  %v7784_v50 = vpop.permute.xlu1 %2350  ;;  %v7814_v49 = vsel %vm391_vm0, %v2051_v23, %v2052_v47  ;;  %v1313_v47 = vld [vmem:[%s6160_s26 + $0x1d8] sm:$0x3] }
 0x213   : > { %v2077_v18 = vsel %vm416_vm1, %v2075_v57, %v2076_v40  ;;  %v2055_v57 = vrot.slane %v1313_v47, 1  ;;  %v9262_v40 = vld [vmem:[#allocation50_spill] sm:$0xff] }
 0x214   : > { %2266 = vrot.lane.b32.xlu1 %v9258_v10, %s5585_s25 }
 0x215   : > { %v2587_v8 = vpop.permute.xlu0 %2586 }
 0x216   : > { %v2793_v24 = vsel %vm1815_vm14, %v2777_v22, %v2587_v8  ;;  %2312 = vrot.lane.b32.xlu0 %v9255_v58, %s9138_s19  ;;  %v7797_v37 = vpop.permute.xlu1 %2398  ;;  %v2072_v58 = vrot.slane %v1308_v4, 2 }
 0x217   : > { %4505 = vmatmul.mubr.msk.f32.vlgmr.msra.gmra.mrb[10].mxu1 %vm1830_vm15, %v2793_v24 }
 0x218   : > { %2314 = vrot.lane.b32.xlu1 %v9259_v41, %s9138_s19  ;;  %v2074_v34 = vsel %vm416_vm1, %v2072_v58, %v2073_v21 }
 0x219   : > { %v2301_v61 = vpop.permute.xlu0 %2300 }
 0x21a   : > { %2360 = vrot.lane.b32.xlu0 %v1308_v4, %s5588_s10  ;;  %v7808_v51 = vpop.permute.xlu1 %2446  ;;  %v2666_v4 = vsel %vm667_vm5, %v2650_v15, %v7716_v6  ;;  %v2079_v15 = vrot.slane %v1313_v47, 2 }
 0x21b   : > { %v2682_v63 = vsel %vm676_vm6, %v2666_v4, %v7738_v20 }
 0x21c   : > { %2362 = vrot.lane.b32.xlu1 %v7800_v54, %s5588_s10  ;;  %v2698_v38 = vsel %vm685_vm7, %v2682_v63, %v2301_v61  ;;  %v1312_v61 = vld [vmem:[%s6160_s26 + $0x1d0] sm:$0xff] }
 0x21d   : > { %v2349_v7 = vpop.permute.xlu0 %2348  ;;  %v2054_v56 = vrot.slane %v1312_v61, 1 }
 0x21e   : > { %2408 = vrot.lane.b32.xlu0 %v2050_v31, %s5589_s12  ;;  %v7871_v28 = vpop.permute.xlu1 %2160  ;;  %v2714_v44 = vsel %vm694_vm8, %v2698_v38, %v2349_v7 }
 0x220   : > { %2410 = vrot.lane.b32.xlu1 %v7814_v49, %s5589_s12 }
 0x221   : > { %v2397_v55 = vpop.permute.xlu0 %2396 }
 0x222   : > { %2456 = vrot.lane.b32.xlu0 %v2074_v34, %s9181_s21  ;;  %v2541_v59 = vpop.permute.xlu1 %2540  ;;  %v2730_v6 = vsel %vm703_vm9, %v2714_v44, %v2397_v55 }
 0x224   : > { %2124 = vrot.lane.b32.xlu1 %v9258_v10, %s5582_s22 }
 0x225   : > { %v2445_v22 = vpop.permute.xlu0 %2444 }
 0x226   : > { %2458 = vrot.lane.b32.xlu0 %v2077_v18, %s9181_s21  ;;  %v7892_v8 = vpop.permute.xlu1 %2208  ;;  %v2746_v10 = vsel %vm712_vm10, %v2730_v6, %v2445_v22 }
 0x228   : > { %2504 = vrot.lane.b32.xlu1 %v7800_v54, %s9184_s20  ;;  %v5497_v54 = vld [vmem:[%s6160_s26 + $0xc0] sm:$0xff] }
 0x229   : > { %v2493_v24 = vpop.permute.xlu0 %2492  ;;  %v2635_v31 = vsel %vm649_vm4, %v5497_v54, %v7582_v45 }
 0x22a   : > { %v2762_v20 = vsel %vm1062_vm11, %v2746_v10, %v2493_v24  ;;  %2126 = vrot.lane.b32.xlu0 %v9261_v11, %s5582_s22  ;;  %v2589_v33 = vpop.permute.xlu1 %2588  ;;  %v2651_v7 = vsel %vm658_vm2, %v2635_v31, %v7747_v46  ;;  %v2056_v46 = vsel %vm391_vm0, %v2054_v56, %v2055_v57  ;;  %v1314_v10 = vld [vmem:[%s6160_s26 + $0x1e0] sm:$0xff]  ;;  %v1315_v24 = vld [vmem:[%s6160_s26 + $0x1e8] sm:$0x3] }
 0x22b   : > { %v2778_v9 = vsel %vm1806_vm13, %v2762_v20, %v2541_v59  ;;  %v2667_v34 = vsel %vm667_vm5, %v2651_v7, %v7778_v25  ;;  %v2078_v59 = vrot.slane %v1312_v61, 2  ;;  %v2081_v56 = vrot.slane %v1314_v10, 2 }
 0x22c   : > { %v2794_v23 = vsel %vm1815_vm14, %v2778_v9, %v2589_v33  ;;  %2172 = vrot.lane.b32.xlu1 %v9259_v41, %s5583_s23  ;;  %v2683_v55 = vsel %vm676_vm6, %v2667_v34, %v7751_v30  ;;  %v2058_v33 = vrot.slane %v1315_v24, 1  ;;  %v2082_v57 = vrot.slane %v1315_v24, 2 }
 0x22d   : > { %v2495_v58 = vpop.permute.xlu0 %2494  ;;  %4507 = vmatprep.mubr.msk.f32.mxu1 %vm1830_vm15, %v2794_v23  ;;  %v2699_v25 = vsel %vm685_vm7, %v2683_v55, %v7765_v5 }
 0x22e   : > { %2506 = vrot.lane.b32.xlu0 %v1312_v61, %s9184_s20  ;;  %v2257_v21 = vpop.permute.xlu1 %2256  ;;  %v2715_v30 = vsel %vm694_vm8, %v2699_v25, %v7784_v50 }
 0x22f   : > { %v2731_v63 = vsel %vm703_vm9, %v2715_v30, %v7797_v37 }
 0x230   : > { %2552 = vrot.lane.b32.xlu1 %v7814_v49, %s5595_s18  ;;  %v2747_v22 = vsel %vm712_vm10, %v2731_v63, %v7808_v51 }
 0x231   : > { %v7919_v41 = vpop.permute.xlu0 %2162  ;;  %v2763_v38 = vsel %vm1062_vm11, %v2747_v22, %v2495_v58  ;;  %v5498_v58 = vld [vmem:[%s6160_s26 + $0xd0] sm:$0xff] }
 0x232   : > { %2174 = vrot.lane.b32.xlu0 %v9262_v40, %s5583_s23  ;;  %v7923_v45 = vpop.permute.xlu1 %2258  ;;  %v2636_v54 = vsel %vm649_vm4, %v5498_v58, %v7642_v3 }
 0x233   : > { %v2652_v7 = vsel %vm658_vm2, %v2636_v54, %v7871_v28  ;;  %v2083_v28 = vsel %vm416_vm1, %v2081_v56, %v2082_v57 }
 0x234   : > { %2220 = vrot.lane.b32.xlu1 %v9263_v35, %s5584_s24 }
 0x235   : > { %v2543_v19 = vpop.permute.xlu0 %2542 }
 0x236   : > { %2554 = vrot.lane.b32.xlu0 %v2056_v46, %s5595_s18  ;;  %v7933_v49 = vpop.permute.xlu1 %2306  ;;  %v2779_v50 = vsel %vm1806_vm13, %v2763_v38, %v2543_v19  ;;  %v1316_v38 = vld [vmem:[%s6160_s26 + $0x1f0] sm:$0xff] }
 0x238   : > { %2600 = vrot.lane.b32.xlu1 %v2077_v18, %s5596_s13  ;;  %v2080_v18 = vsel %vm416_vm1, %v2078_v59, %v2079_v15 }
 0x239   : > { %v7938_v4 = vpop.permute.xlu0 %2210 }
 0x23a   : > { %2222 = vrot.lane.b32.xlu0 %v7325_v14, %s5584_s24  ;;  %v7944_v5 = vpop.permute.xlu1 %2354 }
 0x23c   : > { %2268 = vrot.lane.b32.xlu1 %v9261_v11, %s5585_s25  ;;  %v2057_v11 = vrot.slane %v1314_v10, 1 }
 0x23d   : > { %v2591_v37 = vpop.permute.xlu0 %2590 }
 0x23e   : > { %v2795_v44 = vsel %vm1815_vm14, %v2779_v50, %v2591_v37  ;;  %2602 = vrot.lane.b32.xlu0 %v2080_v18, %s5596_s13  ;;  %v7955_v14 = vpop.permute.xlu1 %2402  ;;  %v2059_v47 = vsel %vm391_vm0, %v2057_v11, %v2058_v33  ;;  %v1317_v37 = vld [vmem:[%s6160_s26 + $0x1f8] sm:$0x3] }
 0x23f   : > { %4508 = vmatmul.mubr.msk.f32.gmra.mrb[12].mxu1 %vm1830_vm15, %v2795_v44  ;;  %v2061_v24 = vrot.slane %v1317_v37, 1  ;;  %v2085_v58 = vrot.slane %v1317_v37, 2 }
 0x240   : > { %2270 = vrot.lane.b32.xlu1 %v9227_v13, %s5585_s25 }
 0x241   : > { %v2305_v51 = vpop.permute.xlu0 %2304 }
 0x242   : > { %2316 = vrot.lane.b32.xlu0 %v9262_v40, %s9138_s19  ;;  %v7962_v6 = vpop.permute.xlu1 %2450 }
 0x244   : > { %2318 = vrot.lane.b32.xlu1 %v7406_v43, %s9138_s19 }
 0x245   : > { %v2353_v20 = vpop.permute.xlu0 %2352 }
 0x246   : > { %2364 = vrot.lane.b32.xlu0 %v1312_v61, %s5588_s10  ;;  %v7969_v9 = vpop.permute.xlu1 %2164  ;;  %v2668_v61 = vsel %vm667_vm5, %v2652_v7, %v7892_v8 }
 0x247   : > { %v2684_v34 = vsel %vm676_vm6, %v2668_v61, %v2257_v21  ;;  %v1318_v61 = vld [vmem:[%s6160_s26 + $0x200] sm:$0xff] }
 0x248   : > { %2366 = vrot.lane.b32.xlu1 %v1314_v10, %s5588_s10  ;;  %v2700_v55 = vsel %vm685_vm7, %v2684_v34, %v2305_v51  ;;  %v1319_v34 = vld [vmem:[%s6160_s26 + $0x208] sm:$0x3] }
 0x249   : > { %v2401_v23 = vpop.permute.xlu0 %2400 }
 0x24a   : > { %2412 = vrot.lane.b32.xlu0 %v2056_v46, %s5589_s12  ;;  %v2545_v31 = vpop.permute.xlu1 %2544  ;;  %v2716_v46 = vsel %vm694_vm8, %v2700_v55, %v2353_v20 }
 0x24b   : > { %v2732_v35 = vsel %vm703_vm9, %v2716_v46, %v2401_v23  ;;  %v2063_v46 = vrot.slane %v1318_v61, 1 }
 0x24c   : > { %2414 = vrot.lane.b32.xlu1 %v2059_v47, %s5589_s12 }
 0x24d   : > { %v2449_v40 = vpop.permute.xlu0 %2448 }
 0x24e   : > { %2460 = vrot.lane.b32.xlu0 %v2080_v18, %s9181_s21  ;;  %v7985_v3 = vpop.permute.xlu1 %2212  ;;  %v2748_v8 = vsel %vm712_vm10, %v2732_v35, %v2449_v40  ;;  %v5500_v40 = vld [vmem:[%s6160_s26 + $0xf0] sm:$0xff] }
 0x250   : > { %2128 = vrot.lane.b32.xlu1 %v9227_v13, %s5582_s22  ;;  %v5499_v13 = vld [vmem:[%s6160_s26 + $0xe0] sm:$0xff] }
 0x251   : > { %v2497_v21 = vpop.permute.xlu0 %2496  ;;  %v2637_v63 = vsel %vm649_vm4, %v5499_v13, %v7609_v17  ;;  %v2088_v13 = vrot.slane %v1319_v34, 2 }
 0x252   : > { %v2764_v19 = vsel %vm1062_vm11, %v2748_v8, %v2497_v21  ;;  %2462 = vrot.lane.b32.xlu0 %v2083_v28, %s9181_s21  ;;  %v2593_v25 = vpop.permute.xlu1 %2592  ;;  %v2653_v18 = vsel %vm658_vm2, %v2637_v63, %v7919_v41 }
 0x253   : > { %v2780_v59 = vsel %vm1806_vm13, %v2764_v19, %v2545_v31  ;;  %v2669_v50 = vsel %vm667_vm5, %v2653_v18, %v7938_v4 }
 0x254   : > { %v2796_v15 = vsel %vm1815_vm14, %v2780_v59, %v2593_v25  ;;  %2508 = vrot.lane.b32.xlu1 %v1314_v10, %s9184_s20  ;;  %v2685_v51 = vsel %vm676_vm6, %v2669_v50, %v7923_v45  ;;  %v2060_v10 = vrot.slane %v1316_v38, 1 }
 0x255   : > { %v2499_v30 = vpop.permute.xlu0 %2498  ;;  %4510 = vmatprep.mubr.msk.f32.mxu1 %vm1830_vm15, %v2796_v15  ;;  %v2701_v4 = vsel %vm685_vm7, %v2685_v51, %v7933_v49 }
 0x256   : > { %2130 = vrot.lane.b32.xlu0 %v7447_v42, %s5582_s22  ;;  %v2261_v22 = vpop.permute.xlu1 %2260  ;;  %v2062_v20 = vsel %vm391_vm0, %v2060_v10, %v2061_v24  ;;  %v2717_v45 = vsel %vm694_vm8, %v2701_v4, %v7944_v5 }
 0x257   : > { %v2733_v33 = vsel %vm703_vm9, %v2717_v45, %v7955_v14 }
 0x258   : > { %2176 = vrot.lane.b32.xlu1 %v7406_v43, %s5583_s23  ;;  %v2749_v23 = vsel %vm712_vm10, %v2733_v33, %v7962_v6  ;;  %v1321_v33 = vld [vmem:[%s6160_s26 + $0x218] sm:$0x3] }
 0x259   : > { %v8012_v44 = vpop.permute.xlu0 %2166  ;;  %v2765_v54 = vsel %vm1062_vm11, %v2749_v23, %v2499_v30  ;;  %v2087_v30 = vrot.slane %v1318_v61, 2 }
 0x25a   : > { %2510 = vrot.lane.b32.xlu0 %v1316_v38, %s9184_s20  ;;  %v8015_v17 = vpop.permute.xlu1 %2262 }
 0x25c   : > { %2556 = vrot.lane.b32.xlu1 %v2059_v47, %s5595_s18  ;;  %v2084_v47 = vrot.slane %v1316_v38, 2 }
 0x25d   : > { %v2547_v41 = vpop.permute.xlu0 %2546 }
 0x25e   : > { %2178 = vrot.lane.b32.xlu0 %v7458_v39, %s5583_s23  ;;  %v8024_v43 = vpop.permute.xlu1 %2310  ;;  %v2086_v6 = vsel %vm416_vm1, %v2084_v47, %v2085_v58  ;;  %v2067_v58 = vrot.slane %v1321_v33, 1 }
 0x260   : > { %2224 = vrot.lane.b32.xlu1 %v7382_v52, %s5584_s24  ;;  %v2781_v52 = vsel %vm1806_vm13, %v2765_v54, %v2547_v41  ;;  %v2639_v41 = vsel %vm649_vm4, %v7638_v27, %v7623_v12 }
 0x261   : > { %v8031_v11 = vpop.permute.xlu0 %2214  ;;  %v2655_v4 = vsel %vm658_vm2, %v2639_v41, %v8012_v44 }
 0x262   : > { %2558 = vrot.lane.b32.xlu0 %v2062_v20, %s5595_s18  ;;  %v8036_v49 = vpop.permute.xlu1 %2358  ;;  %v2671_v45 = vsel %vm667_vm5, %v2655_v4, %v8031_v11 }
 0x263   : > { %v2687_v27 = vsel %vm676_vm6, %v2671_v45, %v8015_v17 }
 0x264   : > { %2604 = vrot.lane.b32.xlu1 %v2083_v28, %s5596_s13  ;;  %v2064_v28 = vrot.slane %v1319_v34, 1  ;;  %v2703_v11 = vsel %vm685_vm7, %v2687_v27, %v8024_v43 }
 0x265   : > { %v2595_v5 = vpop.permute.xlu0 %2594  ;;  %v2719_v17 = vsel %vm694_vm8, %v2703_v11, %v8036_v49 }
 0x266   : > { %v2797_v14 = vsel %vm1815_vm14, %v2781_v52, %v2595_v5  ;;  %2226 = vrot.lane.b32.xlu0 %v7615_v48, %s5584_s24  ;;  %v8046_v31 = vpop.permute.xlu1 %2406  ;;  %v2065_v25 = vsel %vm391_vm0, %v2063_v46, %v2064_v28  ;;  %v1322_v46 = vld [vmem:[%s6160_s26 + $0x220] sm:$0xff] }
 0x267   : > { %4511 = vmatmul.mubr.msk.f32.gmra.mrb[14].mxu1 %vm1830_vm15, %v2797_v14  ;;  %v2735_v5 = vsel %vm703_vm9, %v2719_v17, %v8046_v31  ;;  %v5501_v28 = vld [vmem:[%s6160_s26 + $0x120] sm:$0xff] }
 0x268   : > { %2272 = vrot.lane.b32.xlu1 %v7447_v42, %s5585_s25  ;;  %v2638_v42 = vsel %vm649_vm4, %v5500_v40, %v7651_v26 }
 0x269   : > { %v2309_v7 = vpop.permute.xlu0 %2308  ;;  %v2654_v35 = vsel %vm658_vm2, %v2638_v42, %v7969_v9 }
 0x26a   : > { %2606 = vrot.lane.b32.xlu0 %v2086_v6, %s5596_s13  ;;  %v8053_v56 = vpop.permute.xlu1 %2120 }
 0x26c   : > { %2274 = vrot.lane.b32.xlu1 %v7635_v16, %s5585_s25 }
 0x26d   : > { %v2357_v57 = vpop.permute.xlu0 %2356 }
 0x26e   : > { %2320 = vrot.lane.b32.xlu0 %v7458_v39, %s9138_s19  ;;  %v2501_v48 = vpop.permute.xlu1 %2500  ;;  %v2670_v39 = vsel %vm667_vm5, %v2654_v35, %v7985_v3  ;;  %v2640_v35 = vsel %vm649_vm4, %v5501_v28, %v8053_v56 }
 0x26f   : > { %v2686_v21 = vsel %vm676_vm6, %v2670_v39, %v2261_v22 }
 0x270   : > { %2322 = vrot.lane.b32.xlu1 %v7658_v36, %s9138_s19  ;;  %v2702_v19 = vsel %vm685_vm7, %v2686_v21, %v2309_v7  ;;  %v2091_v7 = vrot.slane %v1321_v33, 2 }
 0x271   : > { %v2405_v55 = vpop.permute.xlu0 %2404  ;;  %v2718_v59 = vsel %vm694_vm8, %v2702_v19, %v2357_v57 }
 0x272   : > { %2368 = vrot.lane.b32.xlu0 %v1316_v38, %s5588_s10  ;;  %v8069_v8 = vpop.permute.xlu1 %2168  ;;  %v2734_v15 = vsel %vm703_vm9, %v2718_v59, %v2405_v55  ;;  %v2089_v38 = vsel %vm416_vm1, %v2087_v30, %v2088_v13 }
 0x274   : > { %2370 = vrot.lane.b32.xlu1 %v1318_v61, %s5588_s10 }
 0x275   : > { %v2453_v26 = vpop.permute.xlu0 %2452 }
 0x276   : > { %2416 = vrot.lane.b32.xlu0 %v2062_v20, %s5589_s12  ;;  %v2549_v9 = vpop.permute.xlu1 %2548  ;;  %v2750_v3 = vsel %vm712_vm10, %v2734_v15, %v2453_v26  ;;  %v1320_v20 = vld [vmem:[%s6160_s26 + $0x210] sm:$0xff] }
 0x277   : > { %v2766_v18 = vsel %vm1062_vm11, %v2750_v3, %v2501_v48  ;;  %v2066_v47 = vrot.slane %v1320_v20, 1  ;;  %v2093_v3 = vrot.slane %v1322_v46, 2 }
 0x278   : > { %2418 = vrot.lane.b32.xlu1 %v2065_v25, %s5589_s12  ;;  %v2782_v37 = vsel %vm1806_vm13, %v2766_v18, %v2549_v9 }
 0x279   : > { %v2455_v63 = vpop.permute.xlu0 %2454  ;;  %v2068_v54 = vsel %vm391_vm0, %v2066_v47, %v2067_v58  ;;  %v1324_v47 = vld [vmem:[%s6160_s26 + $0x230] sm:$0xff]  ;;  %v1325_v58 = vld [vmem:[%s6160_s26 + $0x238] sm:$0x3] }
 0x27a   : > { %2464 = vrot.lane.b32.xlu0 %v2086_v6, %s9181_s21  ;;  %v8083_v22 = vpop.permute.xlu1 %2216  ;;  %v2751_v14 = vsel %vm712_vm10, %v2735_v5, %v2455_v63  ;;  %v2090_v6 = vrot.slane %v1320_v20, 2 }
 0x27c   : > { %2132 = vrot.lane.b32.xlu1 %v7635_v16, %s5582_s22 }
 0x27d   : > { %v8089_v50 = vpop.permute.xlu0 %2122 }
 0x27e   : > { %2466 = vrot.lane.b32.xlu0 %v2089_v38, %s9181_s21  ;;  %v2597_v51 = vpop.permute.xlu1 %2596 }
 0x27f   : > { %v2798_v10 = vsel %vm1815_vm14, %v2782_v37, %v2597_v51 }
 0x280   : > { %2512 = vrot.lane.b32.xlu1 %v1318_v61, %s9184_s20  ;;  %4513 = vmatprep.mubr.msk.f32.mxu1 %vm1830_vm15, %v2798_v10  ;;  %v2092_v61 = vsel %vm416_vm1, %v2090_v6, %v2091_v7  ;;  %v2098_v6 = vrot.slane %v1324_v47, 1  ;;  %v2099_v7 = vrot.slane %v1325_v58, 1 }
 0x281   : > { %v2503_v24 = vpop.permute.xlu0 %2502 }
 0x282   : > { %2134 = vrot.lane.b32.xlu0 %v7686_v62, %s5582_s22  ;;  %v8101_v16 = vpop.permute.xlu1 %2264  ;;  %v2767_v57 = vsel %vm1062_vm11, %v2751_v14, %v2503_v24  ;;  %s5602_s22 = smov 88  }
 0x284   : > { %2180 = vrot.lane.b32.xlu1 %v7658_v36, %s5583_s23 }
 0x285   : > { %v8111_v23 = vpop.permute.xlu0 %2170 }
 0x286   : > { %2514 = vrot.lane.b32.xlu0 %v1320_v20, %s9184_s20  ;;  %v8114_v12 = vpop.permute.xlu1 %2266 }
 0x288   : > { %2560 = vrot.lane.b32.xlu1 %v2065_v25, %s5595_s18  ;;  %v2069_v25 = vrot.slane %v1322_v46, 1 }
 0x289   : > { %v2551_v44 = vpop.permute.xlu0 %2550 }
 0x28a   : > { %2182 = vrot.lane.b32.xlu0 %v7700_v2, %s5583_s23  ;;  %v8123_v36 = vpop.permute.xlu1 %2314 }
 0x28c   : > { %2228 = vrot.lane.b32.xlu1 %v7673_v32, %s5584_s24  ;;  %v2783_v32 = vsel %vm1806_vm13, %v2767_v57, %v2551_v44  ;;  %v8212_v57 = vld [vmem:[#allocation2] sm:$0xff] }
 0x28d   : > { %v8130_v52 = vpop.permute.xlu0 %2218 }
 0x28e   : > { %2562 = vrot.lane.b32.xlu0 %v2068_v54, %s5595_s18  ;;  %v8135_v43 = vpop.permute.xlu1 %2362 }
 0x290   : > { %2608 = vrot.lane.b32.xlu1 %v2089_v38, %s5596_s13 }
 0x291   : > { %v2599_v49 = vpop.permute.xlu0 %2598 }
 0x292   : > { %v2799_v48 = vsel %vm1815_vm14, %v2783_v32, %v2599_v49  ;;  %2230 = vrot.lane.b32.xlu0 %v7720_v29, %s5584_s24  ;;  %v8144_v31 = vpop.permute.xlu1 %2410  ;;  %v8158_v29 = vld [vmem:[%s9072_s5] ss:$0 sm:$0xff]  ;;  %v3083_v32 = vld [vmem:[#allocation2 + $0x8] sm:$0x3] }
 0x293   : > { %4514 = vmatmul.mubr.msk.f32.gmra.mrb[16].mxu1 %vm1830_vm15, %v2799_v48  ;;  %v3169_v28 = vrot.slane %v3083_v32, 1 }
 0x294   : > { %2276 = vrot.lane.b32.xlu1 %v7686_v62, %s5585_s25  ;;  %v1323_v62 = vld [vmem:[%s6160_s26 + $0x228] sm:$0x3] }
 0x295   : > { %v2313_v34 = vpop.permute.xlu0 %2312  ;;  %v2070_v59 = vrot.slane %v1323_v62, 1 }
 0x296   : > { %2610 = vrot.lane.b32.xlu0 %v2092_v61, %s5596_s13  ;;  %v8151_v40 = vpop.permute.xlu1 %2124 }
 0x297   : > { %v2071_v38 = vsel %vm391_vm0, %v2069_v25, %v2070_v59  ;;  %v3216_v59 = vrot.slane %v8212_v57, 2 }
 0x298   : > { %2278 = vrot.lane.b32.xlu1 %v7741_v0, %s5585_s25 }
 0x299   : > { %v2361_v42 = vpop.permute.xlu0 %2360 }
 0x29a   : > { %2324 = vrot.lane.b32.xlu0 %v7700_v2, %s9138_s19  ;;  %v2505_v55 = vpop.permute.xlu1 %2504  ;;  %v2656_v2 = vsel %vm658_vm2, %v2640_v35, %v8069_v8 }
 0x29b   : > { %v4482_v39 = vpop.f32.mrb[2].mxu1  ;;  %v2672_v9 = vsel %vm667_vm5, %v2656_v2, %v8083_v22  ;;  %v2094_v22 = vrot.slane %v1323_v62, 2  ;;  %v3168_v62 = vrot.slane %v8212_v57, 1  ;;  %v3217_v2 = vrot.slane %v3083_v32, 2 }
 0x29c   : > { %v1927_v21 = vadd.f32 %v4482_v39, %v8158_v29  ;;  %v1921_v0 = vpop.f32.mrb[3].mxu1  ;;  %2326 = vrot.lane.b32.xlu1 %v7770_v1, %s9138_s19  ;;  %v2688_v15 = vsel %vm676_vm6, %v2672_v9, %v8101_v16  ;;  %v2102_v39 = vrot.slane %v1325_v58, 2  ;;  %s5598_s19 = smov 56  }
 0x29d   : > { %v1922_v19 = vadd.f32 %v8158_v29, %v1921_v0  ;;  %v2409_v26 = vpop.permute.xlu0 %2408  ;;  %v2704_v8 = vsel %vm685_vm7, %v2688_v15, %v2313_v34  ;;  %v2095_v33 = vsel %vm416_vm1, %v2093_v3, %v2094_v22 }
 0x29e   : > { %3058 = vst.msk [vmem:[#allocation2 + $0x21] sm:$0xff] %vm658_vm2, %v1927_v21  ;;  %2372 = vrot.lane.b32.xlu0 %v1320_v20, %s5588_s10  ;;  %v8175_v56 = vpop.permute.xlu1 %2172  ;;  %v2720_v37 = vsel %vm694_vm8, %v2704_v8, %v2361_v42 }
 0x29f   : > { %3057 = vst.msk [vmem:[#allocation2 + $0x11] sm:$0xff] %vm658_vm2, %v1922_v19  ;;  %v4485_v1 = vpop.f32.mrb[4].mxu1  ;;  %v2736_v10 = vsel %vm703_vm9, %v2720_v37, %v2409_v26  ;;  %v5502_v19 = vld [vmem:[%s6160_s26 + $0x130] sm:$0xff] }
 0x2a0   : > { %v1937_v30 = vadd.f32 %v4485_v1, %v8158_v29  ;;  %v1931_v13 = vpop.f32.mrb[5].mxu1  ;;  %2374 = vrot.lane.b32.xlu1 %v1322_v46, %s5588_s10  ;;  %v2641_v26 = vsel %vm649_vm4, %v5502_v19, %v8089_v50 }
 0x2a1   : > { %v1932_v63 = vadd.f32 %v8158_v29, %v1931_v13  ;;  %v2457_v18 = vpop.permute.xlu0 %2456  ;;  %v2657_v9 = vsel %vm658_vm2, %v2641_v26, %v8111_v23 }
 0x2a2   : > { %3060 = vst.msk [vmem:[#allocation2 + $0x41] sm:$0xff] %vm658_vm2, %v1937_v30  ;;  %2420 = vrot.lane.b32.xlu0 %v2068_v54, %s5589_s12  ;;  %v2553_v51 = vpop.permute.xlu1 %2552  ;;  %v2752_v41 = vsel %vm712_vm10, %v2736_v10, %v2457_v18  ;;  %v2673_v30 = vsel %vm667_vm5, %v2657_v9, %v8130_v52 }
 0x2a3   : > { %3059 = vst.msk [vmem:[#allocation2 + $0x31] sm:$0xff] %vm658_vm2, %v1932_v63  ;;  %v4488_v24 = vpop.f32.mrb[6].mxu1  ;;  %v2768_v44 = vsel %vm1062_vm11, %v2752_v41, %v2505_v55  ;;  %v2101_v55 = vrot.slane %v1324_v47, 2  ;;  %v3170_v63 = vsel %vm391_vm0, %v3168_v62, %v3169_v28  ;;  %v2689_v52 = vsel %vm676_vm6, %v2673_v30, %v8114_v12 }
 0x2a4   : > { %v1947_v16 = vadd.f32 %v4488_v24, %v8158_v29  ;;  %v1941_v4 = vpop.f32.mrb[7].mxu1  ;;  %2422 = vrot.lane.b32.xlu1 %v2071_v38, %s5589_s12  ;;  %v2784_v49 = vsel %vm1806_vm13, %v2768_v44, %v2553_v51  ;;  %s5597_s12 = smov 48  }
 0x2a5   : > { %v1942_v20 = vadd.f32 %v8158_v29, %v1941_v4  ;;  %v8196_v45 = vpop.permute.xlu0 %2458  ;;  %v8237_v13 = vld [vmem:[#allocation2 + $0x20] sm:$0xff]  ;;  %v3087_v50 = vld [vmem:[#allocation2 + $0x28] sm:$0x3]  ;;  %v2103_v8 = vsel %vm416_vm1, %v2101_v55, %v2102_v39  ;;  %v2705_v4 = vsel %vm685_vm7, %v2689_v52, %v8123_v36 }
 0x2a6   : > { %3062 = vst.msk [vmem:[#allocation2 + $0x61] sm:$0xff] %vm658_vm2, %v1947_v16  ;;  %2468 = vrot.lane.b32.xlu0 %v2092_v61, %s9181_s21  ;;  %v8201_v27 = vpop.permute.xlu1 %2220  ;;  %v8217_v61 = vld [vmem:[#allocation2 + $0x10] sm:$0xff]  ;;  %v3085_v34 = vld [vmem:[#allocation2 + $0x18] sm:$0x3]  ;;  %v3174_v37 = vrot.slane %v8237_v13, 1  ;;  %v3175_v51 = vrot.slane %v3087_v50, 1  ;;  %v2721_v58 = vsel %vm694_vm8, %v2705_v4, %v8135_v43 }
 0x2a7   : > { %3061 = vst.msk [vmem:[#allocation2 + $0x51] sm:$0xff] %vm658_vm2, %v1942_v20  ;;  %v4491_v11 = vpop.f32.mrb[8].mxu1  ;;  %v3171_v21 = vrot.slane %v8217_v61, 1  ;;  %v3172_v0 = vrot.slane %v3085_v34, 1  ;;  %v3219_v1 = vrot.slane %v8217_v61, 2  ;;  %v3220_v15 = vrot.slane %v3085_v34, 2 }
 0x2a8   : > { %v1957_v54 = vadd.f32 %v4491_v11, %v8158_v29  ;;  %v1951_v17 = vpop.f32.mrb[9].mxu1  ;;  %2470 = vrot.lane.b32.xlu1 %v2095_v33, %s9181_s21  ;;  %v3222_v41 = vrot.slane %v8237_v13, 2  ;;  %v3223_v16 = vrot.slane %v3087_v50, 2  ;;  %v8258_v12 = vsel %vm391_vm0, %v3174_v37, %v3175_v51  ;;  %v5503_v55 = vld [vmem:[%s6160_s26 + $0x140] sm:$0xff] }
 0x2a9   : > { %v1952_v5 = vadd.f32 %v8158_v29, %v1951_v17  ;;  %v8210_v14 = vpop.permute.xlu0 %2126  ;;  %v3173_v18 = vsel %vm391_vm0, %v3171_v21, %v3172_v0  ;;  %v3221_v22 = vsel %vm416_vm1, %v3219_v1, %v3220_v15  ;;  %v2737_v36 = vsel %vm703_vm9, %v2721_v58, %v8144_v31 }
 0x2aa   : > { %3064 = vst.msk [vmem:[#allocation2 + $0x81] sm:$0xff] %vm658_vm2, %v1957_v54  ;;  %2516 = vrot.lane.b32.xlu0 %v1322_v46, %s9184_s20  ;;  %v2601_v48 = vpop.permute.xlu1 %2600  ;;  %v2100_v46 = vsel %vm391_vm0, %v2098_v6, %v2099_v7  ;;  %v5034_v10 = vpack.i.bf16 %v3173_v18, %v3170_v63  ;;  %v8266_v11 = vsel %vm416_vm1, %v3222_v41, %v3223_v16 }
 0x2ab   : > { %3063 = vst.msk [vmem:[#allocation2 + $0x71] sm:$0xff] %vm658_vm2, %v1952_v5  ;;  %v2800_v42 = vsel %vm1815_vm14, %v2784_v49, %v2601_v48  ;;  %v5049_v17 = vpack.i.bf16 %v8258_v12, %v3173_v18  ;;  %v2753_v5 = vsel %vm712_vm10, %v2737_v36, %v8196_v45  ;;  %v5054_v43 = vpack.i.bf16 %v8266_v11, %v3221_v22 }
 0x2ac   : > { %2518 = vrot.lane.b32.xlu1 %v1324_v47, %s9184_s20  ;;  %4516 = vmatprep.mubr.msk.f32.mxu1 %vm1830_vm15, %v2800_v42  ;;  %v5044_v47 = vpack.i.bf16 %v8237_v13, %v8217_v61  ;;  %v2642_v62 = vsel %vm649_vm4, %v5503_v55, %v8151_v40  ;;  %v3089_v55 = vld [vmem:[#allocation2 + $0x38] sm:$0x3]  ;;  %s5601_s20 = smov 80  }
 0x2ad   : > { %v2507_v35 = vpop.permute.xlu0 %2506 }
 0x2ae   : > { %2564 = vrot.lane.b32.xlu0 %v2071_v38, %s5595_s18  ;;  %v2269_v25 = vpop.permute.xlu1 %2268  ;;  %v3218_v38 = vsel %vm416_vm1, %v3216_v59, %v3217_v2  ;;  %v2769_v6 = vsel %vm1062_vm11, %v2753_v5, %v2507_v35  ;;  %v2658_v35 = vsel %vm658_vm2, %v2642_v62, %v8175_v56 }
 0x2af   : > { %v2674_v39 = vsel %vm667_vm5, %v2658_v35, %v8201_v27 }
 0x2b0   : > { %2566 = vrot.lane.b32.xlu1 %v2100_v46, %s5595_s18  ;;  %v2690_v21 = vsel %vm676_vm6, %v2674_v39, %v2269_v25 }
 0x2b1   : > { %v8239_v3 = vpop.permute.xlu0 %2174 }
 0x2b2   : > { %2612 = vrot.lane.b32.xlu0 %v2095_v33, %s5596_s13  ;;  %v8245_v23 = vpop.permute.xlu1 %2270  ;;  %v5039_v33 = vpack.i.bf16 %v3221_v22, %v3218_v38 }
 0x2b4   : > { %2614 = vrot.lane.b32.xlu1 %v2103_v8, %s5596_s13  ;;  %v5504_v8 = vld [vmem:[%s6160_s26 + $0x150] sm:$0xff]  ;;  %s5600_s13 = smov 72  }
 0x2b5   : > { %v2555_v24 = vpop.permute.xlu0 %2554  ;;  %v2643_v63 = vsel %vm649_vm4, %v5504_v8, %v8210_v14 }
 0x2b6   : > { %5035 = vrot.lane.b32.xlu0 %v5034_v10, %s5583_s23  ;;  %v2319_v20 = vpop.permute.xlu1 %2318  ;;  %v2785_v7 = vsel %vm1806_vm13, %v2769_v6, %v2555_v24  ;;  %v2659_v38 = vsel %vm658_vm2, %v2643_v63, %v8239_v3  ;;  %v3100_v6 = vld [vmem:[#allocation2 + $0x90] sm:$0xff] }
 0x2b8   : > { %5040 = vrot.lane.b32.xlu1 %v5039_v33, %s5585_s25 }
 0x2b9   : > { %v2223_v44 = vpop.permute.xlu0 %2222 }
 0x2ba   : > { %5045 = vrot.lane.b32.xlu0 %v5044_v47, %s5588_s10  ;;  %v2367_v54 = vpop.permute.xlu1 %2366  ;;  %v2675_v52 = vsel %vm667_vm5, %v2659_v38, %v2223_v44 }
 0x2bb   : > { %v2691_v51 = vsel %vm676_vm6, %v2675_v52, %v8245_v23 }
 0x2bc   : > { %5050 = vrot.lane.b32.xlu1 %v5049_v17, %s9181_s21  ;;  %v2707_v24 = vsel %vm685_vm7, %v2691_v51, %v2319_v20 }
 0x2bd   : > { %v2603_v32 = vpop.permute.xlu0 %2602  ;;  %v2723_v14 = vsel %vm694_vm8, %v2707_v24, %v2367_v54 }
 0x2be   : > { %v2801_v31 = vsel %vm1815_vm14, %v2785_v7, %v2603_v32  ;;  %5055 = vrot.lane.b32.xlu0 %v5054_v43, %s5595_s18  ;;  %v2415_v49 = vpop.permute.xlu1 %2414  ;;  %v3101_v7 = vld [vmem:[#allocation2 + $0x98] sm:$0x3] }
 0x2bf   : > { %4517 = vmatmul.mubr.msk.f32.gmra.mrb[18].mxu1 %vm1830_vm15, %v2801_v31  ;;  %v2739_v3 = vsel %vm703_vm9, %v2723_v14, %v2415_v49  ;;  %v3192_v31 = vrot.slane %v3100_v6, 1  ;;  %v3193_v49 = vrot.slane %v3101_v7, 1 }
 0x2c1   : > { %v2317_v48 = vpop.permute.xlu0 %2316 }
 0x2c2   : > { %v8281_v34 = vpop.permute.xlu1 %2128  ;;  %v2706_v0 = vsel %vm685_vm7, %v2690_v21, %v2317_v48  ;;  %v3240_v48 = vrot.slane %v3100_v6, 2 }
 0x2c5   : > { %v2365_v45 = vpop.permute.xlu0 %2364 }
 0x2c6   : > { %v2509_v42 = vpop.permute.xlu1 %2508  ;;  %v2722_v26 = vsel %vm694_vm8, %v2706_v0, %v2365_v45  ;;  %v3241_v45 = vrot.slane %v3101_v7, 2  ;;  %v3178_v0 = vrot.slane %v3089_v55, 1 }
 0x2c9   : > { %v2413_v28 = vpop.permute.xlu0 %2412 }
 0x2ca   : > { %v8288_v46 = vpop.permute.xlu1 %2176  ;;  %v2738_v40 = vsel %vm703_vm9, %v2722_v26, %v2413_v28  ;;  %v5505_v28 = vld [vmem:[%s6160_s26 + $0x160] sm:$0xff]  ;;  %v3242_v26 = vsel %vm416_vm1, %v3240_v48, %v3241_v45 }
 0x2cb   : > { %v2644_v35 = vsel %vm649_vm4, %v5505_v28, %v8281_v34  ;;  %v3226_v34 = vrot.slane %v3089_v55, 2 }
 0x2cd   : > { %v2461_v19 = vpop.permute.xlu0 %2460 }
 0x2ce   : > { %v2557_v59 = vpop.permute.xlu1 %2556  ;;  %v2754_v2 = vsel %vm712_vm10, %v2738_v40, %v2461_v19  ;;  %v3194_v19 = vsel %vm391_vm0, %v3192_v31, %v3193_v49 }
 0x2cf   : > { %v2770_v1 = vsel %vm1062_vm11, %v2754_v2, %v2509_v42  ;;  %v8341_v42 = vld [vmem:[#allocation2 + $0x30] sm:$0xff] }
 0x2d0   : > { %v2786_v27 = vsel %vm1806_vm13, %v2770_v1, %v2557_v59  ;;  %v3177_v21 = vrot.slane %v8341_v42, 1  ;;  %v3225_v40 = vrot.slane %v8341_v42, 2 }
 0x2d1   : > { %v2463_v9 = vpop.permute.xlu0 %2462 }
 0x2d2   : > { %v8297_v56 = vpop.permute.xlu1 %2224  ;;  %v2755_v33 = vsel %vm712_vm10, %v2739_v3, %v2463_v9  ;;  %v2660_v9 = vsel %vm658_vm2, %v2644_v35, %v8288_v46  ;;  %v8361_v46 = vsel %vm391_vm0, %v3177_v21, %v3178_v0  ;;  %v8402_v35 = vld [vmem:[#allocation2 + $0x40] sm:$0xff]  ;;  %v3091_v21 = vld [vmem:[#allocation2 + $0x48] sm:$0x3] }
 0x2d3   : > { %v5074_v48 = vpack.i.bf16 %v8361_v46, %v8258_v12 }
 0x2d5   : > { %v8300_v15 = vpop.permute.xlu0 %2130 }
 0x2d6   : > { %v2605_v25 = vpop.permute.xlu1 %2604 }
 0x2d7   : > { %v2802_v30 = vsel %vm1815_vm14, %v2786_v27, %v2605_v25 }
 0x2d8   : > { %4519 = vmatprep.mubr.msk.f32.mxu1 %vm1830_vm15, %v2802_v30 }
 0x2d9   : > { %v2511_v50 = vpop.permute.xlu0 %2510 }
 0x2da   : > { %v8308_v18 = vpop.permute.xlu1 %2272  ;;  %v2771_v47 = vsel %vm1062_vm11, %v2755_v33, %v2511_v50 }
 0x2dd   : > { %v8313_v22 = vpop.permute.xlu0 %2178 }
 0x2de   : > { %v8315_v37 = vpop.permute.xlu1 %2274 }
 0x2e1   : > { %v2559_v10 = vpop.permute.xlu0 %2558 }
 0x2e2   : > { %v8320_v41 = vpop.permute.xlu1 %2322  ;;  %v2787_v58 = vsel %vm1806_vm13, %v2771_v47, %v2559_v10  ;;  %v2676_v10 = vsel %vm667_vm5, %v2660_v9, %v8297_v56  ;;  %v3228_v9 = vrot.slane %v8402_v35, 2 }
 0x2e3   : > { %v2692_v3 = vsel %vm676_vm6, %v2676_v10, %v8308_v18 }
 0x2e5   : > { %v8323_v16 = vpop.permute.xlu0 %2226 }
 0x2e6   : > { %v8326_v4 = vpop.permute.xlu1 %2370 }
 0x2e9   : > { %v2607_v23 = vpop.permute.xlu0 %2606 }
 0x2ea   : > { %v2803_v44 = vsel %vm1815_vm14, %v2787_v58, %v2607_v23  ;;  %v4506_v20 = vpop.f32.mrb[10].mxu1  ;;  %v8332_v36 = vpop.permute.xlu1 %2418 }
 0x2eb   : > { %v2928_v54 = vadd.f32 %v4506_v20, %v8158_v29  ;;  %v2922_v17 = vpop.f32.mrb[11].mxu1  ;;  %4520 = vmatmul.mubr.msk.f32.gmra.mrb[20].mxu1 %vm1830_vm15, %v2803_v44 }
 0x2ec   : > { %v2923_v5 = vadd.f32 %v8158_v29, %v2922_v17 }
 0x2ed   : > { %3067 = vst.msk [vmem:[#allocation2 + $0xb1] sm:$0xff] %vm658_vm2, %v2928_v54  ;;  %v2321_v43 = vpop.permute.xlu0 %2320 }
 0x2ee   : > { %3066 = vst.msk [vmem:[#allocation2 + $0xa1] sm:$0xff] %vm658_vm2, %v2923_v5  ;;  %v8339_v32 = vpop.permute.xlu1 %2132  ;;  %v2708_v23 = vsel %vm685_vm7, %v2692_v3, %v2321_v43 }
 0x2f1   : > { %v2369_v62 = vpop.permute.xlu0 %2368 }
 0x2f2   : > { %v2513_v39 = vpop.permute.xlu1 %2512  ;;  %v2724_v54 = vsel %vm694_vm8, %v2708_v23, %v2369_v62  ;;  %v3227_v62 = vsel %vm416_vm1, %v3225_v40, %v3226_v34  ;;  %v3180_v40 = vrot.slane %v8402_v35, 1 }
 0x2f3   : > { %v5084_v0 = vpack.i.bf16 %v3227_v62, %v8266_v11 }
 0x2f4   : > { %v8349_v59 = vld [vmem:[#allocation2 + $0xb0] sm:$0xff]  ;;  %v3105_v2 = vld [vmem:[#allocation2 + $0xb8] sm:$0x3] }
 0x2f5   : > { %v2417_v1 = vpop.permute.xlu0 %2416  ;;  %v3102_v27 = vld [vmem:[#allocation2 + $0xa0] sm:$0xff]  ;;  %v3103_v25 = vld [vmem:[#allocation2 + $0xa8] sm:$0x3]  ;;  %v3198_v30 = vrot.slane %v8349_v59, 1  ;;  %v3199_v50 = vrot.slane %v3105_v2, 1  ;;  %v3246_v51 = vrot.slane %v8349_v59, 2 }
 0x2f6   : > { %v8355_v8 = vpop.permute.xlu1 %2180  ;;  %v5059_v63 = vpack.i.bf16 %v3102_v27, %v3100_v6  ;;  %v3195_v38 = vrot.slane %v3102_v27, 1  ;;  %v3196_v52 = vrot.slane %v3103_v25, 1  ;;  %v3243_v24 = vrot.slane %v3102_v27, 2 }
 0x2f7   : > { %v3244_v14 = vrot.slane %v3103_v25, 2  ;;  %v8368_v47 = vsel %vm391_vm0, %v3198_v30, %v3199_v50  ;;  %v3247_v58 = vrot.slane %v3105_v2, 2  ;;  %v2740_v6 = vsel %vm703_vm9, %v2724_v54, %v2417_v1  ;;  %v5506_v25 = vld [vmem:[%s6160_s26 + $0x170] sm:$0xff] }
 0x2f8   : > { %5060 = vrot.lane.b32.xlu1 %v5059_v63, %s5597_s12  ;;  %v3197_v33 = vsel %vm391_vm0, %v3195_v38, %v3196_v52  ;;  %v8397_v55 = vpack.i.bf16 %v8349_v59, %v3102_v27  ;;  %v3229_v1 = vrot.slane %v3091_v21, 2  ;;  %v5094_v27 = vpack.i.bf16 %v8402_v35, %v8341_v42 }
 0x2f9   : > { %v2465_v56 = vpop.permute.xlu0 %2464  ;;  %v8371_v44 = vpack.i.bf16 %v3197_v33, %v3194_v19  ;;  %v3245_v20 = vsel %vm416_vm1, %v3243_v24, %v3244_v14  ;;  %v8378_v5 = vsel %vm416_vm1, %v3246_v51, %v3247_v58  ;;  %v8384_v43 = vpack.i.bf16 %v8368_v47, %v3197_v33 }
 0x2fa   : > { %v2561_v17 = vpop.permute.xlu1 %2560  ;;  %v8375_v18 = vpack.i.bf16 %v3245_v20, %v3242_v26  ;;  %v2756_v7 = vsel %vm712_vm10, %v2740_v6, %v2465_v56  ;;  %v8390_v31 = vpack.i.bf16 %v8378_v5, %v3245_v20  ;;  %v2645_v34 = vsel %vm649_vm4, %v5506_v25, %v8300_v15 }
 0x2fb   : > { %5065 = vrot.lane.b32.xlu0 %v8371_v44, %s5598_s19  ;;  %v2772_v28 = vsel %vm1062_vm11, %v2756_v7, %v2513_v39  ;;  %v3181_v39 = vrot.slane %v3091_v21, 1  ;;  %v2661_v63 = vsel %vm658_vm2, %v2645_v34, %v8313_v22  ;;  %v8431_v38 = vsel %vm416_vm1, %v3228_v9, %v3229_v1 }
 0x2fc   : > { %5070 = vrot.lane.b32.xlu1 %v8375_v18, %s5599_s17  ;;  %v2788_v19 = vsel %vm1806_vm13, %v2772_v28, %v2561_v17  ;;  %v2677_v52 = vsel %vm667_vm5, %v2661_v63, %v8323_v16  ;;  %v5109_v22 = vpack.i.bf16 %v8431_v38, %v3227_v62  ;;  %v3093_v62 = vld [vmem:[#allocation2 + $0x58] sm:$0x3] }
 0x2fd   : > { %v2467_v49 = vpop.permute.xlu0 %2466  ;;  %v8425_v50 = vsel %vm391_vm0, %v3180_v40, %v3181_v39  ;;  %v2693_v24 = vsel %vm676_vm6, %v2677_v52, %v8315_v37  ;;  %v3184_v39 = vrot.slane %v3093_v62, 1 }
 0x2fe   : > { %v8394_v45 = vpop.permute.xlu1 %2228  ;;  %v5104_v51 = vpack.i.bf16 %v8425_v50, %v8361_v46  ;;  %v2709_v14 = vsel %vm685_vm7, %v2693_v24, %v8320_v41 }
 0x2ff   : > { %5075 = vrot.lane.b32.xlu0 %v5074_v48, %s5583_s23  ;;  %v2725_v46 = vsel %vm694_vm8, %v2709_v14, %v8326_v4  ;;  %v8469_v48 = vld [vmem:[#allocation2 + $0x50] sm:$0xff] }
 0x300   : > { %5080 = vrot.lane.b32.xlu1 %v8397_v55, %s5600_s13  ;;  %v2741_v58 = vsel %vm703_vm9, %v2725_v46, %v8332_v36  ;;  %v3183_v28 = vrot.slane %v8469_v48, 1 }
 0x301   : > { %v8406_v12 = vpop.permute.xlu0 %2134  ;;  %v2757_v37 = vsel %vm712_vm10, %v2741_v58, %v2467_v49 }
 0x302   : > { %v2609_v26 = vpop.permute.xlu1 %2608 }
 0x303   : > { %5085 = vrot.lane.b32.xlu0 %v5084_v0, %s5585_s25  ;;  %v2804_v2 = vsel %vm1815_vm14, %v2788_v19, %v2609_v26 }
 0x304   : > { %5090 = vrot.lane.b32.xlu1 %v8384_v43, %s5601_s20  ;;  %4522 = vmatprep.mubr.msk.f32.mxu1 %vm1830_vm15, %v2804_v2 }
 0x305   : > { %v2515_v11 = vpop.permute.xlu0 %2514 }
 0x306   : > { %v8422_v30 = vpop.permute.xlu1 %2276  ;;  %v2773_v17 = vsel %vm1062_vm11, %v2757_v37, %v2515_v11  ;;  %v3232_v37 = vrot.slane %v3093_v62, 2  ;;  %v5508_v62 = vld [vmem:[%s6160_s26 + $0x180] sm:$0xff] }
 0x307   : > { %5095 = vrot.lane.b32.xlu0 %v5094_v27, %s5588_s10 }
 0x308   : > { %5100 = vrot.lane.b32.xlu1 %v8390_v31, %s5602_s22 }
 0x309   : > { %v2183_v15 = vpop.permute.xlu0 %2182 }
 0x30a   : > { %v8439_v10 = vpop.permute.xlu1 %2278 }
 0x30b   : > { %5105 = vrot.lane.b32.xlu0 %v5104_v51, %s9181_s21 }
 0x30c   : > { %5110 = vrot.lane.b32.xlu1 %v5109_v22, %s5595_s18  ;;  %v3231_v22 = vrot.slane %v8469_v48, 2 }
 0x30d   : > { %v2563_v16 = vpop.permute.xlu0 %2562 }
 0x30e   : > { %v8448_v3 = vpop.permute.xlu1 %2326  ;;  %v2789_v6 = vsel %vm1806_vm13, %v2773_v17, %v2563_v16 }
 0x311   : > { %v2231_v33 = vpop.permute.xlu0 %2230 }
 0x312   : > { %v4509_v23 = vpop.f32.mrb[12].mxu1  ;;  %v8454_v56 = vpop.permute.xlu1 %2374 }
 0x313   : > { %v2938_v20 = vadd.f32 %v4509_v23, %v8158_v29  ;;  %v2932_v54 = vpop.f32.mrb[13].mxu1  ;;  %v3185_v23 = vsel %vm391_vm0, %v3183_v28, %v3184_v39  ;;  %v2646_v28 = vsel %vm649_vm4, %v5508_v62, %v8339_v32  ;;  %v3095_v39 = vld [vmem:[#allocation2 + $0x68] sm:$0x3]  ;;  %v8575_v62 = vld [vmem:[#allocation2 + $0x70] sm:$0xff] }
 0x314   : > { %v2933_v41 = vadd.f32 %v8158_v29, %v2932_v54  ;;  %v5507_v54 = vld [vmem:[%s6160_s26 + $0x190] sm:$0xff] }
 0x315   : > { %3069 = vst.msk [vmem:[#allocation2 + $0xd1] sm:$0xff] %vm658_vm2, %v2938_v20  ;;  %v2611_v4 = vpop.permute.xlu0 %2610 }
 0x316   : > { %3068 = vst.msk [vmem:[#allocation2 + $0xc1] sm:$0xff] %vm658_vm2, %v2933_v41  ;;  %v2805_v36 = vsel %vm1815_vm14, %v2789_v6, %v2611_v4  ;;  %v8465_v7 = vpop.permute.xlu1 %2422 }
 0x317   : > { %4523 = vmatmul.mubr.msk.f32.gmra.mrb[22].mxu1 %vm1830_vm15, %v2805_v36 }
 0x319   : > { %v8467_v49 = vpop.permute.xlu0 %2324 }
 0x31a   : > { %v8475_v1 = vpop.permute.xlu1 %2470 }
 0x31c   : > { %v8472_v21 = vld [vmem:[#allocation2 + $0xd0] sm:$0xff]  ;;  %v3109_v0 = vld [vmem:[#allocation2 + $0xd8] sm:$0x3] }
 0x31d   : > { %v2373_v19 = vpop.permute.xlu0 %2372  ;;  %v3106_v26 = vld [vmem:[#allocation2 + $0xc0] sm:$0xff]  ;;  %v3107_v40 = vld [vmem:[#allocation2 + $0xc8] sm:$0x3]  ;;  %v3204_v2 = vrot.slane %v8472_v21, 1  ;;  %v3205_v9 = vrot.slane %v3109_v0, 1  ;;  %v3252_v34 = vrot.slane %v8472_v21, 2 }
 0x31e   : > { %v5114_v11 = vpack.i.bf16 %v3106_v26, %v8349_v59  ;;  %v3201_v27 = vrot.slane %v3106_v26, 1  ;;  %v3202_v25 = vrot.slane %v3107_v40, 1  ;;  %v3249_v63 = vrot.slane %v3106_v26, 2  ;;  %v2519_v41 = vpop.permute.xlu1 %2518 }
 0x31f   : > { %v3250_v52 = vrot.slane %v3107_v40, 2  ;;  %v3253_v24 = vrot.slane %v3109_v0, 2  ;;  %v8487_v46 = vsel %vm391_vm0, %v3204_v2, %v3205_v9  ;;  %v3233_v0 = vsel %vm416_vm1, %v3231_v22, %v3232_v37  ;;  %v8520_v40 = vld [vmem:[#allocation2 + $0x60] sm:$0xff] }
 0x320   : > { %5115 = vrot.lane.b32.xlu0 %v5114_v11, %s5597_s12  ;;  %v3203_v51 = vsel %vm391_vm0, %v3201_v27, %v3202_v25  ;;  %v3186_v11 = vrot.slane %v8520_v40, 1  ;;  %v3187_v27 = vrot.slane %v3095_v39, 1 }
 0x321   : > { %v2421_v16 = vpop.permute.xlu0 %2420  ;;  %v8483_v14 = vpack.i.bf16 %v3203_v51, %v8368_v47  ;;  %v3251_v59 = vsel %vm416_vm1, %v3249_v63, %v3250_v52  ;;  %v8494_v20 = vsel %vm416_vm1, %v3252_v34, %v3253_v24  ;;  %v2647_v47 = vsel %vm649_vm4, %v5507_v54, %v8406_v12 }
 0x322   : > { %v8490_v58 = vpack.i.bf16 %v3251_v59, %v8378_v5  ;;  %v2663_v17 = vsel %vm658_vm2, %v2647_v47, %v2183_v15  ;;  %v8505_v5 = vpack.i.bf16 %v8487_v46, %v3203_v51  ;;  %v8508_v6 = vpack.i.bf16 %v8494_v20, %v3251_v59  ;;  %v2567_v9 = vpop.permute.xlu1 %2566 }
 0x323   : > { %5120 = vrot.lane.b32.xlu1 %v8483_v14, %s5598_s19  ;;  %v2679_v4 = vsel %vm667_vm5, %v2663_v17, %v2231_v33  ;;  %v5129_v12 = vpack.i.bf16 %v3185_v23, %v8425_v50  ;;  %v8516_v15 = vpack.i.bf16 %v8472_v21, %v3106_v26  ;;  %v2662_v50 = vsel %vm658_vm2, %v2646_v28, %v8355_v8  ;;  %v3097_v28 = vld [vmem:[#allocation2 + $0x78] sm:$0x3] }
 0x324   : > { %5125 = vrot.lane.b32.xlu0 %v8490_v58, %s5599_s17  ;;  %v2695_v33 = vsel %vm676_vm6, %v2679_v4, %v8439_v10  ;;  %v5139_v26 = vpack.i.bf16 %v3233_v0, %v8431_v38  ;;  %v2678_v2 = vsel %vm667_vm5, %v2662_v50, %v8394_v45  ;;  %v3234_v8 = vrot.slane %v8520_v40, 2 }
 0x325   : > { %v2469_v36 = vpop.permute.xlu0 %2468  ;;  %v2694_v25 = vsel %vm676_vm6, %v2678_v2, %v8422_v30  ;;  %v2711_v10 = vsel %vm685_vm7, %v2695_v33, %v8448_v3  ;;  %v3235_v34 = vrot.slane %v3095_v39, 2  ;;  %v5149_v30 = vpack.i.bf16 %v8520_v40, %v8469_v48 }
 0x326   : > { %v2710_v38 = vsel %vm685_vm7, %v2694_v25, %v8467_v49  ;;  %v2727_v3 = vsel %vm694_vm8, %v2711_v10, %v8454_v56  ;;  %v3188_v51 = vsel %vm391_vm0, %v3186_v11, %v3187_v27  ;;  %v2615_v59 = vpop.permute.xlu1 %2614  ;;  %v3190_v39 = vrot.slane %v3097_v28, 1 }
 0x327   : > { %5130 = vrot.lane.b32.xlu1 %v5129_v12, %s5583_s23  ;;  %v2726_v45 = vsel %vm694_vm8, %v2710_v38, %v2373_v19  ;;  %v2743_v22 = vsel %vm703_vm9, %v2727_v3, %v8465_v7  ;;  %v8554_v19 = vsel %vm416_vm1, %v3234_v8, %v3235_v34  ;;  %v5159_v54 = vpack.i.bf16 %v3188_v51, %v3185_v23 }
 0x328   : > { %5135 = vrot.lane.b32.xlu0 %v8516_v15, %s5600_s13  ;;  %v2742_v52 = vsel %vm703_vm9, %v2726_v45, %v2421_v16  ;;  %v2759_v24 = vsel %vm712_vm10, %v2743_v22, %v8475_v1  ;;  %v5164_v4 = vpack.i.bf16 %v8554_v19, %v3233_v0  ;;  %v3189_v0 = vrot.slane %v8575_v62, 1 }
 0x329   : > { %v2517_v32 = vpop.permute.xlu0 %2516  ;;  %v2758_v49 = vsel %vm712_vm10, %v2742_v52, %v2469_v36  ;;  %v2775_v16 = vsel %vm1062_vm11, %v2759_v24, %v2519_v41  ;;  %vm3976_vm4 = vcmask 457728   ;;  %vm3993_vm5 = vcmask 523264  }
 0x32a   : > { %v2774_v56 = vsel %vm1062_vm11, %v2758_v49, %v2517_v32  ;;  %v2791_v47 = vsel %vm1806_vm13, %v2775_v16, %v2567_v9  ;;  %v3191_v24 = vsel %vm391_vm0, %v3189_v0, %v3190_v39  ;;  %vm4010_vm7 = vcmask 588800  }
 0x32b   : > { %5140 = vrot.lane.b32.xlu1 %v5139_v26, %s5585_s25  ;;  %v2807_v1 = vsel %vm1815_vm14, %v2791_v47, %v2615_v59  ;;  %vm4027_vm9 = vcmask 654336   ;;  %vm4044_vm11 = vcmask 719872  }
 0x32c   : > { %5145 = vrot.lane.b32.xlu0 %v8505_v5, %s5601_s20 }
 0x32d   : > { %v2565_v63 = vpop.permute.xlu0 %2564 }
 0x32e   : > { %v2790_v7 = vsel %vm1806_vm13, %v2774_v56, %v2565_v63  ;;  %v3237_v63 = vrot.slane %v8575_v62, 2  ;;  %v5184_v56 = vpack.i.bf16 %v3191_v24, %v3188_v51 }
 0x32f   : > { %5150 = vrot.lane.b32.xlu1 %v5149_v30, %s5588_s10 }
 0x330   : > { %5155 = vrot.lane.b32.xlu0 %v8508_v6, %s5602_s22 }
 0x331   : > { %v2613_v37 = vpop.permute.xlu0 %2612 }
 0x332   : > { %v2806_v17 = vsel %vm1815_vm14, %v2790_v7, %v2613_v37  ;;  %v3098_v7 = vld [vmem:[#allocation2 + $0x80] sm:$0xff]  ;;  %v3099_v37 = vld [vmem:[#allocation2 + $0x88] sm:$0x3]  ;;  %vm8685_vm14 = vmpackc.low %vm4066_vm12, %vm4066_vm12 }
 0x333   : > { %4525 = vmatprep.mubr.msk.f32.mxu1 %vm1830_vm15, %v2806_v17  ;;  %5160 = vrot.lane.b32.xlu1 %v5159_v54, %s9181_s21  ;;  %v3268_v47 = vrot.slane %v3098_v7, 1  ;;  %v3269_v17 = vrot.slane %v3099_v37, 1  ;;  %v3275_v51 = vrot.slane %v3099_v37, 2 }
 0x334   : > { %4526 = vmatmul.mubr.msk.f32.gmra.mrb[24].mxu1 %vm1830_vm15, %v2807_v1  ;;  %5165 = vrot.lane.b32.xlu0 %v5164_v4, %s5595_s18  ;;  %v3274_v4 = vrot.slane %v3098_v7, 2  ;;  %v5204_v1 = vpack.i.bf16 %v3098_v7, %v8575_v62 }
 0x33a   : > { %v4512_v41 = vpop.f32.mrb[14].mxu1 }
 0x33b   : > { %v2948_v36 = vadd.f32 %v4512_v41, %v8158_v29  ;;  %v2942_v23 = vpop.f32.mrb[15].mxu1  ;;  %v3270_v41 = vsel %vm391_vm0, %v3268_v47, %v3269_v17 }
 0x33c   : > { %v2943_v12 = vadd.f32 %v8158_v29, %v2942_v23 }
 0x33d   : > { %3071 = vst.msk [vmem:[#allocation2 + $0xf1] sm:$0xff] %vm658_vm2, %v2948_v36  ;;  %v3276_v36 = vsel %vm416_vm1, %v3274_v4, %v3275_v51 }
 0x33e   : > { %3070 = vst.msk [vmem:[#allocation2 + $0xe1] sm:$0xff] %vm658_vm2, %v2943_v12  ;;  %v5036_v12 = vpop.permute.xlu0 %5035 }
 0x33f   : > { %v5037_v39 = vunpack.i.l.bf16 %v5036_v12 }
 0x342   : > { %v5046_v0 = vpop.permute.xlu0 %5045 }
 0x344   : > { %v8578_v33 = vld [vmem:[#allocation2 + $0xf0] sm:$0xff]  ;;  %v3113_v50 = vld [vmem:[#allocation2 + $0xf8] sm:$0x3] }
 0x345   : > { %v3110_v32 = vld [vmem:[#allocation2 + $0xe0] sm:$0xff]  ;;  %v3111_v26 = vld [vmem:[#allocation2 + $0xe8] sm:$0x3]  ;;  %v3210_v2 = vrot.slane %v8578_v33, 1  ;;  %v3211_v9 = vrot.slane %v3113_v50, 1  ;;  %v3258_v11 = vrot.slane %v8578_v33, 2 }
 0x346   : > { %v5169_v27 = vpack.i.bf16 %v3110_v32, %v8472_v21  ;;  %v3207_v25 = vrot.slane %v3110_v32, 1  ;;  %v3208_v10 = vrot.slane %v3111_v26, 1  ;;  %v3255_v8 = vrot.slane %v3110_v32, 2 }
 0x347   : > { %v3256_v34 = vrot.slane %v3111_v26, 2  ;;  %v3259_v38 = vrot.slane %v3113_v50, 2  ;;  %v8587_v30 = vsel %vm391_vm0, %v3210_v2, %v3211_v9  ;;  %v3238_v21 = vrot.slane %v3097_v28, 2  ;;  %v5041_v28 = vpop.permute.xlu1 %5040 }
 0x348   : > { %5170 = vrot.lane.b32.xlu1 %v5169_v27, %s5597_s12  ;;  %v3209_v45 = vsel %vm391_vm0, %v3207_v25, %v3208_v10  ;;  %v8611_v16 = vpack.i.bf16 %v8578_v33, %v3110_v32  ;;  %v5038_v32 = vunpack.i.h.bf16 %v5036_v12  ;;  %v3880_v27 = vsel %vm658_vm2, %v8212_v57, %v5037_v39 }
 0x349   : > { %v8590_v3 = vpack.i.bf16 %v3209_v45, %v8487_v46  ;;  %v3257_v52 = vsel %vm416_vm1, %v3255_v8, %v3256_v34  ;;  %v8594_v22 = vsel %vm416_vm1, %v3258_v11, %v3259_v38  ;;  %v8603_v59 = vpack.i.bf16 %v8587_v30, %v3209_v45  ;;  %v5056_v38 = vpop.permute.xlu0 %5055 }
 0x34a   : > { %v8597_v49 = vpack.i.bf16 %v3257_v52, %v8494_v20  ;;  %v8606_v46 = vpack.i.bf16 %v8594_v22, %v3257_v52  ;;  %v3239_v20 = vsel %vm416_vm1, %v3237_v63, %v3238_v21  ;;  %v5047_v25 = vunpack.i.l.bf16 %v5046_v0 }
 0x34b   : > { %5175 = vrot.lane.b32.xlu0 %v8590_v3, %s5598_s19  ;;  %v5194_v54 = vpack.i.bf16 %v3239_v20, %v8554_v19  ;;  %v5214_v19 = vpack.i.bf16 %v3270_v41, %v3191_v24  ;;  %v5219_v23 = vpack.i.bf16 %v3276_v36, %v3239_v20  ;;  %v5051_v50 = vpop.permute.xlu1 %5050  ;;  %v5042_v10 = vunpack.i.l.bf16 %v5041_v28 }
 0x34c   : > { %5180 = vrot.lane.b32.xlu1 %v8597_v49, %s5599_s17  ;;  %v3881_v8 = vsel %vm658_vm2, %v8217_v61, %v5038_v32  ;;  %v5048_v34 = vunpack.i.h.bf16 %v5046_v0  ;;  %v5043_v63 = vunpack.i.h.bf16 %v5041_v28  ;;  %v5057_v57 = vunpack.i.l.bf16 %v5056_v38 }
 0x34d   : > { %v3896_v52 = vsel %vm676_vm6, %v3880_v27, %v5042_v10  ;;  %v5052_v24 = vunpack.i.l.bf16 %v5051_v50  ;;  %v5053_v7 = vunpack.i.h.bf16 %v5051_v50  ;;  %v5058_v37 = vunpack.i.h.bf16 %v5056_v38 }
 0x34e   : > { %v3912_v21 = vsel %vm694_vm8, %v3896_v52, %v5047_v25 }
 0x34f   : > { %5185 = vrot.lane.b32.xlu0 %v5184_v56, %s5583_s23 }
 0x350   : > { %5190 = vrot.lane.b32.xlu1 %v8611_v16, %s5600_s13 }
 0x353   : > { %5195 = vrot.lane.b32.xlu0 %v5194_v54, %s5585_s25  ;;  %v3928_v54 = vsel %vm712_vm10, %v3912_v21, %v5052_v24 }
 0x354   : > { %5200 = vrot.lane.b32.xlu1 %v8603_v59, %s5601_s20 }
 0x357   : > { %5205 = vrot.lane.b32.xlu0 %v5204_v1, %s5588_s10  ;;  %v3944_v1 = vsel %vm1806_vm13, %v3928_v54, %v5057_v57 }
 0x358   : > { %5210 = vrot.lane.b32.xlu1 %v8606_v46, %s5602_s22 }
 0x35b   : > { %5215 = vrot.lane.b32.xlu0 %v5214_v19, %s9181_s21 }
 0x35c   : > { %5220 = vrot.lane.b32.xlu1 %v5219_v23, %s5595_s18 }
 0x366   : > { %v4515_v26 = vpop.f32.mrb[16].mxu1 }
 0x367   : > { %v2958_v2 = vadd.f32 %v4515_v26, %v8158_v29  ;;  %v2952_v9 = vpop.f32.mrb[17].mxu1 }
 0x368   : > { %v2953_v11 = vadd.f32 %v8158_v29, %v2952_v9  ;;  %v3897_v29 = vsel %vm676_vm6, %v3881_v8, %v5043_v63 }
 0x369   : > { %3073 = vst.msk [vmem:[#allocation2 + $0x111] sm:$0xff] %vm658_vm2, %v2958_v2  ;;  %v3913_v56 = vsel %vm694_vm8, %v3897_v29, %v5048_v34 }
 0x36a   : > { %3072 = vst.msk [vmem:[#allocation2 + $0x101] sm:$0xff] %vm658_vm2, %v2953_v11  ;;  %v5061_v45 = vpop.permute.xlu1 %5060  ;;  %v3929_v51 = vsel %vm712_vm10, %v3913_v56, %v5053_v7 }
 0x36b   : > { %v5062_v47 = vunpack.i.l.bf16 %v5061_v45  ;;  %v5063_v41 = vunpack.i.h.bf16 %v5061_v45  ;;  %v3945_v9 = vsel %vm1806_vm13, %v3929_v51, %v5058_v37 }
 0x36d   : > { %v5066_v61 = vpop.permute.xlu0 %5065  ;;  %v3960_v11 = vsel %vm1830_vm15, %v3944_v1, %v5062_v47  ;;  %v3961_v25 = vsel %vm1830_vm15, %v3945_v9, %v5063_v41 }
 0x36e   : > { %v5071_v20 = vpop.permute.xlu1 %5070  ;;  %v5068_v23 = vunpack.i.h.bf16 %v5066_v61  ;;  %v5067_v12 = vunpack.i.l.bf16 %v5066_v61 }
 0x36f   : > { %v5073_v10 = vunpack.i.h.bf16 %v5071_v20  ;;  %v5072_v8 = vunpack.i.l.bf16 %v5071_v20 }
 0x370   : > { %v3116_v17 = vld [vmem:[#allocation2 + $0x110] sm:$0xff]  ;;  %v3117_v4 = vld [vmem:[#allocation2 + $0x118] sm:$0x3]  ;;  %v3978_v29 = vsel %vm3976_vm4, %v3961_v25, %v5068_v23 }
 0x371   : > { %v3114_v36 = vld [vmem:[#allocation2 + $0x100] sm:$0xff]  ;;  %v3115_v19 = vld [vmem:[#allocation2 + $0x108] sm:$0x3]  ;;  %v3271_v26 = vrot.slane %v3116_v17, 1  ;;  %v3272_v2 = vrot.slane %v3117_v4, 1  ;;  %v3277_v7 = vrot.slane %v3116_v17, 2  ;;  %v3995_v37 = vsel %vm3993_vm5, %v3978_v29, %v5073_v10  ;;  %v5076_v23 = vpop.permute.xlu0 %5075 }
 0x372   : > { %v5081_v28 = vpop.permute.xlu1 %5080  ;;  %v5224_v0 = vpack.i.bf16 %v3114_v36, %v8578_v33  ;;  %v3213_v39 = vrot.slane %v3114_v36, 1  ;;  %v3214_v50 = vrot.slane %v3115_v19, 1  ;;  %v3261_v32 = vrot.slane %v3114_v36, 2 }
 0x373   : > { %v3262_v27 = vrot.slane %v3115_v19, 2  ;;  %v3977_v33 = vsel %vm3976_vm4, %v3960_v11, %v5067_v12  ;;  %v5082_v38 = vunpack.i.l.bf16 %v5081_v28  ;;  %v5083_v21 = vunpack.i.h.bf16 %v5081_v28 }
 0x374   : > { %5225 = vrot.lane.b32.xlu0 %v5224_v0, %s5597_s12  ;;  %v3215_v34 = vsel %vm391_vm0, %v3213_v39, %v3214_v50  ;;  %v3273_v24 = vsel %vm391_vm0, %v3271_v26, %v3272_v2  ;;  %v3278_v61 = vrot.slane %v3117_v4, 2  ;;  %v8667_v47 = vpack.i.bf16 %v3116_v17, %v3114_v36 }
 0x375   : > { %v8652_v63 = vpack.i.bf16 %v3215_v34, %v8587_v30  ;;  %v3263_v52 = vsel %vm416_vm1, %v3261_v32, %v3262_v27  ;;  %v3994_v30 = vsel %vm3993_vm5, %v3977_v33, %v5072_v8  ;;  %v4012_v1 = vsel %vm4010_vm7, %v3995_v37, %v5083_v21  ;;  %v5086_v32 = vpop.permute.xlu0 %5085 }
 0x376   : > { %v5091_v45 = vpop.permute.xlu1 %5090  ;;  %v8657_v57 = vpack.i.bf16 %v3263_v52, %v8594_v22  ;;  %v4011_v22 = vsel %vm4010_vm7, %v3994_v30, %v5082_v38  ;;  %v3279_v51 = vsel %vm416_vm1, %v3277_v7, %v3278_v61  ;;  %v8671_v4 = vpack.i.bf16 %v3273_v24, %v3215_v34 }
 0x377   : > { %v5093_v56 = vunpack.i.h.bf16 %v5091_v45  ;;  %v5092_v20 = vunpack.i.l.bf16 %v5091_v45  ;;  %5230 = vrot.lane.b32.xlu1 %v8652_v63, %s5598_s19  ;;  %v8677_v0 = vpack.i.bf16 %v3279_v51, %v3263_v52  ;;  %v5078_v2 = vunpack.i.h.bf16 %v5076_v23  ;;  %v3118_v45 = vld [vmem:[#allocation2 + $0x120] sm:$0xff]  ;;  %v3119_v52 = vld [vmem:[#allocation2 + $0x128] sm:$0x3] }
 0x378   : > { %5235 = vrot.lane.b32.xlu0 %v8657_v57, %s5599_s17  ;;  %v5077_v9 = vunpack.i.l.bf16 %v5076_v23  ;;  %v5088_v25 = vunpack.i.h.bf16 %v5086_v32  ;;  %v5087_v10 = vunpack.i.l.bf16 %v5086_v32  ;;  %v3296_v37 = vrot.slane %v3118_v45, 1 }
 0x379   : > { %v4028_v12 = vsel %vm4027_vm9, %v4011_v22, %v5092_v20  ;;  %v4029_v28 = vsel %vm4027_vm9, %v4012_v1, %v5093_v56  ;;  %v5096_v26 = vpop.permute.xlu0 %5095  ;;  %v3883_v24 = vsel %vm658_vm2, %v8341_v42, %v5078_v2  ;;  %v3297_v22 = vrot.slane %v3119_v52, 1 }
 0x37a   : > { %v5101_v54 = vpop.permute.xlu1 %5100  ;;  %v5097_v38 = vunpack.i.l.bf16 %v5096_v26  ;;  %v3882_v56 = vsel %vm658_vm2, %v8237_v13, %v5077_v9  ;;  %v3899_v61 = vsel %vm676_vm6, %v3883_v24, %v5088_v25 }
 0x37b   : > { %v5103_v41 = vunpack.i.h.bf16 %v5101_v54  ;;  %v5102_v19 = vunpack.i.l.bf16 %v5101_v54  ;;  %5240 = vrot.lane.b32.xlu1 %v8371_v44, %s5583_s23  ;;  %v9266_v44 = vmov 0.0|0.0   ;;  %v3898_v7 = vsel %vm676_vm6, %v3882_v56, %v5087_v10 }
 0x37c   : > { %5245 = vrot.lane.b32.xlu0 %v8667_v47, %s5600_s13  ;;  %v3914_v54 = vsel %vm694_vm8, %v3898_v7, %v5097_v38 }
 0x37d   : > { %v4045_v17 = vsel %vm4044_vm11, %v4028_v12, %v5102_v19  ;;  %v4046_v36 = vsel %vm4044_vm11, %v4029_v28, %v5103_v41 }
 0x37e   : > { %v4620_v50 = vpack.c.bf16 %v4046_v36, %v4045_v17  ;;  %v5111_v8 = vpop.permute.xlu1 %5110  ;;  %v3320_v36 = vrot.slane %v3118_v45, 2 }
 0x37f   : > { %5250 = vrot.lane.b32.xlu1 %v8375_v18, %s5585_s25  ;;  %v5106_v18 = vpop.permute.xlu0 %5105  ;;  %v5113_v1 = vunpack.i.h.bf16 %v5111_v8  ;;  %v5112_v41 = vunpack.i.l.bf16 %v5111_v8 }
 0x380   : > { %4622 = vmatpush3.bf16.xpose.msk.msra.mxu0 %vm8685_vm14, %v4620_v50  ;;  %5255 = vrot.lane.b32.xlu0 %v8671_v4, %s5601_s20  ;;  %v5108_v29 = vunpack.i.h.bf16 %v5106_v18  ;;  %v5107_v21 = vunpack.i.l.bf16 %v5106_v18  ;;  %v3321_v18 = vrot.slane %v3119_v52, 2 }
 0x381   : > { %4623 = vmatprep.subr.bf16.mxu0 %v9266_v44 }
 0x382   : > { %v3930_v42 = vsel %vm712_vm10, %v3914_v54, %v5107_v21  ;;  %v3322_v7 = vsel %vm416_vm1, %v3320_v36, %v3321_v18 }
 0x383   : > { %5260 = vrot.lane.b32.xlu1 %v8397_v55, %s5588_s10  ;;  %v8707_v55 = vld [vmem:[%s9072_s5] ss:$0 sm:$0xff]  ;;  %v3946_v50 = vsel %vm1806_vm13, %v3930_v42, %v5112_v41 }
 0x384   : > { %5265 = vrot.lane.b32.xlu0 %v8677_v0, %s5602_s22 }
 0x387   : > { %5270 = vrot.lane.b32.xlu1 %v8384_v43, %s9181_s21  ;;  %v5098_v43 = vunpack.i.h.bf16 %v5096_v26  ;;  %v3298_v26 = vsel %vm391_vm0, %v3296_v37, %v3297_v22 }
 0x388   : > { %5275 = vrot.lane.b32.xlu0 %v8390_v31, %s5595_s18 }
 0x389   : > { %v3915_v51 = vsel %vm694_vm8, %v3899_v61, %v5098_v43 }
 0x38a   : > { %v3931_v13 = vsel %vm712_vm10, %v3915_v51, %v5108_v29 }
 0x38b   : > { %v3947_v32 = vsel %vm1806_vm13, %v3931_v13, %v5113_v1 }
 0x392   : > { %v4518_v11 = vpop.f32.mrb[18].mxu1  ;;  %v5116_v27 = vpop.permute.xlu0 %5115 }
 0x393   : > { %v2968_v34 = vadd.f32 %v8707_v55, %v4518_v11  ;;  %v2962_v33 = vpop.f32.mrb[19].mxu1  ;;  %v5118_v19 = vunpack.i.h.bf16 %v5116_v27  ;;  %v5117_v23 = vunpack.i.l.bf16 %v5116_v27 }
 0x394   : > { %v2963_v31 = vadd.f32 %v8707_v55, %v2962_v33 }
 0x395   : > { %3075 = vst.msk [vmem:[#allocation2 + $0x141] sm:$0xff] %vm658_vm2, %v2968_v34  ;;  %v5121_v30 = vpop.permute.xlu1 %5120  ;;  %v3962_v2 = vsel %vm1830_vm15, %v3946_v50, %v5117_v23  ;;  %v3963_v9 = vsel %vm1830_vm15, %v3947_v32, %v5118_v19 }
 0x396   : > { %3074 = vst.msk [vmem:[#allocation2 + $0x131] sm:$0xff] %vm658_vm2, %v2963_v31  ;;  %v5126_v20 = vpop.permute.xlu0 %5125  ;;  %v5122_v12 = vunpack.i.l.bf16 %v5121_v30  ;;  %v5123_v17 = vunpack.i.h.bf16 %v5121_v30 }
 0x397   : > { %v5128_v11 = vunpack.i.h.bf16 %v5126_v20  ;;  %v5127_v25 = vunpack.i.l.bf16 %v5126_v20 }
 0x398   : > { %v3979_v27 = vsel %vm3976_vm4, %v3962_v2, %v5122_v12  ;;  %v3980_v31 = vsel %vm3976_vm4, %v3963_v9, %v5123_v17 }
 0x399   : > { %v3996_v61 = vsel %vm3993_vm5, %v3979_v27, %v5127_v25  ;;  %v3997_v22 = vsel %vm3993_vm5, %v3980_v31, %v5128_v11  ;;  %v5131_v12 = vpop.permute.xlu1 %5130 }
 0x39a   : > { %v5136_v28 = vpop.permute.xlu0 %5135 }
 0x39b   : > { %v5137_v34 = vunpack.i.l.bf16 %v5136_v28  ;;  %v5138_v29 = vunpack.i.h.bf16 %v5136_v28 }
 0x39c   : > { %v8734_v37 = vld [vmem:[#allocation2 + $0x140] sm:$0xff] }
 0x39d   : > { %v3120_v10 = vld [vmem:[#allocation2 + $0x130] sm:$0xff]  ;;  %v3121_v8 = vld [vmem:[#allocation2 + $0x138] sm:$0x3]  ;;  %v4013_v54 = vsel %vm4010_vm7, %v3996_v61, %v5137_v34  ;;  %v4014_v42 = vsel %vm4010_vm7, %v3997_v22, %v5138_v29  ;;  %v3302_v36 = vrot.slane %v8734_v37, 1  ;;  %v3326_v11 = vrot.slane %v8734_v37, 2 }
 0x39e   : > { %v5146_v33 = vpop.permute.xlu0 %5145  ;;  %v5279_v43 = vpack.i.bf16 %v3120_v10, %v3118_v45  ;;  %v3299_v38 = vrot.slane %v3120_v10, 1  ;;  %v3300_v21 = vrot.slane %v3121_v8, 1  ;;  %v3323_v24 = vrot.slane %v3120_v10, 2  ;;  %v3123_v45 = vld [vmem:[#allocation2 + $0x148] sm:$0x3] }
 0x39f   : > { %v5148_v52 = vunpack.i.h.bf16 %v5146_v33  ;;  %v5147_v56 = vunpack.i.l.bf16 %v5146_v33  ;;  %v3324_v20 = vrot.slane %v3121_v8, 2  ;;  %v3303_v50 = vrot.slane %v3123_v45, 1  ;;  %v5141_v8 = vpop.permute.xlu1 %5140 }
 0x3a0   : > { %5280 = vrot.lane.b32.xlu1 %v5279_v43, %s5597_s12  ;;  %v3301_v30 = vsel %vm391_vm0, %v3299_v38, %v3300_v21  ;;  %v5299_v2 = vpack.i.bf16 %v8734_v37, %v3120_v10  ;;  %v3327_v25 = vrot.slane %v3123_v45, 2  ;;  %v5132_v33 = vunpack.i.l.bf16 %v5131_v12 }
 0x3a1   : > { %v5284_v1 = vpack.i.bf16 %v3301_v30, %v3298_v26  ;;  %v3325_v41 = vsel %vm416_vm1, %v3323_v24, %v3324_v20  ;;  %v4030_v28 = vsel %vm4027_vm9, %v4013_v54, %v5147_v56  ;;  %v4031_v17 = vsel %vm4027_vm9, %v4014_v42, %v5148_v52 }
 0x3a2   : > { %v5156_v51 = vpop.permute.xlu0 %5155  ;;  %v5289_v23 = vpack.i.bf16 %v3325_v41, %v3322_v7  ;;  %v8753_v9 = vsel %vm391_vm0, %v3302_v36, %v3303_v50  ;;  %v5133_v43 = vunpack.i.h.bf16 %v5131_v12  ;;  %v5142_v38 = vunpack.i.l.bf16 %v5141_v8 }
 0x3a3   : > { %v5158_v13 = vunpack.i.h.bf16 %v5156_v51  ;;  %v5157_v19 = vunpack.i.l.bf16 %v5156_v51  ;;  %5285 = vrot.lane.b32.xlu0 %v5284_v1, %s5598_s19  ;;  %v5309_v27 = vpack.i.bf16 %v8753_v9, %v3301_v30  ;;  %v5151_v34 = vpop.permute.xlu1 %5150  ;;  %v5143_v29 = vunpack.i.h.bf16 %v5141_v8 }
 0x3a4   : > { %5290 = vrot.lane.b32.xlu1 %v5289_v23, %s5599_s17  ;;  %v5152_v21 = vunpack.i.l.bf16 %v5151_v34  ;;  %v5153_v52 = vunpack.i.h.bf16 %v5151_v34 }
 0x3a5   : > { %v4047_v32 = vsel %vm4044_vm11, %v4030_v28, %v5157_v19  ;;  %v4048_v26 = vsel %vm4044_vm11, %v4031_v17, %v5158_v13 }
 0x3a6   : > { %v4624_v18 = vpack.c.bf16 %v4048_v26, %v4047_v32  ;;  %v5166_v24 = vpop.permute.xlu0 %5165 }
 0x3a7   : > { %5295 = vrot.lane.b32.xlu0 %v8483_v14, %s5583_s23  ;;  %v8762_v14 = vsel %vm416_vm1, %v3326_v11, %v3327_v25 }
 0x3a8   : > { %4626 = vmatpush3.bf16.xpose.msk.msra.mxu0 %vm8685_vm14, %v4624_v18  ;;  %5300 = vrot.lane.b32.xlu1 %v5299_v2, %s5600_s13  ;;  %v5319_v10 = vpack.i.bf16 %v8762_v14, %v3325_v41  ;;  %v5167_v41 = vunpack.i.l.bf16 %v5166_v24 }
 0x3a9   : > { %4627 = vmatprep.subr.bf16.mxu0 %v9266_v44 }
 0x3ab   : > { %5305 = vrot.lane.b32.xlu0 %v8490_v58, %s5585_s25  ;;  %v5161_v58 = vpop.permute.xlu1 %5160 }
 0x3ac   : > { %5310 = vrot.lane.b32.xlu1 %v5309_v27, %s5601_s20  ;;  %v5163_v56 = vunpack.i.h.bf16 %v5161_v58  ;;  %v5162_v7 = vunpack.i.l.bf16 %v5161_v58 }
 0x3af   : > { %5315 = vrot.lane.b32.xlu0 %v8516_v15, %s5588_s10  ;;  %v3884_v15 = vsel %vm658_vm2, %v8402_v35, %v5132_v33  ;;  %v5168_v35 = vunpack.i.h.bf16 %v5166_v24 }
 0x3b0   : > { %5320 = vrot.lane.b32.xlu1 %v5319_v10, %s5602_s22  ;;  %v3900_v20 = vsel %vm676_vm6, %v3884_v15, %v5142_v38 }
 0x3b1   : > { %v3916_v45 = vsel %vm694_vm8, %v3900_v20, %v5152_v21 }
 0x3b3   : > { %5325 = vrot.lane.b32.xlu0 %v8505_v5, %s9181_s21  ;;  %v3885_v5 = vsel %vm658_vm2, %v8469_v48, %v5133_v43  ;;  %v3932_v48 = vsel %vm712_vm10, %v3916_v45, %v5162_v7 }
 0x3b4   : > { %5330 = vrot.lane.b32.xlu1 %v8508_v6, %s5595_s18  ;;  %v3901_v30 = vsel %vm676_vm6, %v3885_v5, %v5143_v29  ;;  %v3948_v50 = vsel %vm1806_vm13, %v3932_v48, %v5167_v41 }
 0x3b5   : > { %v3917_v1 = vsel %vm694_vm8, %v3901_v30, %v5153_v52 }
 0x3b6   : > { %v3933_v13 = vsel %vm712_vm10, %v3917_v1, %v5163_v56 }
 0x3b7   : > { %v3949_v36 = vsel %vm1806_vm13, %v3933_v13, %v5168_v35 }
 0x3ba   : > { %v5171_v31 = vpop.permute.xlu1 %5170 }
 0x3bb   : > { %v5173_v19 = vunpack.i.h.bf16 %v5171_v31  ;;  %v5172_v23 = vunpack.i.l.bf16 %v5171_v31 }
 0x3bd   : > { %v5176_v22 = vpop.permute.xlu0 %5175  ;;  %v3964_v32 = vsel %vm1830_vm15, %v3948_v50, %v5172_v23  ;;  %v3965_v26 = vsel %vm1830_vm15, %v3949_v36, %v5173_v19 }
 0x3be   : > { %v4521_v6 = vpop.f32.mrb[20].mxu1  ;;  %v5181_v61 = vpop.permute.xlu1 %5180  ;;  %v5178_v12 = vunpack.i.h.bf16 %v5176_v22  ;;  %v5177_v28 = vunpack.i.l.bf16 %v5176_v22 }
 0x3bf   : > { %v2978_v54 = vadd.f32 %v8707_v55, %v4521_v6  ;;  %v2972_v51 = vpop.f32.mrb[21].mxu1  ;;  %v5183_v18 = vunpack.i.h.bf16 %v5181_v61  ;;  %v5182_v2 = vunpack.i.l.bf16 %v5181_v61 }
 0x3c0   : > { %v2973_v42 = vadd.f32 %v8707_v55, %v2972_v51  ;;  %v3981_v11 = vsel %vm3976_vm4, %v3964_v32, %v5177_v28  ;;  %v3982_v25 = vsel %vm3976_vm4, %v3965_v26, %v5178_v12 }
 0x3c1   : > { %3077 = vst.msk [vmem:[#allocation2 + $0x161] sm:$0xff] %vm658_vm2, %v2978_v54  ;;  %v3998_v33 = vsel %vm3993_vm5, %v3981_v11, %v5182_v2  ;;  %v3999_v43 = vsel %vm3993_vm5, %v3982_v25, %v5183_v18 }
 0x3c2   : > { %3076 = vst.msk [vmem:[#allocation2 + $0x151] sm:$0xff] %vm658_vm2, %v2973_v42  ;;  %v5191_v17 = vpop.permute.xlu1 %5190  ;;  %v5186_v42 = vpop.permute.xlu0 %5185 }
 0x3c3   : > { %v5193_v8 = vunpack.i.h.bf16 %v5191_v17  ;;  %v5192_v27 = vunpack.i.l.bf16 %v5191_v17  ;;  %v5187_v26 = vunpack.i.l.bf16 %v5186_v42  ;;  %v5188_v18 = vunpack.i.h.bf16 %v5186_v42 }
 0x3c5   : > { %v4015_v29 = vsel %vm4010_vm7, %v3998_v33, %v5192_v27  ;;  %v4016_v21 = vsel %vm4010_vm7, %v3999_v43, %v5193_v8 }
 0x3c6   : > { %v5201_v10 = vpop.permute.xlu1 %5200  ;;  %v5196_v28 = vpop.permute.xlu0 %5195 }
 0x3c7   : > { %v5203_v34 = vunpack.i.h.bf16 %v5201_v10  ;;  %v5202_v58 = vunpack.i.l.bf16 %v5201_v10  ;;  %v5197_v2 = vunpack.i.l.bf16 %v5196_v28  ;;  %v5198_v25 = vunpack.i.h.bf16 %v5196_v28 }
 0x3c8   : > { %v8805_v1 = vld [vmem:[#allocation2 + $0x160] sm:$0xff]  ;;  %v3127_v35 = vld [vmem:[#allocation2 + $0x168] sm:$0x3] }
 0x3c9   : > { %v3124_v38 = vld [vmem:[#allocation2 + $0x150] sm:$0xff]  ;;  %v3125_v31 = vld [vmem:[#allocation2 + $0x158] sm:$0x3]  ;;  %v4032_v6 = vsel %vm4027_vm9, %v4015_v29, %v5202_v58  ;;  %v4033_v61 = vsel %vm4027_vm9, %v4016_v21, %v5203_v34  ;;  %v3308_v13 = vrot.slane %v8805_v1, 1  ;;  %v3309_v19 = vrot.slane %v3127_v35, 1 }
 0x3ca   : > { %v5211_v24 = vpop.permute.xlu1 %5210  ;;  %v5334_v52 = vpack.i.bf16 %v3124_v38, %v8734_v37  ;;  %v3305_v15 = vrot.slane %v3124_v38, 1  ;;  %v3306_v5 = vrot.slane %v3125_v31, 1  ;;  %v3329_v20 = vrot.slane %v3124_v38, 2 }
 0x3cb   : > { %v5213_v56 = vunpack.i.h.bf16 %v5211_v24  ;;  %v5212_v7 = vunpack.i.l.bf16 %v5211_v24  ;;  %v3330_v30 = vrot.slane %v3125_v31, 2  ;;  %v8819_v23 = vsel %vm391_vm0, %v3308_v13, %v3309_v19 }
 0x3cc   : > { %5335 = vrot.lane.b32.xlu0 %v5334_v52, %s5597_s12  ;;  %v3307_v54 = vsel %vm391_vm0, %v3305_v15, %v3306_v5  ;;  %v3333_v12 = vrot.slane %v3127_v35, 2  ;;  %v3886_v34 = vsel %vm658_vm2, %v8520_v40, %v5187_v26 }
 0x3cd   : > { %v4049_v45 = vsel %vm4044_vm11, %v4032_v6, %v5212_v7  ;;  %v4050_v22 = vsel %vm4044_vm11, %v4033_v61, %v5213_v56  ;;  %v5339_v37 = vpack.i.bf16 %v3307_v54, %v8753_v9  ;;  %v3331_v41 = vsel %vm416_vm1, %v3329_v20, %v3330_v30 }
 0x3ce   : > { %v4628_v51 = vpack.c.bf16 %v4050_v22, %v4049_v45  ;;  %v5344_v48 = vpack.i.bf16 %v3331_v41, %v8762_v14  ;;  %v5354_v9 = vpack.i.bf16 %v8805_v1, %v3124_v38  ;;  %v3332_v14 = vrot.slane %v8805_v1, 2  ;;  %v5221_v11 = vpop.permute.xlu1 %5220 }
 0x3cf   : > { %5340 = vrot.lane.b32.xlu1 %v5339_v37, %s5598_s19  ;;  %v5364_v17 = vpack.i.bf16 %v8819_v23, %v3307_v54  ;;  %v3902_v38 = vsel %vm676_vm6, %v3886_v34, %v5197_v2  ;;  %v5222_v52 = vunpack.i.l.bf16 %v5221_v11  ;;  %v5223_v56 = vunpack.i.h.bf16 %v5221_v11 }
 0x3d0   : > { %4630 = vmatpush3.bf16.xpose.msk.msra.mxu0 %vm8685_vm14, %v4628_v51  ;;  %5345 = vrot.lane.b32.xlu0 %v5344_v48, %s5599_s17  ;;  %v8827_v36 = vsel %vm416_vm1, %v3332_v14, %v3333_v12 }
 0x3d1   : > { %4631 = vmatprep.subr.bf16.mxu0 %v9266_v44  ;;  %v5374_v50 = vpack.i.bf16 %v8827_v36, %v3331_v41 }
 0x3d3   : > { %5350 = vrot.lane.b32.xlu1 %v8590_v3, %s5583_s23  ;;  %v5206_v3 = vpop.permute.xlu0 %5205 }
 0x3d4   : > { %5355 = vrot.lane.b32.xlu0 %v5354_v9, %s5600_s13  ;;  %v5207_v8 = vunpack.i.l.bf16 %v5206_v3  ;;  %v5208_v27 = vunpack.i.h.bf16 %v5206_v3 }
 0x3d6   : > { %v3918_v24 = vsel %vm694_vm8, %v3902_v38, %v5207_v8 }
 0x3d7   : > { %5360 = vrot.lane.b32.xlu1 %v8597_v49, %s5585_s25  ;;  %v5216_v32 = vpop.permute.xlu0 %5215 }
 0x3d8   : > { %5365 = vrot.lane.b32.xlu0 %v5364_v17, %s5601_s20  ;;  %v5218_v58 = vunpack.i.h.bf16 %v5216_v32 }
 0x3db   : > { %5370 = vrot.lane.b32.xlu1 %v8611_v16, %s5588_s10  ;;  %v5217_v16 = vunpack.i.l.bf16 %v5216_v32 }
 0x3dc   : > { %5375 = vrot.lane.b32.xlu0 %v5374_v50, %s5602_s22 }
 0x3dd   : > { %v3934_v15 = vsel %vm712_vm10, %v3918_v24, %v5217_v16 }
 0x3de   : > { %v3950_v30 = vsel %vm1806_vm13, %v3934_v15, %v5222_v52 }
 0x3df   : > { %5380 = vrot.lane.b32.xlu1 %v8603_v59, %s9181_s21 }
 0x3e0   : > { %5385 = vrot.lane.b32.xlu0 %v8606_v46, %s5595_s18  ;;  %v3887_v46 = vsel %vm658_vm2, %v8575_v62, %v5188_v18 }
 0x3e1   : > { %v3903_v21 = vsel %vm676_vm6, %v3887_v46, %v5198_v25 }
 0x3e2   : > { %v3919_v40 = vsel %vm694_vm8, %v3903_v21, %v5208_v27 }
 0x3e3   : > { %v3935_v62 = vsel %vm712_vm10, %v3919_v40, %v5218_v58 }
 0x3e4   : > { %v3951_v45 = vsel %vm1806_vm13, %v3935_v62, %v5223_v56 }
 0x3e6   : > { %v5226_v49 = vpop.permute.xlu0 %5225 }
 0x3e7   : > { %v5227_v7 = vunpack.i.l.bf16 %v5226_v49  ;;  %v5228_v5 = vunpack.i.h.bf16 %v5226_v49 }
 0x3e9   : > { %v5231_v31 = vpop.permute.xlu1 %5230  ;;  %v3966_v22 = vsel %vm1830_vm15, %v3950_v30, %v5227_v7  ;;  %v3967_v51 = vsel %vm1830_vm15, %v3951_v45, %v5228_v5 }
 0x3ea   : > { %v4524_v10 = vpop.f32.mrb[22].mxu1  ;;  %v5236_v33 = vpop.permute.xlu0 %5235  ;;  %v5232_v20 = vunpack.i.l.bf16 %v5231_v31  ;;  %v5233_v61 = vunpack.i.h.bf16 %v5231_v31 }
 0x3eb   : > { %v2988_v59 = vadd.f32 %v8707_v55, %v4524_v10  ;;  %v2982_v43 = vpop.f32.mrb[23].mxu1  ;;  %v5237_v54 = vunpack.i.l.bf16 %v5236_v33  ;;  %v5238_v35 = vunpack.i.h.bf16 %v5236_v33 }
 0x3ec   : > { %v2983_v29 = vadd.f32 %v8707_v55, %v2982_v43  ;;  %v3983_v37 = vsel %vm3976_vm4, %v3966_v22, %v5232_v20  ;;  %v3984_v48 = vsel %vm3976_vm4, %v3967_v51, %v5233_v61 }
 0x3ed   : > { %3079 = vst.msk [vmem:[#allocation2 + $0x181] sm:$0xff] %vm658_vm2, %v2988_v59  ;;  %v4000_v28 = vsel %vm3993_vm5, %v3983_v37, %v5237_v54  ;;  %v4001_v50 = vsel %vm3993_vm5, %v3984_v48, %v5238_v35  ;;  %v5241_v31 = vpop.permute.xlu1 %5240 }
 0x3ee   : > { %3078 = vst.msk [vmem:[#allocation2 + $0x171] sm:$0xff] %vm658_vm2, %v2983_v29  ;;  %v5246_v6 = vpop.permute.xlu0 %5245  ;;  %v5243_v61 = vunpack.i.h.bf16 %v5241_v31 }
 0x3ef   : > { %v5247_v41 = vunpack.i.l.bf16 %v5246_v6  ;;  %v5248_v13 = vunpack.i.h.bf16 %v5246_v6 }
 0x3f1   : > { %v4017_v32 = vsel %vm4010_vm7, %v4000_v28, %v5247_v41  ;;  %v4018_v2 = vsel %vm4010_vm7, %v4001_v50, %v5248_v13  ;;  %v5251_v40 = vpop.permute.xlu1 %5250 }
 0x3f2   : > { %v5256_v42 = vpop.permute.xlu0 %5255  ;;  %v5252_v51 = vunpack.i.l.bf16 %v5251_v40 }
 0x3f3   : > { %v5258_v19 = vunpack.i.h.bf16 %v5256_v42  ;;  %v5257_v9 = vunpack.i.l.bf16 %v5256_v42 }
 0x3f4   : > { %v3130_v10 = vld [vmem:[#allocation2 + $0x180] sm:$0xff]  ;;  %v3131_v34 = vld [vmem:[#allocation2 + $0x188] sm:$0x3] }
 0x3f5   : > { %v3128_v14 = vld [vmem:[#allocation2 + $0x170] sm:$0xff]  ;;  %v3129_v12 = vld [vmem:[#allocation2 + $0x178] sm:$0x3]  ;;  %v4034_v27 = vsel %vm4027_vm9, %v4017_v32, %v5257_v9  ;;  %v4035_v16 = vsel %vm4027_vm9, %v4018_v2, %v5258_v19  ;;  %v3314_v29 = vrot.slane %v3130_v10, 1  ;;  %v3315_v21 = vrot.slane %v3131_v34, 1  ;;  %v5261_v5 = vpop.permute.xlu1 %5260 }
 0x3f6   : > { %v5389_v17 = vpack.i.bf16 %v3128_v14, %v8805_v1  ;;  %v3311_v3 = vrot.slane %v3128_v14, 1  ;;  %v5266_v49 = vpop.permute.xlu0 %5265  ;;  %v3312_v26 = vrot.slane %v3129_v12, 1  ;;  %v3335_v18 = vrot.slane %v3128_v14, 2  ;;  %v5511_v32 = vld [vmem:[#allocation2 + $0x90] sm:$0xff] }
 0x3f7   : > { %v5268_v11 = vunpack.i.h.bf16 %v5266_v49  ;;  %v5267_v25 = vunpack.i.l.bf16 %v5266_v49  ;;  %v3336_v8 = vrot.slane %v3129_v12, 2  ;;  %v5409_v24 = vpack.i.bf16 %v3130_v10, %v3128_v14 }
 0x3f8   : > { %5390 = vrot.lane.b32.xlu1 %v5389_v17, %s5597_s12  ;;  %v3313_v1 = vsel %vm391_vm0, %v3311_v3, %v3312_v26  ;;  %v3338_v52 = vrot.slane %v3130_v10, 2  ;;  %v5262_v14 = vunpack.i.l.bf16 %v5261_v5  ;;  %v5263_v28 = vunpack.i.h.bf16 %v5261_v5 }
 0x3f9   : > { %v4051_v58 = vsel %vm4044_vm11, %v4034_v27, %v5267_v25  ;;  %v4052_v59 = vsel %vm4044_vm11, %v4035_v16, %v5268_v11  ;;  %v5394_v33 = vpack.i.bf16 %v3313_v1, %v8819_v23  ;;  %v3337_v43 = vsel %vm416_vm1, %v3335_v18, %v3336_v8 }
 0x3fa   : > { %v4632_v46 = vpack.c.bf16 %v4052_v59, %v4051_v58  ;;  %v5399_v38 = vpack.i.bf16 %v3337_v43, %v8827_v36  ;;  %v3316_v23 = vsel %vm391_vm0, %v3314_v29, %v3315_v21  ;;  %v3339_v36 = vrot.slane %v3131_v34, 2  ;;  %v5276_v12 = vpop.permute.xlu0 %5275 }
 0x3fb   : > { %5395 = vrot.lane.b32.xlu0 %v5394_v33, %s5598_s19  ;;  %v5419_v15 = vpack.i.bf16 %v3316_v23, %v3313_v1  ;;  %v5277_v34 = vunpack.i.l.bf16 %v5276_v12 }
 0x3fc   : > { %5400 = vrot.lane.b32.xlu1 %v5399_v38, %s5599_s17  ;;  %4634 = vmatpush3.bf16.xpose.msk.msra.mxu0 %vm8685_vm14, %v4632_v46  ;;  %v3340_v56 = vsel %vm416_vm1, %v3338_v52, %v3339_v36 }
 0x3fd   : > { %4635 = vmatprep.subr.bf16.mxu0 %v9266_v44  ;;  %v5429_v62 = vpack.i.bf16 %v3340_v56, %v3337_v43  ;;  %v5278_v43 = vunpack.i.h.bf16 %v5276_v12 }
 0x3ff   : > { %5405 = vrot.lane.b32.xlu0 %v8652_v63, %s5583_s23  ;;  %s5603_s23 = smov [#allocation3]  }
 0x400   : > { %5410 = vrot.lane.b32.xlu1 %v5409_v24, %s5600_s13 }
 0x403   : > { %5415 = vrot.lane.b32.xlu0 %v8657_v57, %s5585_s25  ;;  %v5271_v57 = vpop.permute.xlu1 %5270  ;;  %s5522_s25 = sshll.u32 %s5603_s23, 4  ;;  %s5523_s25 = int_to_ptr.vmem [resolvable:$false] %s5522_s25 }
 0x404   : > { %5420 = vrot.lane.b32.xlu1 %v5419_v15, %s5601_s20  ;;  %v5272_v17 = vunpack.i.l.bf16 %v5271_v57  ;;  %v5273_v26 = vunpack.i.h.bf16 %v5271_v57 }
 0x407   : > { %v4527_v7 = vpop.f32.mrb[24].mxu1  ;;  %5425 = vrot.lane.b32.xlu0 %v8667_v47, %s5588_s10  ;;  %v5242_v47 = vunpack.i.l.bf16 %v5241_v31  ;;  %s5524_s10 = scalar_lea.vmem %s5523_s25, 512 }
 0x408   : > { %v2998_v63 = vadd.f32 %v8707_v55, %v4527_v7  ;;  %v2992_v20 = vpop.f32.mrb[25].mxu1  ;;  %5430 = vrot.lane.b32.xlu1 %v5429_v62, %s5602_s22  ;;  %v334_v7 = vld [vmem:[%s9074_s7] sm:$0xff] }
 0x409   : > { %v2993_v6 = vadd.f32 %v8707_v55, %v2992_v20  ;;  %v3888_v49 = vsel %vm658_vm2, %v5511_v32, %v5242_v47 }
 0x40a   : > { %3081 = vst.msk [vmem:[#allocation2 + $0x1a1] sm:$0xff] %vm658_vm2, %v2998_v63  ;;  %v3904_v25 = vsel %vm676_vm6, %v3888_v49, %v5252_v51 }
 0x40b   : > { %3080 = vst.msk [vmem:[#allocation2 + $0x191] sm:$0xff] %vm658_vm2, %v2993_v6  ;;  %5435 = vrot.lane.b32.xlu0 %v8671_v4, %s9181_s21  ;;  %v5510_v4 = vld [vmem:[#allocation2 + $0xa0] sm:$0xff]  ;;  %s311_s21 = sand.u32 1, %s5572_s28  }
 0x40c   : > { %5440 = vrot.lane.b32.xlu1 %v8677_v0, %s5595_s18  ;;  %v3889_v9 = vsel %vm658_vm2, %v5510_v4, %v5243_v61  ;;  %v5253_v0 = vunpack.i.h.bf16 %v5251_v40 }
 0x40e   : > { %v3905_v1 = vsel %vm676_vm6, %v3889_v9, %v5253_v0 }
 0x40f   : > { %v3921_v59 = vsel %vm694_vm8, %v3905_v1, %v5263_v28 }
 0x410   : > { %v3937_v38 = vsel %vm712_vm10, %v3921_v59, %v5273_v26 }
 0x411   : > { %v3134_v30 = vld [vmem:[#allocation2 + $0x1a0] sm:$0xff]  ;;  %v3135_v45 = vld [vmem:[#allocation2 + $0x1a8] sm:$0x3]  ;;  %v3953_v15 = vsel %vm1806_vm13, %v3937_v38, %v5278_v43 }
 0x412   : > { %v5281_v22 = vpop.permute.xlu1 %5280  ;;  %v3132_v54 = vld [vmem:[#allocation2 + $0x190] sm:$0xff]  ;;  %v3133_v55 = vld [vmem:[#allocation2 + $0x198] sm:$0x3]  ;;  %v3346_v41 = vrot.slane %v3134_v30, 1  ;;  %v3347_v19 = vrot.slane %v3135_v45, 1  ;;  %v3349_v8 = vrot.slane %v3134_v30, 2 }
 0x413   : > { %v5444_v37 = vpack.i.bf16 %v3132_v54, %v3130_v10  ;;  %v3317_v35 = vrot.slane %v3132_v54, 1  ;;  %v3318_v42 = vrot.slane %v3133_v55, 1  ;;  %v3341_v48 = vrot.slane %v3132_v54, 2 }
 0x414   : > { %v3342_v13 = vrot.slane %v3133_v55, 2  ;;  %v3348_v27 = vsel %vm391_vm0, %v3346_v41, %v3347_v19  ;;  %v3350_v16 = vrot.slane %v3135_v45, 2  ;;  %v3920_v10 = vsel %vm694_vm8, %v3904_v25, %v5262_v14 }
 0x415   : > { %5445 = vrot.lane.b32.xlu0 %v5444_v37, %s5597_s12  ;;  %v3319_v3 = vsel %vm391_vm0, %v3317_v35, %v3318_v42  ;;  %v5286_v58 = vpop.permute.xlu0 %5285  ;;  %v3936_v33 = vsel %vm712_vm10, %v3920_v10, %v5272_v17  ;;  %v5282_v46 = vunpack.i.l.bf16 %v5281_v22  ;;  %v5283_v31 = vunpack.i.h.bf16 %v5281_v22  ;;  %v5513_v10 = vld [vmem:[#allocation2 + $0xb0] sm:$0xff]  ;;  %s4290_s12 = sshll.u32 %s311_s21, 4 }
 0x416   : > { %v3343_v50 = vsel %vm416_vm1, %v3341_v48, %v3342_v13  ;;  %v5291_v18 = vpop.permute.xlu1 %5290  ;;  %v5449_v2 = vpack.i.bf16 %v3319_v3, %v3316_v23  ;;  %v5459_v21 = vpack.i.bf16 %v3134_v30, %v3132_v54  ;;  %v5464_v24 = vpack.i.bf16 %v3348_v27, %v3319_v3  ;;  %v9267_v54 = vld [vmem:[#allocation15_spill] sm:$0xff] }
 0x417   : > { %v5454_v11 = vpack.i.bf16 %v3343_v50, %v3340_v56  ;;  %v5288_v23 = vunpack.i.h.bf16 %v5286_v58  ;;  %v5287_v52 = vunpack.i.l.bf16 %v5286_v58  ;;  %v3351_v36 = vsel %vm416_vm1, %v3349_v8, %v3350_v16  ;;  %v5512_v16 = vld [vmem:[#allocation2 + $0xc0] sm:$0xff] }
 0x418   : > { %5450 = vrot.lane.b32.xlu1 %v5449_v2, %s5598_s19  ;;  %v3952_v40 = vsel %vm1806_vm13, %v3936_v33, %v5277_v34  ;;  %v3969_v62 = vsel %vm1830_vm15, %v3953_v15, %v5283_v31  ;;  %v5293_v5 = vunpack.i.h.bf16 %v5291_v18  ;;  %v5292_v63 = vunpack.i.l.bf16 %v5291_v18  ;;  %s4358_s19 = sshll.u32 %s5670_s9, 8  ;;  %s4201_s9 = scalar_lea.sflag [#allocation4], %s311_s21 }
 0x419   : > { %5455 = vrot.lane.b32.xlu0 %v5454_v11, %s5599_s17  ;;  %v3968_v56 = vsel %vm1830_vm15, %v3952_v40, %v5282_v46  ;;  %v5469_v6 = vpack.i.bf16 %v3351_v36, %v3343_v50  ;;  %v3986_v61 = vsel %vm3976_vm4, %v3969_v62, %v5288_v23  ;;  %v1251_v55 = vadd.f32 %v7743_v53, %v9267_v54  ;;  %v5296_v14 = vpop.permute.xlu0 %5295  ;;  %s9023_s24 = scalar_lea.hbm %s9075_s8, %s4358_s19 }
 0x41a   : > { %v5301_v29 = vpop.permute.xlu1 %5300  ;;  %v3985_v57 = vsel %vm3976_vm4, %v3968_v56, %v5287_v52  ;;  %v4003_v37 = vsel %vm3993_vm5, %v3986_v61, %v5293_v5  ;;  %v5298_v50 = vunpack.i.h.bf16 %v5296_v14  ;;  %v5297_v32 = vunpack.i.l.bf16 %v5296_v14 }
 0x41b   : > { %v5303_v30 = vunpack.i.h.bf16 %v5301_v29  ;;  %v5302_v45 = vunpack.i.l.bf16 %v5301_v29  ;;  %v4002_v51 = vsel %vm3993_vm5, %v3985_v57, %v5292_v63  ;;  %v1157_v39 = vadd.f32 %v7524_v60, %v9267_v54 }
 0x41c   : > { %5460 = vrot.lane.b32.xlu1 %v5459_v21, %s5600_s13  ;;  %v3891_v1 = vsel %vm658_vm2, %v5512_v16, %v5298_v50  ;;  %v3890_v34 = vsel %vm658_vm2, %v5513_v10, %v5297_v32  ;;  %s313_s13 = scalar_lea.vmem [#allocation3], %s4290_s12 }
 0x41d   : > { %5465 = vrot.lane.b32.xlu0 %v5464_v24, %s5601_s20  ;;  %v4019_v41 = vsel %vm4010_vm7, %v4002_v51, %v5302_v45  ;;  %v4020_v42 = vsel %vm4010_vm7, %v4003_v37, %v5303_v30  ;;  %v5306_v12 = vpop.permute.xlu0 %5305  ;;  %s4215_s20 = sshll.u32 %s313_s13, 4  ;;  %s9025_s20 = int_to_ptr.vmem [resolvable:$true] %s4215_s20 }
 0x41e   : > { %v5311_v20 = vpop.permute.xlu1 %5310  ;;  %v5308_v49 = vunpack.i.h.bf16 %v5306_v12  ;;  %v5307_v26 = vunpack.i.l.bf16 %v5306_v12  ;;  %p5525_p0 = scmp.lt.s32.totalorder %s9025_s20, %s5523_s25 }
 0x41f   : > { %v5313_v47 = vunpack.i.h.bf16 %v5311_v20  ;;  %v5312_v22 = vunpack.i.l.bf16 %v5311_v20 }
 0x420   : > { %5470 = vrot.lane.b32.xlu1 %v5469_v6, %s5602_s22  ;;  %v3906_v58 = vsel %vm676_vm6, %v3890_v34, %v5307_v26  ;;  %v3907_v59 = vsel %vm676_vm6, %v3891_v1, %v5308_v49  ;;  %v5515_v1 = vld [vmem:[#allocation2 + $0xd0] sm:$0xff] }
 0x421   : > { %4063 = vperm.xlu0 %5033, %v334_v7   ;;  %v4036_v19 = vsel %vm4027_vm9, %v4019_v41, %v5312_v22  ;;  %v4037_v4 = vsel %vm4027_vm9, %v4020_v42, %v5313_v47  ;;  %v5316_v28 = vpop.permute.xlu0 %5315 }
 0x422   : > { %v5321_v35 = vpop.permute.xlu1 %5320  ;;  %v5318_v2 = vunpack.i.h.bf16 %v5316_v28  ;;  %v5317_v11 = vunpack.i.l.bf16 %v5316_v28 }
 0x423   : > { %v5323_v48 = vunpack.i.h.bf16 %v5321_v35  ;;  %v5322_v13 = vunpack.i.l.bf16 %v5321_v35 }
 0x424   : > { %v3922_v43 = vsel %vm694_vm8, %v3906_v58, %v5317_v11  ;;  %v3923_v46 = vsel %vm694_vm8, %v3907_v59, %v5318_v2 }
 0x425   : > { %4193 = vrot.lane.b32.xlu0 %v1251_v55, %s5599_s17  ;;  %v4053_v9 = vsel %vm4044_vm11, %v4036_v19, %v5322_v13  ;;  %v4054_v53 = vsel %vm4044_vm11, %v4037_v4, %v5323_v48  ;;  %v5326_v17 = vpop.permute.xlu0 %5325 }
 0x426   : > { %v4636_v0 = vpack.c.bf16 %v4054_v53, %v4053_v9  ;;  %v5331_v18 = vpop.permute.xlu1 %5330  ;;  %v5328_v25 = vunpack.i.h.bf16 %v5326_v17  ;;  %v5327_v8 = vunpack.i.l.bf16 %v5326_v17 }
 0x427   : > { %v5333_v38 = vunpack.i.h.bf16 %v5331_v18  ;;  %v5332_v31 = vunpack.i.l.bf16 %v5331_v18 }
 0x428   : > { %4638 = vmatpush3.bf16.xpose.msk.msra.mxu0 %vm8685_vm14, %v4636_v0  ;;  %v3938_v29 = vsel %vm712_vm10, %v3922_v43, %v5327_v8  ;;  %v3939_v21 = vsel %vm712_vm10, %v3923_v46, %v5328_v25 }
 0x429   : > { %4639 = vmatprep.subr.bf16.mxu0 %v9266_v44  ;;  %v3954_v15 = vsel %vm1806_vm13, %v3938_v29, %v5332_v31  ;;  %v3955_v56 = vsel %vm1806_vm13, %v3939_v21, %v5333_v38 }
 0x43e   : > { %v5336_v3 = vpop.permute.xlu0 %5335 }
 0x43f   : > { %v5338_v24 = vunpack.i.h.bf16 %v5336_v3  ;;  %v5337_v23 = vunpack.i.l.bf16 %v5336_v3 }
 0x441   : > { %v5341_v33 = vpop.permute.xlu1 %5340  ;;  %v3970_v7 = vsel %vm1830_vm15, %v3954_v15, %v5337_v23  ;;  %v3971_v62 = vsel %vm1830_vm15, %v3955_v56, %v5338_v24 }
 0x442   : > { %v5346_v27 = vpop.permute.xlu0 %5345  ;;  %v5343_v36 = vunpack.i.h.bf16 %v5341_v33  ;;  %v5342_v40 = vunpack.i.l.bf16 %v5341_v33 }
 0x443   : > { %v5348_v5 = vunpack.i.h.bf16 %v5346_v27  ;;  %v5347_v63 = vunpack.i.l.bf16 %v5346_v27  ;;  %v5514_v27 = vld [vmem:[#allocation2 + $0xe0] sm:$0xff] }
 0x444   : > { %v3987_v6 = vsel %vm3976_vm4, %v3970_v7, %v5342_v40  ;;  %v3988_v57 = vsel %vm3976_vm4, %v3971_v62, %v5343_v36 }
 0x445   : > { %v4004_v22 = vsel %vm3993_vm5, %v3987_v6, %v5347_v63  ;;  %v4005_v55 = vsel %vm3993_vm5, %v3988_v57, %v5348_v5  ;;  %v5351_v9 = vpop.permute.xlu1 %5350 }
 0x446   : > { %v5356_v52 = vpop.permute.xlu0 %5355  ;;  %v5353_v3 = vunpack.i.h.bf16 %v5351_v9  ;;  %v5352_v50 = vunpack.i.l.bf16 %v5351_v9 }
 0x447   : > { %v5358_v61 = vunpack.i.h.bf16 %v5356_v52  ;;  %v5357_v30 = vunpack.i.l.bf16 %v5356_v52 }
 0x448   : > { %v3893_v16 = vsel %vm658_vm2, %v5514_v27, %v5353_v3  ;;  %v3892_v10 = vsel %vm658_vm2, %v5515_v1, %v5352_v50 }
 0x449   : > { %v4021_v37 = vsel %vm4010_vm7, %v4004_v22, %v5357_v30  ;;  %v4022_v35 = vsel %vm4010_vm7, %v4005_v55, %v5358_v61  ;;  %v5361_v0 = vpop.permute.xlu1 %5360 }
 0x44a   : > { %v5366_v20 = vpop.permute.xlu0 %5365  ;;  %v5363_v32 = vunpack.i.h.bf16 %v5361_v0  ;;  %v5362_v49 = vunpack.i.l.bf16 %v5361_v0 }
 0x44b   : > { %v5368_v45 = vunpack.i.h.bf16 %v5366_v20  ;;  %v5367_v47 = vunpack.i.l.bf16 %v5366_v20 }
 0x44c   : > { %v3908_v34 = vsel %vm676_vm6, %v3892_v10, %v5362_v49  ;;  %v3909_v58 = vsel %vm676_vm6, %v3893_v16, %v5363_v32 }
 0x44d   : > { %v4038_v48 = vsel %vm4027_vm9, %v4021_v37, %v5367_v47  ;;  %v4039_v13 = vsel %vm4027_vm9, %v4022_v35, %v5368_v45  ;;  %v5371_v14 = vpop.permute.xlu1 %5370 }
 0x44e   : > { %v5376_v51 = vpop.permute.xlu0 %5375  ;;  %v5373_v26 = vunpack.i.h.bf16 %v5371_v14  ;;  %v5372_v18 = vunpack.i.l.bf16 %v5371_v14 }
 0x44f   : > { %v5378_v41 = vunpack.i.h.bf16 %v5376_v51  ;;  %v5377_v42 = vunpack.i.l.bf16 %v5376_v51 }
 0x450   : > { %v3924_v59 = vsel %vm694_vm8, %v3908_v34, %v5372_v18  ;;  %v3925_v33 = vsel %vm694_vm8, %v3909_v58, %v5373_v26  ;;  %v5516_v18 = vld [vmem:[#allocation2 + $0x100] sm:$0xff] }
 0x451   : > { %v4055_v19 = vsel %vm4044_vm11, %v4038_v48, %v5377_v42  ;;  %v4056_v4 = vsel %vm4044_vm11, %v4039_v13, %v5378_v41  ;;  %v5381_v12 = vpop.permute.xlu1 %5380 }
 0x452   : > { %v4640_v53 = vpack.c.bf16 %v4056_v4, %v4055_v19  ;;  %v5386_v28 = vpop.permute.xlu0 %5385  ;;  %v5383_v11 = vunpack.i.h.bf16 %v5381_v12  ;;  %v5382_v25 = vunpack.i.l.bf16 %v5381_v12 }
 0x453   : > { %v5388_v43 = vunpack.i.h.bf16 %v5386_v28  ;;  %v5387_v46 = vunpack.i.l.bf16 %v5386_v28 }
 0x454   : > { %4642 = vmatpush3.bf16.xpose.msk.msra.mxu0 %vm8685_vm14, %v4640_v53  ;;  %v3940_v31 = vsel %vm712_vm10, %v3924_v59, %v5382_v25  ;;  %v3941_v29 = vsel %vm712_vm10, %v3925_v33, %v5383_v11  ;;  %v5517_v11 = vld [vmem:[#allocation2 + $0xf0] sm:$0xff] }
 0x455   : > { %4643 = vmatprep.subr.bf16.mxu0 %v9266_v44  ;;  %v3957_v40 = vsel %vm1806_vm13, %v3941_v29, %v5388_v43  ;;  %v3956_v15 = vsel %vm1806_vm13, %v3940_v31, %v5387_v46 }
 0x46a   : > { %v5391_v17 = vpop.permute.xlu1 %5390 }
 0x46b   : > { %v5393_v21 = vunpack.i.h.bf16 %v5391_v17  ;;  %v5392_v24 = vunpack.i.l.bf16 %v5391_v17 }
 0x46d   : > { %v5396_v2 = vpop.permute.xlu0 %5395  ;;  %v3972_v7 = vsel %vm1830_vm15, %v3956_v15, %v5392_v24  ;;  %v3973_v62 = vsel %vm1830_vm15, %v3957_v40, %v5393_v21 }
 0x46e   : > { %v5401_v8 = vpop.permute.xlu1 %5400  ;;  %v5398_v52 = vunpack.i.h.bf16 %v5396_v2  ;;  %v5397_v36 = vunpack.i.l.bf16 %v5396_v2 }
 0x46f   : > { %v5403_v5 = vunpack.i.h.bf16 %v5401_v8  ;;  %v5402_v63 = vunpack.i.l.bf16 %v5401_v8 }
 0x470   : > { %v3989_v6 = vsel %vm3976_vm4, %v3972_v7, %v5397_v36  ;;  %v3990_v57 = vsel %vm3976_vm4, %v3973_v62, %v5398_v52 }
 0x471   : > { %v5406_v38 = vpop.permute.xlu0 %5405  ;;  %v4006_v22 = vsel %vm3993_vm5, %v3989_v6, %v5402_v63  ;;  %v4007_v55 = vsel %vm3993_vm5, %v3990_v57, %v5403_v5 }
 0x472   : > { %v5411_v23 = vpop.permute.xlu1 %5410  ;;  %v5408_v0 = vunpack.i.h.bf16 %v5406_v38  ;;  %v5407_v14 = vunpack.i.l.bf16 %v5406_v38 }
 0x473   : > { %v5413_v61 = vunpack.i.h.bf16 %v5411_v23  ;;  %v5412_v30 = vunpack.i.l.bf16 %v5411_v23 }
 0x474   : > { %v3895_v2 = vsel %vm658_vm2, %v5516_v18, %v5408_v0  ;;  %v3894_v25 = vsel %vm658_vm2, %v5517_v11, %v5407_v14 }
 0x475   : > { %v5416_v56 = vpop.permute.xlu0 %5415  ;;  %v4023_v37 = vsel %vm4010_vm7, %v4006_v22, %v5412_v30  ;;  %v4024_v35 = vsel %vm4010_vm7, %v4007_v55, %v5413_v61 }
 0x476   : > { %v5421_v20 = vpop.permute.xlu1 %5420  ;;  %v5418_v28 = vunpack.i.h.bf16 %v5416_v56  ;;  %v5417_v17 = vunpack.i.l.bf16 %v5416_v56 }
 0x477   : > { %v5423_v45 = vunpack.i.h.bf16 %v5421_v20  ;;  %v5422_v47 = vunpack.i.l.bf16 %v5421_v20 }
 0x478   : > { %v3910_v8 = vsel %vm676_vm6, %v3894_v25, %v5417_v17  ;;  %v3911_v27 = vsel %vm676_vm6, %v3895_v2, %v5418_v28 }
 0x479   : > { %v5426_v41 = vpop.permute.xlu0 %5425  ;;  %v4040_v13 = vsel %vm4027_vm9, %v4023_v37, %v5422_v47  ;;  %v4041_v19 = vsel %vm4027_vm9, %v4024_v35, %v5423_v45 }
 0x47a   : > { %v5431_v51 = vpop.permute.xlu1 %5430  ;;  %v5428_v3 = vunpack.i.h.bf16 %v5426_v41  ;;  %v5427_v50 = vunpack.i.l.bf16 %v5426_v41 }
 0x47b   : > { %v5433_v42 = vunpack.i.h.bf16 %v5431_v51  ;;  %v5432_v48 = vunpack.i.l.bf16 %v5431_v51 }
 0x47c   : > { %v3927_v1 = vsel %vm694_vm8, %v3911_v27, %v5428_v3 }
 0x47d   : > { %v4057_v4 = vsel %vm4044_vm11, %v4040_v13, %v5432_v48  ;;  %v4058_v9 = vsel %vm4044_vm11, %v4041_v19, %v5433_v42  ;;  %v5436_v12 = vpop.permute.xlu0 %5435  ;;  %v333_v48 = vld [vmem:[%s9073_s6] sm:$0xff] }
 0x47e   : > { %v4644_v53 = vpack.c.bf16 %v4058_v9, %v4057_v4  ;;  %v5438_v32 = vunpack.i.h.bf16 %v5436_v12  ;;  %v5437_v49 = vunpack.i.l.bf16 %v5436_v12  ;;  %v5441_v26 = vpop.permute.xlu1 %5440 }
 0x47f   : > { %v5443_v10 = vunpack.i.h.bf16 %v5441_v26  ;;  %v5442_v34 = vunpack.i.l.bf16 %v5441_v26 }
 0x480   : > { %4646 = vmatpush3.bf16.xpose.msk.msra.mxu0 %vm8685_vm14, %v4644_v53  ;;  %v3943_v59 = vsel %vm712_vm10, %v3927_v1, %v5438_v32 }
 0x481   : > { %4647 = vmatprep.subr.bf16.mxu0 %v9266_v44  ;;  %v3926_v44 = vsel %vm694_vm8, %v3910_v8, %v5427_v50  ;;  %v3959_v29 = vsel %vm1806_vm13, %v3943_v59, %v5443_v10 }
 0x482   : > { %v3942_v58 = vsel %vm712_vm10, %v3926_v44, %v5437_v49 }
 0x483   : > { %v3958_v31 = vsel %vm1806_vm13, %v3942_v58, %v5442_v34 }
 0x487   : > { %v5446_v16 = vpop.permute.xlu0 %5445 }
 0x488   : > { %v5448_v33 = vunpack.i.h.bf16 %v5446_v16  ;;  %v5447_v43 = vunpack.i.l.bf16 %v5446_v16 }
 0x48a   : > { %v5451_v46 = vpop.permute.xlu1 %5450  ;;  %v3974_v23 = vsel %vm1830_vm15, %v3958_v31, %v5447_v43  ;;  %v3975_v52 = vsel %vm1830_vm15, %v3959_v29, %v5448_v33 }
 0x48b   : > { %v5456_v38 = vpop.permute.xlu0 %5455  ;;  %v5453_v21 = vunpack.i.h.bf16 %v5451_v46  ;;  %v5452_v24 = vunpack.i.l.bf16 %v5451_v46 }
 0x48c   : > { %v5458_v36 = vunpack.i.h.bf16 %v5456_v38  ;;  %v5457_v40 = vunpack.i.l.bf16 %v5456_v38 }
 0x48d   : > { %v3991_v15 = vsel %vm3976_vm4, %v3974_v23, %v5452_v24  ;;  %v3992_v56 = vsel %vm3976_vm4, %v3975_v52, %v5453_v21 }
 0x48e   : > { %v5461_v7 = vpop.permute.xlu1 %5460  ;;  %v4008_v20 = vsel %vm3993_vm5, %v3991_v15, %v5457_v40  ;;  %v4009_v6 = vsel %vm3993_vm5, %v3992_v56, %v5458_v36 }
 0x48f   : > { %v5466_v62 = vpop.permute.xlu0 %5465  ;;  %v5463_v5 = vunpack.i.h.bf16 %v5461_v7  ;;  %v5462_v63 = vunpack.i.l.bf16 %v5461_v7 }
 0x490   : > { %v5468_v57 = vunpack.i.h.bf16 %v5466_v62  ;;  %v5467_v61 = vunpack.i.l.bf16 %v5466_v62 }
 0x491   : > { %v4025_v30 = vsel %vm4010_vm7, %v4008_v20, %v5462_v63  ;;  %v4026_v45 = vsel %vm4010_vm7, %v4009_v6, %v5463_v5 }
 0x492   : > { %v5471_v47 = vpop.permute.xlu1 %5470  ;;  %v4042_v51 = vsel %vm4027_vm9, %v4025_v30, %v5467_v61  ;;  %v4043_v37 = vsel %vm4027_vm9, %v4026_v45, %v5468_v57 }
 0x493   : > { %v5473_v22 = vunpack.i.h.bf16 %v5471_v47  ;;  %v5472_v55 = vunpack.i.l.bf16 %v5471_v47 }
 0x495   : > { %v4059_v35 = vsel %vm4044_vm11, %v4042_v51, %v5472_v55  ;;  %v4060_v41 = vsel %vm4044_vm11, %v4043_v37, %v5473_v22 }
 0x496   : > { %v4648_v42 = vpack.c.bf16 %v4060_v41, %v4059_v35 }
 0x498   : > { %4650 = vmatpush3.bf16.xpose.msk.msra.mxu0 %vm8685_vm14, %v4648_v42 }
 0x49f   : > { %4561 = vmatmul.mubr.msk.f32.vlgmr.msra.gmra.mrb[2].mxu0 %vm4066_vm12, %v333_v48 }
 0x4a0   : > { %v4064_v13 = vpop.permute.xlu0 %4063 }
 0x4a4   : > { %v4194_v53 = vpop.permute.xlu0 %4193 }
 0x572   : > { %v4184_v19 = vpop.f32.mrb[2].mxu0 }
 0x573   : > { %v4185_v4 = vadd.f32 %v4184_v19, %v4064_v13  ;;  %v4562_v9 = vpop.f32.mrb[3].mxu0 }
 0x575   : > { %4189 = vrot.lane.b32.xlu1 %v4185_v4, %s5599_s17  ;;  %s5518_s17 = scalar_lea.vmem %s9025_s20, 256 }
 0x576   : > { %p5519_p11 = scmp.ne.s32.totalorder %s9025_s20, %s5518_s17  ;;  %p5526_p1 = scmp.lt.s32.totalorder %s5524_s10, %s5518_s17 }
 0x578   : > { %p5520_p12 = pnand %p5519_p11, %p5687_p5  ;;  %p5527_p2 = por %p5526_p1, %p5525_p0 }
 0x57a   : > { %p5521_p13 = pneg %p5520_p12 }
 0x57c   : > { %p5528_p3 = pnand %p5527_p2, %p5521_p13 }
 0x5e7   : > { %v4190_v0 = vpop.permute.xlu1 %4189 }
 0x5e8   : > { %v4196_v14 = vsel %vm3993_vm5, %v1157_v39, %v4190_v0  ;;  %v4197_v12 = vsel %vm3993_vm5, %v4190_v0, %v4194_v53 }
 0x5e9   : > { %4198 = vst [vmem:[%s313_s13] sm:$0xff] %v4196_v14  ;;  %4199 = vst [vmem:[%s313_s13 + $0x8] sm:$0xff] %v4197_v12 }
 0x5ea   : > { %5531 = shalt.err (!%p5528_p3)
}
 0x5eb   : > { %s5532_s18 = scalar_lea.hbm %s9023_s24, 256  ;;  %s5536_s19 = scalar_lea.hbm %s9075_s8, 512 }
 0x5ec   : > { %p5533_p4 = scmp.ne.s32.totalorder %s9023_s24, %s5532_s18  ;;  %p5537_p9 = scmp.lt.u32.totalorder %s9023_s24, %s9075_s8 }
 0x5ed   : > { %p5538_p10 = scmp.lt.u32.totalorder %s5536_s19, %s5532_s18  ;;  %p5540_p12 = scmp.lt.u32.totalorder %s5532_s18, %s9023_s24 }
 0x5ee   : > { %p5534_p7 = pnand %p5533_p4, %p5687_p5 }
 0x5ef   : > { %p5539_p11 = por %p5538_p10, %p5537_p9 }
 0x5f0   : > { %p5535_p8 = pneg %p5534_p7 }
 0x5f1   : > { %p5541_p13 = por %p5540_p12, %p5539_p11 }
 0x5f3   : > { %p5542_p0 = pnand %p5541_p13, %p5535_p8 }
 0x5f5   : > { %5545 = shalt.err (!%p5542_p0)
}
 0x5f6   : > { %4653 = dma.vmem_to_hbm [thread:$0]  (%p5687_p5), %s9025_s20, 256, %s9023_s24, %s4201_s9  }
 0x5f7 PF: > { %p4659_p1 = scmp.ge.s32.totalorder %s5580_s30, 2  ;;  %s4227_s26 = sand.u32 1, %s5568_s27  }
 0x5f8   : > { %s4228_s17 = scalar_lea.sflag [#allocation4], %s4227_s26 }
 0x5f9   : > { %p4656_p2 = pnand %p4659_p1, %p5691_p6 }
 0x5fb   : > { %5563 = dma.done.wait (!%p4656_p2), %s4228_s17, 256  }
 0x5fc   : > { %5565 = vsyncadd (!%p4656_p2), %s4228_s17, 4294967040  ;;  %p18_p3 = scmp.ge.s32.totalorder %s5674_s11, 4   ;;  %s9268_s27 = smov %s5572_s28 }
 0x5fd   : > { %s9269_s28 = smov %s5576_s29  ;;  %s9270_s29 = smov %s5685_s14 }
 0x5fe   : > { %s9271_s30 = smov %s5674_s11  ;;  %20 = sbr.rel (!%p18_p3) target bundleno = 3 (0x3), region = 92 }
 0x605   :  { %4233 = vsyncpa [#allocation4], 1 }
 0x606   :  { %4235 = vsyncpa [#allocation4 + $0x1], 1 }

</bundles_post_ra>
